<compile_context>
chip_gen: v7x
topology: tpu7x:2x2x1
jax: 0.10.0
libtpu: 0.0.40
codegen_flags: <defaults>
</compile_context>

<pallas_src>
import functools

import jax
import jax.numpy as jnp
from jax.experimental import pallas as pl
from jax.experimental.pallas import tpu as pltpu


# ---------------------------------------------------------------------------
# Kernel: one batch tile per grid step, everything resident in VMEM/vregs.
# ---------------------------------------------------------------------------
def _masking_net_kernel(x_ref, wq_ref, wk_ref, wv_ref, wo0_ref, wo1_ref,
                        bo0_ref, bo1_ref, out0_ref, out1_ref, attn_ref,
                        *, heads, head_dim, mxu_dtype):
    f32 = jnp.float32
    bb, fh, fw = x_ref.shape
    rows = bb * fh

    x = x_ref[...].astype(f32)                        # (bb, fh, fw)
    x2 = x.reshape(rows, fw).astype(mxu_dtype)        # (bb*fh, fw) for the MXU

    # Fused per-head Q/K/V projections via block-diagonal (fw, fw) weights.
    # The softmax 1/sqrt(embed_size) scale is pre-folded into wq (wrapper).
    q = jnp.dot(x2, wq_ref[...].astype(mxu_dtype), preferred_element_type=f32)
    k = jnp.dot(x2, wk_ref[...].astype(mxu_dtype), preferred_element_type=f32)
    v = jnp.dot(x2, wv_ref[...].astype(mxu_dtype), preferred_element_type=f32)
    q3 = q.reshape(bb, fh, fw)
    k3 = k.reshape(bb, fh, fw)
    v3 = v.reshape(bb, fh, fw)

    # Per-head scaled-dot-product attention, batched over the batch tile.
    for h in range(heads):                            # small static constant
        cols = slice(h * head_dim, (h + 1) * head_dim)
        qh = q3[:, :, cols].astype(mxu_dtype)         # (bb, fh, d)
        kh = k3[:, :, cols].astype(mxu_dtype)
        vh = v3[:, :, cols].astype(mxu_dtype)
        e = jnp.einsum('bqd,bkd->bqk', qh, kh, preferred_element_type=f32)
        m = jnp.max(e, axis=-1, keepdims=True)
        p = jnp.exp(e - m)
        a = p / jnp.sum(p, axis=-1, keepdims=True)
        oh = jnp.einsum('bqk,bkd->bqd', a.astype(mxu_dtype), vh,
                        preferred_element_type=f32)   # (bb, fh, d) f32
        attn_ref[:, cols] = oh.reshape(rows, head_dim)

    # fc_out, pre-split in the wrapper into the two de-interleaved mask heads,
    # so no strided lane de-interleave happens inside the kernel.
    am = attn_ref[...].astype(mxu_dtype)              # (bb*fh, fw)
    logits0 = jnp.dot(am, wo0_ref[...].astype(mxu_dtype),
                      preferred_element_type=f32) + bo0_ref[...]
    logits1 = jnp.dot(am, wo1_ref[...].astype(mxu_dtype),
                      preferred_element_type=f32) + bo1_ref[...]
    mask0 = jnp.maximum(logits0, 0.0).reshape(bb, fh, fw)   # ReLU
    mask1 = jnp.maximum(logits1, 0.0).reshape(bb, fh, fw)

    out0_ref[...] = (mask0 * x).astype(out0_ref.dtype)
    out1_ref[...] = (mask1 * x).astype(out1_ref.dtype)


# ---------------------------------------------------------------------------
# Wrapper: parameter re-layout + pallas_call
# ---------------------------------------------------------------------------
def prepare_masking_net_params(wq, wk, wv, wo, bo, *, heads):
    """Re-layout PyTorch-style parameters for the fused kernel.

    wq/wk/wv: (head_dim, head_dim)  nn.Linear weight (out, in), no bias.
    wo:       (2*feat_map_w, feat_map_w) fc_out weight;  bo: (2*feat_map_w,).
    """
    head_dim = wq.shape[0]
    fw = heads * head_dim
    scale = 1.0 / float(fw) ** 0.5
    eye = jnp.eye(heads, dtype=wq.dtype)
    wq_bd = jnp.kron(eye, wq.T) * scale    # block-diag + absorbed softmax scale
    wk_bd = jnp.kron(eye, wk.T)
    wv_bd = jnp.kron(eye, wv.T)
    wo_t = wo.T                            # (fw, 2*fw); columns interleave masks
    wo0, wo1 = wo_t[:, 0::2], wo_t[:, 1::2]              # (fw, fw) each
    bo0, bo1 = bo[0::2].reshape(1, fw), bo[1::2].reshape(1, fw)
    return wq_bd, wk_bd, wv_bd, wo0, wo1, bo0, bo1


def masking_net_forward(x, params, *, heads, block_b=8, mxu_dtype=jnp.bfloat16):
    """Pallas MaskingNet.forward. x: (N, feat_map_h, feat_map_w). Returns [m0*x, m1*x]."""
    wq_bd, wk_bd, wv_bd, wo0, wo1, bo0, bo1 = params
    n, fh, fw = x.shape
    assert fw % heads == 0, "feat_map_w must be divisible by heads"
    head_dim = fw // heads

    bb = max(1, min(block_b, n))                      # batch-tile size
    n_blocks = pl.cdiv(n, bb)
    n_pad = n_blocks * bb
    x_in = jnp.pad(x, ((0, n_pad - n), (0, 0), (0, 0))) if n_pad != n else x

    kernel = functools.partial(_masking_net_kernel, heads=heads,
                               head_dim=head_dim, mxu_dtype=mxu_dtype)

    batch_spec = pl.BlockSpec((bb, fh, fw), lambda b: (b, 0, 0))
    w_spec = pl.BlockSpec((fw, fw), lambda b: (0, 0))   # constant block -> stays in VMEM
    b_spec = pl.BlockSpec((1, fw), lambda b: (0, 0))
    # TODO(synk): for production feat_map_w not a multiple of 128, pad the lane
    # dim (W) to 128 in this wrapper (slice off afterwards) so output stores
    # become unmasked lane-dense vst instead of vst.msk.
    out0, out1 = pl.pallas_call(
        kernel,
        grid=(n_blocks,),
        in_specs=[batch_spec, w_spec, w_spec, w_spec, w_spec, w_spec,
                  b_spec, b_spec],
        out_specs=[batch_spec, batch_spec],
        out_shape=[jax.ShapeDtypeStruct((n_pad, fh, fw), x.dtype)] * 2,
        scratch_shapes=[pltpu.VMEM((bb * fh, fw), jnp.float32)],
        compiler_params=pltpu.CompilerParams(dimension_semantics=("parallel",)),
    )(x_in, wq_bd, wk_bd, wv_bd, wo0, wo1, bo0, bo1)
    if n_pad != n:
        out0, out1 = out0[:n], out1[:n]
    return [out0, out1]


# ---------------------------------------------------------------------------
# Pure-JAX reference (mirrors the PyTorch module exactly)
# ---------------------------------------------------------------------------
def masking_net_reference(x, wq, wk, wv, wo, bo, *, heads):
    n, fh, fw = x.shape
    d = fw // heads
    xh = x.reshape(n, fh, heads, d)
    q = xh @ wq.T
    k = xh @ wk.T
    v = xh @ wv.T
    energy = jnp.einsum("nqhd,nkhd->nhqk", q, k)
    attn = jax.nn.softmax(energy / (fw ** 0.5), axis=3)
    out = jnp.einsum("nhql,nlhd->nqhd", attn, v).reshape(n, fh, fw)
    fc = (out @ wo.T + bo).reshape(n, fh, fw, 2)
    return [jnp.maximum(fc[..., c], 0.0) * x for c in range(2)]


if __name__ == "__main__":
    jax.config.update("jax_default_matmul_precision", "highest")

    batch, feat_map_h, feat_map_w, heads = 5, 8, 16, 4
    head_dim = feat_map_w // heads

    key = jax.random.PRNGKey(0)
    k_x, k_q, k_k, k_v, k_wo, k_bo = jax.random.split(key, 6)
    x = jax.random.normal(k_x, (batch, feat_map_h, feat_map_w), jnp.float32)

    bnd_h = 1.0 / float(head_dim) ** 0.5
    bnd_o = 1.0 / float(feat_map_w) ** 0.5
    wq = jax.random.uniform(k_q, (head_dim, head_dim), jnp.float32, -bnd_h, bnd_h)
    wk = jax.random.uniform(k_k, (head_dim, head_dim), jnp.float32, -bnd_h, bnd_h)
    wv = jax.random.uniform(k_v, (head_dim, head_dim), jnp.float32, -bnd_h, bnd_h)
    wo = jax.random.uniform(k_wo, (2 * feat_map_w, feat_map_w), jnp.float32, -bnd_o, bnd_o)
    bo = jax.random.uniform(k_bo, (2 * feat_map_w,), jnp.float32, -bnd_o, bnd_o)

    params = prepare_masking_net_params(wq, wk, wv, wo, bo, heads=heads)
    ref = masking_net_reference(x, wq, wk, wv, wo, bo, heads=heads)

    # f32 MXU path, block_b=4 (exercises multi-step grid + batch padding):
    # tight match against the pure-JAX reference.
    out_f32 = jax.block_until_ready(
        masking_net_forward(x, params, heads=heads, block_b=4,
                            mxu_dtype=jnp.float32))
    assert len(out_f32) == 2
    for o, r in zip(out_f32, ref):
        assert o.shape == (batch, feat_map_h, feat_map_w)
        assert bool(jnp.allclose(o, r, atol=1e-3, rtol=1e-3)), \
            float(jnp.max(jnp.abs(o - r)))

    # Default bf16-MXU path (f32 accumulation), default batch tile:
    # loose sanity check.
    out_bf16 = jax.block_until_ready(masking_net_forward(x, params, heads=heads))
    for o, r in zip(out_bf16, ref):
        assert o.shape == (batch, feat_map_h, feat_map_w)
        assert bool(jnp.all(jnp.isfinite(o)))
        assert float(jnp.mean(jnp.abs(o - r))) < 5e-2

    print("KERNEL_OK")
</pallas_src>

<mosaic_0001>
module attributes {stable_mosaic.version = 11 : i64} {
  func.func @_masking_net_kernel(%arg0: i32, %arg1: memref<4x8x16xf32, #tpu.memory_space<vmem>>, %arg2: memref<16x16xf32, #tpu.memory_space<vmem>>, %arg3: memref<16x16xf32, #tpu.memory_space<vmem>>, %arg4: memref<16x16xf32, #tpu.memory_space<vmem>>, %arg5: memref<16x16xf32, #tpu.memory_space<vmem>>, %arg6: memref<16x16xf32, #tpu.memory_space<vmem>>, %arg7: memref<1x16xf32, #tpu.memory_space<vmem>>, %arg8: memref<1x16xf32, #tpu.memory_space<vmem>>, %arg9: memref<4x8x16xf32, #tpu.memory_space<vmem>>, %arg10: memref<4x8x16xf32, #tpu.memory_space<vmem>>, %arg11: memref<32x16xf32, #tpu.memory_space<vmem>>) attributes {dimension_semantics = [#tpu.dimension_semantics<parallel>], iteration_bounds = array<i64: 2>, scalar_prefetch = 0 : i64, scratch_operands = 1 : i64, tpu.core_type = #tpu.core_type<tc>, window_params = [{transform_indices = @transform_0, window_bounds = array<i64: 4, 8, 16>}, {pipeline_mode = #tpu.pipeline_mode<synchronous>, transform_indices = @transform_1, window_bounds = array<i64: 16, 16>}, {pipeline_mode = #tpu.pipeline_mode<synchronous>, transform_indices = @transform_2, window_bounds = array<i64: 16, 16>}, {pipeline_mode = #tpu.pipeline_mode<synchronous>, transform_indices = @transform_3, window_bounds = array<i64: 16, 16>}, {pipeline_mode = #tpu.pipeline_mode<synchronous>, transform_indices = @transform_4, window_bounds = array<i64: 16, 16>}, {pipeline_mode = #tpu.pipeline_mode<synchronous>, transform_indices = @transform_5, window_bounds = array<i64: 16, 16>}, {pipeline_mode = #tpu.pipeline_mode<synchronous>, transform_indices = @transform_6, window_bounds = array<i64: 1, 16>}, {pipeline_mode = #tpu.pipeline_mode<synchronous>, transform_indices = @transform_7, window_bounds = array<i64: 1, 16>}, {transform_indices = @transform_8, window_bounds = array<i64: 4, 8, 16>}, {transform_indices = @transform_9, window_bounds = array<i64: 4, 8, 16>}]} {
    %c0 = arith.constant 0 : index
    %c0_0 = arith.constant 0 : index
    %c0_1 = arith.constant 0 : index
    %0 = vector.load %arg1[%c0, %c0_0, %c0_1] : memref<4x8x16xf32, #tpu.memory_space<vmem>>, vector<4x8x16xf32>
    %1 = vector.shape_cast %0 : vector<4x8x16xf32> to vector<32x16xf32>
    %c0_2 = arith.constant 0 : index
    %c0_3 = arith.constant 0 : index
    %2 = vector.load %arg2[%c0_2, %c0_3] : memref<16x16xf32, #tpu.memory_space<vmem>>, vector<16x16xf32>
    %cst = arith.constant dense<0.000000e+00> : vector<32x16xf32>
    %3 = tpu.matmul %1, %2, %cst {dimension_numbers = #tpu.dot_dimension_numbers<[1], [0], [0], [1], [0, 0, 1, 1], [], []>, precision = #tpu.contract_precision<fp32>} : vector<32x16xf32>, vector<16x16xf32>, vector<32x16xf32> -> vector<32x16xf32>
    %c0_4 = arith.constant 0 : index
    %c0_5 = arith.constant 0 : index
    %4 = vector.load %arg3[%c0_4, %c0_5] : memref<16x16xf32, #tpu.memory_space<vmem>>, vector<16x16xf32>
    %cst_6 = arith.constant dense<0.000000e+00> : vector<32x16xf32>
    %5 = tpu.matmul %1, %4, %cst_6 {dimension_numbers = #tpu.dot_dimension_numbers<[1], [0], [0], [1], [0, 0, 1, 1], [], []>, precision = #tpu.contract_precision<fp32>} : vector<32x16xf32>, vector<16x16xf32>, vector<32x16xf32> -> vector<32x16xf32>
    %c0_7 = arith.constant 0 : index
    %c0_8 = arith.constant 0 : index
    %6 = vector.load %arg4[%c0_7, %c0_8] : memref<16x16xf32, #tpu.memory_space<vmem>>, vector<16x16xf32>
    %cst_9 = arith.constant dense<0.000000e+00> : vector<32x16xf32>
    %7 = tpu.matmul %1, %6, %cst_9 {dimension_numbers = #tpu.dot_dimension_numbers<[1], [0], [0], [1], [0, 0, 1, 1], [], []>, precision = #tpu.contract_precision<fp32>} : vector<32x16xf32>, vector<16x16xf32>, vector<32x16xf32> -> vector<32x16xf32>
    %8 = vector.shape_cast %3 : vector<32x16xf32> to vector<4x8x16xf32>
    %9 = vector.shape_cast %5 : vector<32x16xf32> to vector<4x8x16xf32>
    %10 = vector.shape_cast %7 : vector<32x16xf32> to vector<4x8x16xf32>
    %11 = vector.extract_strided_slice %8 {offsets = [0, 0, 0], sizes = [4, 8, 4], strides = [1, 1, 1]} : vector<4x8x16xf32> to vector<4x8x4xf32>
    %12 = vector.extract_strided_slice %9 {offsets = [0, 0, 0], sizes = [4, 8, 4], strides = [1, 1, 1]} : vector<4x8x16xf32> to vector<4x8x4xf32>
    %13 = vector.extract_strided_slice %10 {offsets = [0, 0, 0], sizes = [4, 8, 4], strides = [1, 1, 1]} : vector<4x8x16xf32> to vector<4x8x4xf32>
    "tpu.trace_start"() <{level = 10 : i32, message = "bqd,bkd->bqk"}> : () -> ()
    %cst_10 = arith.constant dense<0.000000e+00> : vector<4x8x8xf32>
    %14 = tpu.matmul %11, %12, %cst_10 {dimension_numbers = #tpu.dot_dimension_numbers<[2], [2], [1], [1], [0, 0, 0, 1, 1, 1], [0], [0]>, precision = #tpu.contract_precision<fp32>} : vector<4x8x4xf32>, vector<4x8x4xf32>, vector<4x8x8xf32> -> vector<4x8x8xf32>
    "tpu.trace_stop"() : () -> ()
    %cst_11 = arith.constant dense<0xFF800000> : vector<4x8xf32>
    %15 = vector.multi_reduction <maximumf>, %14, %cst_11 [2] : vector<4x8x8xf32> to vector<4x8xf32>
    %16 = vector.shape_cast %15 : vector<4x8xf32> to vector<4x8x1xf32>
    %17 = vector.broadcast %16 : vector<4x8x1xf32> to vector<4x8x8xf32>
    %18 = arith.subf %14, %17 : vector<4x8x8xf32>
    %19 = math.exp %18 : vector<4x8x8xf32>
    %cst_12 = arith.constant dense<0.000000e+00> : vector<4x8xf32>
    %20 = vector.multi_reduction <add>, %19, %cst_12 [2] : vector<4x8x8xf32> to vector<4x8xf32>
    %21 = vector.shape_cast %20 : vector<4x8xf32> to vector<4x8x1xf32>
    %22 = vector.broadcast %21 : vector<4x8x1xf32> to vector<4x8x8xf32>
    %23 = arith.divf %19, %22 : vector<4x8x8xf32>
    "tpu.trace_start"() <{level = 10 : i32, message = "bqk,bkd->bqd"}> : () -> ()
    %cst_13 = arith.constant dense<0.000000e+00> : vector<4x8x4xf32>
    %24 = tpu.matmul %23, %13, %cst_13 {dimension_numbers = #tpu.dot_dimension_numbers<[2], [1], [1], [2], [0, 0, 0, 1, 1, 2], [0], [0]>, precision = #tpu.contract_precision<fp32>} : vector<4x8x8xf32>, vector<4x8x4xf32>, vector<4x8x4xf32> -> vector<4x8x4xf32>
    "tpu.trace_stop"() : () -> ()
    %25 = vector.shape_cast %24 : vector<4x8x4xf32> to vector<32x4xf32>
    %c0_14 = arith.constant 0 : index
    %c0_15 = arith.constant 0 : index
    %26 = vector.load %arg11[%c0_14, %c0_15] : memref<32x16xf32, #tpu.memory_space<vmem>>, vector<32x4xf32>
    tpu.vector_store %arg11[%c0_14, %c0_15], %25 {strides = array<i32>} : memref<32x16xf32, #tpu.memory_space<vmem>>, vector<32x4xf32>,
    %27 = vector.extract_strided_slice %8 {offsets = [0, 0, 4], sizes = [4, 8, 4], strides = [1, 1, 1]} : vector<4x8x16xf32> to vector<4x8x4xf32>
    %28 = vector.extract_strided_slice %9 {offsets = [0, 0, 4], sizes = [4, 8, 4], strides = [1, 1, 1]} : vector<4x8x16xf32> to vector<4x8x4xf32>
    %29 = vector.extract_strided_slice %10 {offsets = [0, 0, 4], sizes = [4, 8, 4], strides = [1, 1, 1]} : vector<4x8x16xf32> to vector<4x8x4xf32>
    "tpu.trace_start"() <{level = 10 : i32, message = "bqd,bkd->bqk"}> : () -> ()
    %cst_16 = arith.constant dense<0.000000e+00> : vector<4x8x8xf32>
    %30 = tpu.matmul %27, %28, %cst_16 {dimension_numbers = #tpu.dot_dimension_numbers<[2], [2], [1], [1], [0, 0, 0, 1, 1, 1], [0], [0]>, precision = #tpu.contract_precision<fp32>} : vector<4x8x4xf32>, vector<4x8x4xf32>, vector<4x8x8xf32> -> vector<4x8x8xf32>
    "tpu.trace_stop"() : () -> ()
    %cst_17 = arith.constant dense<0xFF800000> : vector<4x8xf32>
    %31 = vector.multi_reduction <maximumf>, %30, %cst_17 [2] : vector<4x8x8xf32> to vector<4x8xf32>
    %32 = vector.shape_cast %31 : vector<4x8xf32> to vector<4x8x1xf32>
    %33 = vector.broadcast %32 : vector<4x8x1xf32> to vector<4x8x8xf32>
    %34 = arith.subf %30, %33 : vector<4x8x8xf32>
    %35 = math.exp %34 : vector<4x8x8xf32>
    %cst_18 = arith.constant dense<0.000000e+00> : vector<4x8xf32>
    %36 = vector.multi_reduction <add>, %35, %cst_18 [2] : vector<4x8x8xf32> to vector<4x8xf32>
    %37 = vector.shape_cast %36 : vector<4x8xf32> to vector<4x8x1xf32>
    %38 = vector.broadcast %37 : vector<4x8x1xf32> to vector<4x8x8xf32>
    %39 = arith.divf %35, %38 : vector<4x8x8xf32>
    "tpu.trace_start"() <{level = 10 : i32, message = "bqk,bkd->bqd"}> : () -> ()
    %cst_19 = arith.constant dense<0.000000e+00> : vector<4x8x4xf32>
    %40 = tpu.matmul %39, %29, %cst_19 {dimension_numbers = #tpu.dot_dimension_numbers<[2], [1], [1], [2], [0, 0, 0, 1, 1, 2], [0], [0]>, precision = #tpu.contract_precision<fp32>} : vector<4x8x8xf32>, vector<4x8x4xf32>, vector<4x8x4xf32> -> vector<4x8x4xf32>
    "tpu.trace_stop"() : () -> ()
    %41 = vector.shape_cast %40 : vector<4x8x4xf32> to vector<32x4xf32>
    %c0_20 = arith.constant 0 : index
    %c4 = arith.constant 4 : index
    %42 = vector.load %arg11[%c0_20, %c4] : memref<32x16xf32, #tpu.memory_space<vmem>>, vector<32x4xf32>
    tpu.vector_store %arg11[%c0_20, %c4], %41 {strides = array<i32>} : memref<32x16xf32, #tpu.memory_space<vmem>>, vector<32x4xf32>,
    %43 = vector.extract_strided_slice %8 {offsets = [0, 0, 8], sizes = [4, 8, 4], strides = [1, 1, 1]} : vector<4x8x16xf32> to vector<4x8x4xf32>
    %44 = vector.extract_strided_slice %9 {offsets = [0, 0, 8], sizes = [4, 8, 4], strides = [1, 1, 1]} : vector<4x8x16xf32> to vector<4x8x4xf32>
    %45 = vector.extract_strided_slice %10 {offsets = [0, 0, 8], sizes = [4, 8, 4], strides = [1, 1, 1]} : vector<4x8x16xf32> to vector<4x8x4xf32>
    "tpu.trace_start"() <{level = 10 : i32, message = "bqd,bkd->bqk"}> : () -> ()
    %cst_21 = arith.constant dense<0.000000e+00> : vector<4x8x8xf32>
    %46 = tpu.matmul %43, %44, %cst_21 {dimension_numbers = #tpu.dot_dimension_numbers<[2], [2], [1], [1], [0, 0, 0, 1, 1, 1], [0], [0]>, precision = #tpu.contract_precision<fp32>} : vector<4x8x4xf32>, vector<4x8x4xf32>, vector<4x8x8xf32> -> vector<4x8x8xf32>
    "tpu.trace_stop"() : () -> ()
    %cst_22 = arith.constant dense<0xFF800000> : vector<4x8xf32>
    %47 = vector.multi_reduction <maximumf>, %46, %cst_22 [2] : vector<4x8x8xf32> to vector<4x8xf32>
    %48 = vector.shape_cast %47 : vector<4x8xf32> to vector<4x8x1xf32>
    %49 = vector.broadcast %48 : vector<4x8x1xf32> to vector<4x8x8xf32>
    %50 = arith.subf %46, %49 : vector<4x8x8xf32>
    %51 = math.exp %50 : vector<4x8x8xf32>
    %cst_23 = arith.constant dense<0.000000e+00> : vector<4x8xf32>
    %52 = vector.multi_reduction <add>, %51, %cst_23 [2] : vector<4x8x8xf32> to vector<4x8xf32>
    %53 = vector.shape_cast %52 : vector<4x8xf32> to vector<4x8x1xf32>
    %54 = vector.broadcast %53 : vector<4x8x1xf32> to vector<4x8x8xf32>
    %55 = arith.divf %51, %54 : vector<4x8x8xf32>
    "tpu.trace_start"() <{level = 10 : i32, message = "bqk,bkd->bqd"}> : () -> ()
    %cst_24 = arith.constant dense<0.000000e+00> : vector<4x8x4xf32>
    %56 = tpu.matmul %55, %45, %cst_24 {dimension_numbers = #tpu.dot_dimension_numbers<[2], [1], [1], [2], [0, 0, 0, 1, 1, 2], [0], [0]>, precision = #tpu.contract_precision<fp32>} : vector<4x8x8xf32>, vector<4x8x4xf32>, vector<4x8x4xf32> -> vector<4x8x4xf32>
    "tpu.trace_stop"() : () -> ()
    %57 = vector.shape_cast %56 : vector<4x8x4xf32> to vector<32x4xf32>
    %c0_25 = arith.constant 0 : index
    %c8 = arith.constant 8 : index
    %58 = vector.load %arg11[%c0_25, %c8] : memref<32x16xf32, #tpu.memory_space<vmem>>, vector<32x4xf32>
    tpu.vector_store %arg11[%c0_25, %c8], %57 {strides = array<i32>} : memref<32x16xf32, #tpu.memory_space<vmem>>, vector<32x4xf32>,
    %59 = vector.extract_strided_slice %8 {offsets = [0, 0, 12], sizes = [4, 8, 4], strides = [1, 1, 1]} : vector<4x8x16xf32> to vector<4x8x4xf32>
    %60 = vector.extract_strided_slice %9 {offsets = [0, 0, 12], sizes = [4, 8, 4], strides = [1, 1, 1]} : vector<4x8x16xf32> to vector<4x8x4xf32>
    %61 = vector.extract_strided_slice %10 {offsets = [0, 0, 12], sizes = [4, 8, 4], strides = [1, 1, 1]} : vector<4x8x16xf32> to vector<4x8x4xf32>
    "tpu.trace_start"() <{level = 10 : i32, message = "bqd,bkd->bqk"}> : () -> ()
    %cst_26 = arith.constant dense<0.000000e+00> : vector<4x8x8xf32>
    %62 = tpu.matmul %59, %60, %cst_26 {dimension_numbers = #tpu.dot_dimension_numbers<[2], [2], [1], [1], [0, 0, 0, 1, 1, 1], [0], [0]>, precision = #tpu.contract_precision<fp32>} : vector<4x8x4xf32>, vector<4x8x4xf32>, vector<4x8x8xf32> -> vector<4x8x8xf32>
    "tpu.trace_stop"() : () -> ()
    %cst_27 = arith.constant dense<0xFF800000> : vector<4x8xf32>
    %63 = vector.multi_reduction <maximumf>, %62, %cst_27 [2] : vector<4x8x8xf32> to vector<4x8xf32>
    %64 = vector.shape_cast %63 : vector<4x8xf32> to vector<4x8x1xf32>
    %65 = vector.broadcast %64 : vector<4x8x1xf32> to vector<4x8x8xf32>
    %66 = arith.subf %62, %65 : vector<4x8x8xf32>
    %67 = math.exp %66 : vector<4x8x8xf32>
    %cst_28 = arith.constant dense<0.000000e+00> : vector<4x8xf32>
    %68 = vector.multi_reduction <add>, %67, %cst_28 [2] : vector<4x8x8xf32> to vector<4x8xf32>
    %69 = vector.shape_cast %68 : vector<4x8xf32> to vector<4x8x1xf32>
    %70 = vector.broadcast %69 : vector<4x8x1xf32> to vector<4x8x8xf32>
    %71 = arith.divf %67, %70 : vector<4x8x8xf32>
    "tpu.trace_start"() <{level = 10 : i32, message = "bqk,bkd->bqd"}> : () -> ()
    %cst_29 = arith.constant dense<0.000000e+00> : vector<4x8x4xf32>
    %72 = tpu.matmul %71, %61, %cst_29 {dimension_numbers = #tpu.dot_dimension_numbers<[2], [1], [1], [2], [0, 0, 0, 1, 1, 2], [0], [0]>, precision = #tpu.contract_precision<fp32>} : vector<4x8x8xf32>, vector<4x8x4xf32>, vector<4x8x4xf32> -> vector<4x8x4xf32>
    "tpu.trace_stop"() : () -> ()
    %73 = vector.shape_cast %72 : vector<4x8x4xf32> to vector<32x4xf32>
    %c0_30 = arith.constant 0 : index
    %c12 = arith.constant 12 : index
    %74 = vector.load %arg11[%c0_30, %c12] : memref<32x16xf32, #tpu.memory_space<vmem>>, vector<32x4xf32>
    tpu.vector_store %arg11[%c0_30, %c12], %73 {strides = array<i32>} : memref<32x16xf32, #tpu.memory_space<vmem>>, vector<32x4xf32>,
    %c0_31 = arith.constant 0 : index
    %c0_32 = arith.constant 0 : index
    %75 = vector.load %arg11[%c0_31, %c0_32] : memref<32x16xf32, #tpu.memory_space<vmem>>, vector<32x16xf32>
    %c0_33 = arith.constant 0 : index
    %c0_34 = arith.constant 0 : index
    %76 = vector.load %arg5[%c0_33, %c0_34] : memref<16x16xf32, #tpu.memory_space<vmem>>, vector<16x16xf32>
    %cst_35 = arith.constant dense<0.000000e+00> : vector<32x16xf32>
    %77 = tpu.matmul %75, %76, %cst_35 {dimension_numbers = #tpu.dot_dimension_numbers<[1], [0], [0], [1], [0, 0, 1, 1], [], []>, precision = #tpu.contract_precision<fp32>} : vector<32x16xf32>, vector<16x16xf32>, vector<32x16xf32> -> vector<32x16xf32>
    %c0_36 = arith.constant 0 : index
    %c0_37 = arith.constant 0 : index
    %78 = vector.load %arg7[%c0_36, %c0_37] : memref<1x16xf32, #tpu.memory_space<vmem>>, vector<1x16xf32>
    %79 = vector.broadcast %78 : vector<1x16xf32> to vector<32x16xf32>
    %80 = arith.addf %77, %79 : vector<32x16xf32>
    %c0_38 = arith.constant 0 : index
    %c0_39 = arith.constant 0 : index
    %81 = vector.load %arg6[%c0_38, %c0_39] : memref<16x16xf32, #tpu.memory_space<vmem>>, vector<16x16xf32>
    %cst_40 = arith.constant dense<0.000000e+00> : vector<32x16xf32>
    %82 = tpu.matmul %75, %81, %cst_40 {dimension_numbers = #tpu.dot_dimension_numbers<[1], [0], [0], [1], [0, 0, 1, 1], [], []>, precision = #tpu.contract_precision<fp32>} : vector<32x16xf32>, vector<16x16xf32>, vector<32x16xf32> -> vector<32x16xf32>
    %c0_41 = arith.constant 0 : index
    %c0_42 = arith.constant 0 : index
    %83 = vector.load %arg8[%c0_41, %c0_42] : memref<1x16xf32, #tpu.memory_space<vmem>>, vector<1x16xf32>
    %84 = vector.broadcast %83 : vector<1x16xf32> to vector<32x16xf32>
    %85 = arith.addf %82, %84 : vector<32x16xf32>
    %cst_43 = arith.constant 0.000000e+00 : f32
    %86 = vector.broadcast %cst_43 : f32 to vector<32x16xf32>
    %87 = arith.maximumf %80, %86 : vector<32x16xf32>
    %88 = vector.shape_cast %87 : vector<32x16xf32> to vector<4x8x16xf32>
    %cst_44 = arith.constant 0.000000e+00 : f32
    %89 = vector.broadcast %cst_44 : f32 to vector<32x16xf32>
    %90 = arith.maximumf %85, %89 : vector<32x16xf32>
    %91 = vector.shape_cast %90 : vector<32x16xf32> to vector<4x8x16xf32>
    %92 = arith.mulf %88, %0 : vector<4x8x16xf32>
    %c0_45 = arith.constant 0 : index
    %c0_46 = arith.constant 0 : index
    %c0_47 = arith.constant 0 : index
    %93 = vector.load %arg9[%c0_45, %c0_46, %c0_47] : memref<4x8x16xf32, #tpu.memory_space<vmem>>, vector<4x8x16xf32>
    tpu.vector_store %arg9[%c0_45, %c0_46, %c0_47], %92 {strides = array<i32>} : memref<4x8x16xf32, #tpu.memory_space<vmem>>, vector<4x8x16xf32>,
    %94 = arith.mulf %91, %0 : vector<4x8x16xf32>
    %c0_48 = arith.constant 0 : index
    %c0_49 = arith.constant 0 : index
    %c0_50 = arith.constant 0 : index
    %95 = vector.load %arg10[%c0_48, %c0_49, %c0_50] : memref<4x8x16xf32, #tpu.memory_space<vmem>>, vector<4x8x16xf32>
    tpu.vector_store %arg10[%c0_48, %c0_49, %c0_50], %94 {strides = array<i32>} : memref<4x8x16xf32, #tpu.memory_space<vmem>>, vector<4x8x16xf32>,
    return
  }
  func.func @transform_0(%arg0: i32) -> (i32, i32, i32) {
    %c0_i32 = arith.constant 0 : i32
    %c0_i32_0 = arith.constant 0 : i32
    %c0_i32_1 = arith.constant 0 : i32
    return %arg0, %c0_i32, %c0_i32_0 : i32, i32, i32
  }
  func.func @transform_1(%arg0: i32) -> (i32, i32) {
    %c0_i32 = arith.constant 0 : i32
    %c0_i32_0 = arith.constant 0 : i32
    %c0_i32_1 = arith.constant 0 : i32
    return %c0_i32, %c0_i32_0 : i32, i32
  }
  func.func @transform_2(%arg0: i32) -> (i32, i32) {
    %c0_i32 = arith.constant 0 : i32
    %c0_i32_0 = arith.constant 0 : i32
    %c0_i32_1 = arith.constant 0 : i32
    return %c0_i32, %c0_i32_0 : i32, i32
  }
  func.func @transform_3(%arg0: i32) -> (i32, i32) {
    %c0_i32 = arith.constant 0 : i32
    %c0_i32_0 = arith.constant 0 : i32
    %c0_i32_1 = arith.constant 0 : i32
    return %c0_i32, %c0_i32_0 : i32, i32
  }
  func.func @transform_4(%arg0: i32) -> (i32, i32) {
    %c0_i32 = arith.constant 0 : i32
    %c0_i32_0 = arith.constant 0 : i32
    %c0_i32_1 = arith.constant 0 : i32
    return %c0_i32, %c0_i32_0 : i32, i32
  }
  func.func @transform_5(%arg0: i32) -> (i32, i32) {
    %c0_i32 = arith.constant 0 : i32
    %c0_i32_0 = arith.constant 0 : i32
    %c0_i32_1 = arith.constant 0 : i32
    return %c0_i32, %c0_i32_0 : i32, i32
  }
  func.func @transform_6(%arg0: i32) -> (i32, i32) {
    %c0_i32 = arith.constant 0 : i32
    %c0_i32_0 = arith.constant 0 : i32
    %c0_i32_1 = arith.constant 0 : i32
    return %c0_i32, %c0_i32_0 : i32, i32
  }
  func.func @transform_7(%arg0: i32) -> (i32, i32) {
    %c0_i32 = arith.constant 0 : i32
    %c0_i32_0 = arith.constant 0 : i32
    %c0_i32_1 = arith.constant 0 : i32
    return %c0_i32, %c0_i32_0 : i32, i32
  }
  func.func @transform_8(%arg0: i32) -> (i32, i32, i32) {
    %c0_i32 = arith.constant 0 : i32
    %c0_i32_0 = arith.constant 0 : i32
    %c0_i32_1 = arith.constant 0 : i32
    return %arg0, %c0_i32, %c0_i32_0 : i32, i32, i32
  }
  func.func @transform_9(%arg0: i32) -> (i32, i32, i32) {
    %c0_i32 = arith.constant 0 : i32
    %c0_i32_0 = arith.constant 0 : i32
    %c0_i32_1 = arith.constant 0 : i32
    return %arg0, %c0_i32, %c0_i32_0 : i32, i32, i32
  }
}

</mosaic_0001>

<bundles_post_ra>
// kernel: tpu_custom_call.1
= control target key start
LH: loop header
LB: loop body
LE: loop exit
PB: predicated region body
PF: predicated region fallthrough
CT: control target
= control target key end

     0   :  { %s23030_s0 = inlined_call_operand.hbm [shape: f32[8,8,16], index: 0, kind: input, shape index: {}]   ;;  %s23031_s1 = inlined_call_operand.hbm [shape: f32[16,16], index: 1, kind: input, shape index: {}]   ;;  %s23032_s2 = inlined_call_operand.hbm [shape: f32[16,16], index: 2, kind: input, shape index: {}]   ;;  %s23033_s3 = inlined_call_operand.hbm [shape: f32[16,16], index: 3, kind: input, shape index: {}]   ;;  %s23034_s4 = inlined_call_operand.hbm [shape: f32[16,16], index: 4, kind: input, shape index: {}]   ;;  %s23035_s5 = inlined_call_operand.vmem [shape: f32[16,16], index: 5, kind: input, shape index: {}]   ;;  %s23036_s6 = inlined_call_operand.vmem [shape: f32[1,16], index: 6, kind: input, shape index: {}]   ;;  %s23037_s7 = inlined_call_operand.vmem [shape: f32[1,16], index: 7, kind: input, shape index: {}]   ;;  %s23038_s8 = inlined_call_operand.hbm [shape: f32[8,8,16], index: 8, kind: output, shape index: {0}]   ;;  %s23039_s9 = inlined_call_operand.hbm [shape: f32[8,8,16], index: 9, kind: output, shape index: {1}]  }
   0x1   :  { %23048 = sst [smem:[#allocation22_spill]] %s23039_s9 }
   0x2   :  { %15 = vsyncpa [#allocation4], 0 }
   0x3   :  { %17 = vsyncpa [#allocation4 + $0x1], 0 }
   0x4   :  { %18 = vsyncpa [#allocation7], 0 }
   0x5   :  { %19 = vsyncpa [#allocation10], 0 }
   0x6   :  { %20 = vsyncpa [#allocation5], 0 }
   0x7   :  { %22 = vsyncpa [#allocation5 + $0x1], 0 }
   0x8   :  { %23 = vsyncpa [#allocation14], 0 }
   0x9   :  { %25 = vsyncpa [#allocation14 + $0x1], 0  ;;  %s21239_s30 = smov 0   ;;  %s21241_s10 = smov 0  }
   0xa   :  { %s21243_s11 = smov 0   ;;  %s21245_s12 = smov 0  }
   0xb LB: > { %23049 = sst [smem:[#allocation20_spill]] %s21157_s30  ;;  %s21260_s13 = sadd.s32 4294967295, %s21169_s12   ;;  %s21169_s12 = sphi %s21245_s12, %s23074_s12   ;;  %s21165_s11 = sphi %s21243_s11, %s23073_s11   ;;  %s21161_s10 = sphi %s21241_s10, %s23072_s10   ;;  %s21157_s30 = sphi %s21239_s30, %s23071_s30  }
   0xc   : > { %s18347_s14 = sadd.s32 4294967294, %s21169_s12   ;;  %p51_p0 = scmp.ne.s32.totalorder %s21161_s10, %s21157_s30 }
   0xd   : > { %p23040_p1 = scmp.eq.s32.totalorder %s21260_s13, 0  ;;  %p228_p3 = scmp.eq.s32.totalorder %s18347_s14, 1 }
   0xe   : > { %p18348_p5 = scmp.ge.s32.totalorder %s21169_s12, 1  ;;  %p261_p7 = scmp.lt.s32.totalorder %s21169_s12, 3 }
   0xf   : > { %p21269_p4 = por %p23040_p1, %p51_p0  ;;  %p21274_p6 = por %p228_p3, %p51_p0 }
  0x10   : > { %p21279_p8 = pnand %p18348_p5, %p261_p7  ;;  %s21171_s18 = smov [#allocation6]  }
  0x11   : > { %s23050_s15 = scalar_select %p21269_p4, 1, 0 }
  0x12   : > { %s23051_s16 = scalar_select %p21274_p6, 1, 0 }
  0x13   : > { %s23053_s17 = scalar_select %p21279_p8, 1, 0 }
  0x14   : > { %23052 = sst [smem:[#allocation21_spill]] %s23051_s16  ;;  %s273_s19 = sshll.u32 %s21171_s18, 4  ;;  %s21283_s19 = int_to_ptr.vmem [resolvable:$true] %s273_s19 }
  0x15   : > { %p20772_p9 = pneg %p21279_p8  ;;  %s21172_s21 = smov [#allocation9]  }
  0x16   : > { %s299_s22 = sshll.u32 %s21172_s21, 4  ;;  %s21173_s23 = smov [#allocation8]   ;;  %s21294_s22 = int_to_ptr.vmem [resolvable:$true] %s299_s22 }
  0x17   : > { %p21290_p11 = pnand %p20772_p9, %p23040_p1  ;;  %s21296_s24 = sshll.u32 %s21173_s23, 4  ;;  %s287_s24 = int_to_ptr.vmem [resolvable:$true] %s21296_s24 }
  0x18   : > { %s20921_s27 = scalar_lea.hbm %s23031_s1, 256 }
  0x19   : > { %p20922_p12 = scmp.ne.s32.totalorder %s23031_s1, %s20921_s27  ;;  %p21306_p13 = pneg %p21290_p11 }
  0x1a   : > { %p20928_p5 = scmp.lt.u32.totalorder %s20921_s27, %s23031_s1 }
  0x1b   : > { %p20924_p0 = pnand %p21306_p13, %p20922_p12 }
  0x1d   : > { %p20925_p3 = pneg %p20924_p0 }
  0x1f   : > { %p20930_p7 = pnand %p20928_p5, %p20925_p3 }
  0x21   : > { %20933 = shalt.err (!%p20930_p7)
}
  0x22   : > { %s20934_s23 = scalar_lea.vmem %s21283_s19, 256  ;;  %p20942_p2 = scmp.lt.s32.totalorder %s21283_s19, %s21283_s19 }
  0x23   : > { %p20935_p9 = scmp.ne.s32.totalorder %s21283_s19, %s20934_s23  ;;  %p20943_p6 = scmp.lt.s32.totalorder %s20934_s23, %s20934_s23 }
  0x25   : > { %p20937_p10 = pnand %p20935_p9, %p21306_p13  ;;  %p20944_p12 = por %p20943_p6, %p20942_p2 }
  0x27   : > { %p20938_p1 = pneg %p20937_p10 }
  0x29   : > { %p20945_p0 = pnand %p20944_p12, %p20938_p1 }
  0x2b   : > { %20948 = shalt.err (!%p20945_p0)
}
  0x2c   : > { %s21174_s25 = smov 128   ;;  %s21175_s26 = smov 8  }
  0x2d   : > { %20775 = dma.hbm_to_vmem [thread:$0]  (!%p21290_p11), %s23031_s1, 256, %s21283_s19, [#allocation7], %s21174_s25, %s21174_s25, %s21175_s26  }
  0x2e   : > { %s20949_s21 = scalar_lea.hbm %s23033_s3, 256 }
  0x2f   : > { %p20950_p1 = scmp.ne.s32.totalorder %s23033_s3, %s20949_s21  ;;  %p20956_p10 = scmp.lt.u32.totalorder %s20949_s21, %s23033_s3 }
  0x31   : > { %p20952_p2 = pnand %p20950_p1, %p21306_p13 }
  0x33   : > { %p20953_p6 = pneg %p20952_p2 }
  0x35   : > { %p20958_p3 = pnand %p20956_p10, %p20953_p6 }
  0x37   : > { %20961 = shalt.err (!%p20958_p3)
}
  0x38   : > { %s20962_s19 = scalar_lea.vmem %s21294_s22, 256  ;;  %p20970_p12 = scmp.lt.s32.totalorder %s21294_s22, %s21294_s22 }
  0x39   : > { %p20963_p5 = scmp.ne.s32.totalorder %s21294_s22, %s20962_s19  ;;  %p20971_p0 = scmp.lt.s32.totalorder %s20962_s19, %s20962_s19 }
  0x3b   : > { %p20965_p7 = pnand %p20963_p5, %p21306_p13  ;;  %p20972_p1 = por %p20971_p0, %p20970_p12 }
  0x3d   : > { %p20966_p9 = pneg %p20965_p7 }
  0x3f   : > { %p20973_p2 = pnand %p20972_p1, %p20966_p9 }
  0x41   : > { %20976 = shalt.err (!%p20973_p2)
}
  0x42   : > { %20781 = dma.hbm_to_vmem [thread:$0]  (!%p21290_p11), %s23033_s3, 256, %s21294_s22, [#allocation10], %s21174_s25, %s21174_s25, %s21175_s26  }
  0x43   : > { %s20977_s28 = scalar_lea.hbm %s23032_s2, 256 }
  0x44   : > { %p20978_p6 = scmp.ne.s32.totalorder %s23032_s2, %s20977_s28  ;;  %p20984_p5 = scmp.lt.u32.totalorder %s20977_s28, %s23032_s2 }
  0x46   : > { %p20980_p10 = pnand %p20978_p6, %p21306_p13 }
  0x48   : > { %p20981_p3 = pneg %p20980_p10 }
  0x4a   : > { %p20986_p7 = pnand %p20984_p5, %p20981_p3 }
  0x4c   : > { %20989 = shalt.err (!%p20986_p7)
}
  0x4d   : > { %s20990_s19 = scalar_lea.vmem %s287_s24, 256  ;;  %p20998_p1 = scmp.lt.s32.totalorder %s287_s24, %s287_s24 }
  0x4e   : > { %p20991_p9 = scmp.ne.s32.totalorder %s287_s24, %s20990_s19  ;;  %p20999_p2 = scmp.lt.s32.totalorder %s20990_s19, %s20990_s19 }
  0x50   : > { %p20993_p12 = pnand %p20991_p9, %p21306_p13  ;;  %p21000_p4 = por %p20999_p2, %p20998_p1 }
  0x52   : > { %p20994_p0 = pneg %p20993_p12 }
  0x54   : > { %p21001_p8 = pnand %p21000_p4, %p20994_p0 }
  0x56   : > { %21004 = shalt.err (!%p21001_p8)
}
  0x57   : > { %20778 = dma.hbm_to_vmem [thread:$0]  (!%p21290_p11), %s23032_s2, 256, %s287_s24, [#allocation7], %s21174_s25, %s21174_s25, %s21175_s26  }
  0x58   : > { %s21176_s30 = smov [#allocation11]   ;;  %s21005_s29 = scalar_lea.hbm %s23034_s4, 256 }
  0x59   : > { %s312_s16 = sshll.u32 %s21176_s30, 4  ;;  %p21006_p4 = scmp.ne.s32.totalorder %s23034_s4, %s21005_s29  ;;  %s313_s16 = int_to_ptr.vmem [resolvable:$true] %s312_s16 }
  0x5a   : > { %p21012_p10 = scmp.lt.u32.totalorder %s21005_s29, %s23034_s4 }
  0x5b   : > { %p21008_p8 = pnand %p21006_p4, %p21306_p13 }
  0x5d   : > { %p21009_p6 = pneg %p21008_p8 }
  0x5f   : > { %p21014_p3 = pnand %p21012_p10, %p21009_p6 }
  0x61   : > { %21017 = shalt.err (!%p21014_p3)
}
  0x62   : > { %s21018_s24 = scalar_lea.vmem %s313_s16, 256  ;;  %p21026_p12 = scmp.lt.s32.totalorder %s313_s16, %s313_s16 }
  0x63   : > { %p21019_p5 = scmp.ne.s32.totalorder %s313_s16, %s21018_s24  ;;  %p21027_p0 = scmp.lt.s32.totalorder %s21018_s24, %s21018_s24 }
  0x65   : > { %p21021_p7 = pnand %p21019_p5, %p21306_p13  ;;  %p21028_p1 = por %p21027_p0, %p21026_p12 }
  0x67   : > { %p21022_p9 = pneg %p21021_p7 }
  0x69   : > { %p21029_p2 = pnand %p21028_p1, %p21022_p9 }
  0x6b   : > { %21032 = shalt.err (!%p21029_p2)
}
  0x6c   : > { %20784 = dma.hbm_to_vmem [thread:$0]  (!%p21290_p11), %s23034_s4, 256, %s313_s16, [#allocation10], %s21174_s25, %s21174_s25, %s21175_s26  }
  0x6d   : > { %s21400_s14 = sadd.s32 1, %s21169_s12   ;;  %s38_s20 = sadd.s32 1, %s21165_s11 }
  0x6e   : > { %s35_s30 = ssub.s32 %s21169_s12, %s21400_s14  ;;  %p45_p13 = scmp.ne.s32.totalorder %s21165_s11, %s21161_s10 }
  0x6f   : > { %p36_p4 = scmp.eq.s32.totalorder %s35_s30, 0  ;;  %p46_p8 = scmp.eq.s32.totalorder %s21169_s12, 0 }
  0x70   : > { %p23056_p6 = scmp.eq.s32.totalorder %s21260_s13, 1  ;;  %p20800_p3 = scmp.lt.s32.totalorder %s21169_s12, 2 }
  0x71   : > { %s21416_s28 = scalar_select %p36_p4, %s21165_s11, %s38_s20  }
  0x72   : > { %p21410_p10 = por %p23056_p6, %p45_p13  ;;  %p47_p5 = por %p46_p8, %p45_p13 }
  0x73   : > { %s335_s29 = sand.u32 1, %s21165_s11   ;;  %s18375_s16 = sshll.u32 %s21169_s12, 9 }
  0x74   : > { %s18354_s18 = sshll.u32 %s335_s29, 5  ;;  %s21423_s19 = scalar_lea.hbm %s23030_s0, %s18375_s16 }
  0x75   : > { %s339_s24 = scalar_lea.vmem [#allocation3], %s18354_s18  ;;  %p21427_p11 = pnand %p20800_p3, %p47_p5 }
  0x76   : > { %s346_s22 = sshll.u32 %s339_s24, 4  ;;  %s21431_s20 = scalar_lea.sflag [#allocation4], %s335_s29  ;;  %s21425_s22 = int_to_ptr.vmem [resolvable:$true] %s346_s22 }
  0x77   : > { %s21033_s30 = scalar_lea.hbm %s21423_s19, 512  ;;  %p21035_p9 = pneg %p21427_p11 }
  0x78   : > { %p21034_p7 = scmp.ne.s32.totalorder %s21423_s19, %s21033_s30  ;;  %s21038_s21 = scalar_lea.hbm %s23030_s0, 1024 }
  0x79   : > { %p21039_p1 = scmp.lt.u32.totalorder %s21423_s19, %s23030_s0  ;;  %p21040_p2 = scmp.lt.u32.totalorder %s21038_s21, %s21033_s30 }
  0x7a   : > { %p21036_p12 = pnand %p21035_p9, %p21034_p7  ;;  %p21042_p4 = scmp.lt.u32.totalorder %s21033_s30, %s21423_s19 }
  0x7b   : > { %p21041_p13 = por %p21040_p2, %p21039_p1 }
  0x7c   : > { %p21037_p0 = pneg %p21036_p12 }
  0x7d   : > { %p21043_p8 = por %p21042_p4, %p21041_p13 }
  0x7f   : > { %p21044_p6 = pnand %p21043_p8, %p21037_p0 }
  0x81   : > { %21047 = shalt.err (!%p21044_p6)
}
  0x82   : > { %s21048_s29 = scalar_lea.vmem %s21425_s22, 512  ;;  %s21177_s18 = smov [#allocation3]  }
  0x83   : > { %p21049_p3 = scmp.ne.s32.totalorder %s21425_s22, %s21048_s29  ;;  %s21053_s16 = sshll.u32 %s21177_s18, 4  ;;  %s21054_s16 = int_to_ptr.vmem [resolvable:$false] %s21053_s16 }
  0x84   : > { %s21055_s23 = scalar_lea.vmem %s21054_s16, 1024  ;;  %p21056_p12 = scmp.lt.s32.totalorder %s21425_s22, %s21054_s16 }
  0x85   : > { %p21051_p5 = pnand %p21049_p3, %p21035_p9  ;;  %p21057_p1 = scmp.lt.s32.totalorder %s21055_s23, %s21048_s29 }
  0x87   : > { %p21052_p7 = pneg %p21051_p5  ;;  %p21058_p2 = por %p21057_p1, %p21056_p12 }
  0x89   : > { %p21059_p13 = pnand %p21058_p2, %p21052_p7 }
  0x8b   : > { %21062 = shalt.err (!%p21059_p13)
}
  0x8c   : > { %20788 = dma.hbm_to_vmem [thread:$0]  (!%p21427_p11), %s21423_s19, 512, %s21425_s22, %s21431_s20, %s21174_s25, %s21174_s25, %s21175_s26  }
  0x8d   : > { %p23059_p9 = scmp.ne.s32.totalorder %s23053_s17, 0 }
  0x8e   : > { %s21465_s30 = sand.u32 (!%p23059_p9), 1, %s21161_s10   ;;  %p23060_p0 = scmp.ne.s32.totalorder (!%p23059_p9), %s23050_s15, 0 }
  0x8f   : > { %358 = sbr.rel (%p23059_p9) target bundleno = 3809 (0xee1), region = 52  ;;  %s21468_s21 = sshll.u32 (!%p23059_p9), %s21465_s30, 5 }
  0x90   : > { %s361_s9 = scalar_lea.sflag (!%p23059_p9), [#allocation4], %s21465_s30  ;;  %s21472_s24 = scalar_lea.vmem (!%p23059_p9), [#allocation3], %s21468_s21 }
  0x96   : > { %21136 = dma.done.wait (%p23060_p0), %s361_s9, 512  }
  0x97   : > { %21138 = vsyncadd (%p23060_p0), %s361_s9, 4294966784  ;;  %p23061_p11 = scmp.eq.s32.totalorder %s21260_s13, 0 }
  0x99   : > { %21140 = dma.done.wait (%p23061_p11), [#allocation7], 512   ;;  %p23062_p4 = pmov %p23061_p11 }
  0x9b   : > { %21142 = vsyncadd (%p23062_p4), [#allocation7], 4294966784  ;;  %p23063_p8 = pmov %p23062_p4 }
  0x9c   : > { %p23064_p6 = pmov %p23062_p4 }
  0x9d   : > { %21144 = dma.done.wait (%p23063_p8), [#allocation10], 512  }
  0x9e   : > { %21146 = vsyncadd (%p23064_p6), [#allocation10], 4294966784  ;;  %vm429_vm0 = vcmask 130048   ;;  %v427_v0 = vld [vmem:[#allocation6] sm:$0xff]  ;;  %v428_v1 = vld [vmem:[#allocation6 + $0x8] sm:$0xff]  ;;  %vm21179_vm1 = vmmov 0  }
  0x9f   : > { %v1030_v2 = vld [vmem:[#allocation8] sm:$0xff]  ;;  %v443_v3 = vand.u32 4294901760, %v427_v0  ;;  %v446_v4 = vand.u32 4294901760, %v428_v1  ;;  %v1031_v5 = vld [vmem:[#allocation8 + $0x8] sm:$0xff]  ;;  %v423_v7 = vld [vmem:[%s21472_s24] sm:$0xff]  ;;  %vm2210_vm2 = vcmask 31744  }
  0xa0   : > { %v1033_v6 = vand.u32 4294901760, %v1030_v2  ;;  %v424_v8 = vld [vmem:[%s21472_s24 + $0x8] sm:$0xff]  ;;  %v1036_v9 = vand.u32 4294901760, %v1031_v5  ;;  %v431_v10 = vsel %vm429_vm0, %v423_v7, 0  ;;  %v425_v12 = vld [vmem:[%s21472_s24 + $0x10] sm:$0xff]  ;;  %v426_v13 = vld [vmem:[%s21472_s24 + $0x18] sm:$0xff] }
  0xa1   : > { %v434_v11 = vsel %vm429_vm0, %v424_v8, 0  ;;  %v21492_v14 = vpack.c.bf16 %v446_v4, %v443_v3  ;;  %v21494_v15 = vand.u32 4294901760, %v431_v10  ;;  %v21498_v17 = vsub.f32 %v427_v0, %v443_v3  ;;  %v1620_v60 = vld [vmem:[#allocation9] sm:$0xff]  ;;  %v1621_v61 = vld [vmem:[#allocation9 + $0x8] sm:$0xff]  ;;  %s21180_s15 = smov 124   ;;  %s21181_s17 = smov 120  }
  0xa2   : > { %v21496_v16 = vand.u32 4294901760, %v434_v11  ;;  %v21500_v18 = vpack.c.bf16 %v1036_v9, %v1033_v6  ;;  %v21502_v19 = vsub.f32 %v428_v1, %v446_v4  ;;  %v437_v20 = vsel %vm429_vm0, %v425_v12, 0  ;;  %s21182_s25 = smov 116   ;;  %s23046_s26 = smov 8  }
  0xa3   : > { %v440_v21 = vsel %vm429_vm0, %v426_v13, 0  ;;  %20203 = vmatprep.subr.bf16.mxu0 %v21492_v14  ;;  %v21508_v22 = vsub.f32 %v431_v10, %v21494_v15  ;;  %v552_v24 = vand.u32 4294901760, %v21498_v17  ;;  %v21514_v25 = vand.u32 4294901760, %v437_v20  ;;  %s21184_s19 = smov 4   ;;  %s21185_s22 = smov 12  }
  0xa4   : > { %v21511_v23 = vsub.f32 %v434_v11, %v21496_v16  ;;  %20227 = vmatprep.subr.bf16.mxu1 %v21500_v18  ;;  %20205 = vmatpush3.bf16.msra.mxu0 %v21492_v14  ;;  %v559_v26 = vand.u32 4294901760, %v21502_v19  ;;  %v21519_v27 = vand.u32 4294901760, %v440_v21  ;;  %v1141_v28 = vsub.f32 %v1030_v2, %v1033_v6  ;;  %s18376_s29 = sshll.u32 %s21260_s13, 9  ;;  %s23065_s9 = sld [smem:[#allocation22_spill]] }
  0xa5   : > { %v1148_v29 = vsub.f32 %v1031_v5, %v1036_v9  ;;  %20229 = vmatpush3.bf16.msra.mxu1 %v21500_v18  ;;  %v21523_v30 = vand.u32 4294901760, %v21508_v22  ;;  %v553_v32 = vsub.f32 %v21498_v17, %v552_v24  ;;  %v21532_v33 = vsub.f32 %v437_v20, %v21514_v25  ;;  %s22945_s18 = scalar_lea.hbm %s23038_s8, %s18376_s29  ;;  %s21186_s13 = smov [#allocation12]  }
  0xa6   : > { %v21526_v31 = vand.u32 4294901760, %v21511_v23  ;;  %v560_v34 = vsub.f32 %v21502_v19, %v559_v26  ;;  %v21536_v35 = vsub.f32 %v440_v21, %v21519_v27  ;;  %v1142_v36 = vand.u32 4294901760, %v1141_v28 }
  0xa7   : > { %v1149_v37 = vand.u32 4294901760, %v1148_v29  ;;  %v512_v38 = vsub.f32 %v21508_v22, %v21523_v30  ;;  %v554_v40 = vand.u32 4294901760, %v553_v32  ;;  %v21543_v41 = vand.u32 4294901760, %v21532_v33 }
  0xa8   : > { %v522_v39 = vsub.f32 %v21511_v23, %v21526_v31  ;;  %v561_v42 = vand.u32 4294901760, %v560_v34  ;;  %v21546_v43 = vand.u32 4294901760, %v21536_v35  ;;  %v1143_v44 = vsub.f32 %v1141_v28, %v1142_v36 }
  0xa9   : > { %v1150_v45 = vsub.f32 %v1148_v29, %v1149_v37  ;;  %v21548_v46 = vand.u32 4294901760, %v512_v38  ;;  %v532_v48 = vsub.f32 %v21532_v33, %v21543_v41  ;;  %v20210_v54 = vpack.c.bf16 %v21502_v19, %v21498_v17 }
  0xaa   : > { %v21550_v47 = vand.u32 4294901760, %v522_v39  ;;  %v20206_v49 = vpack.c.bf16 %v561_v42, %v554_v40  ;;  %v542_v50 = vsub.f32 %v21536_v35, %v21546_v43  ;;  %v1144_v51 = vand.u32 4294901760, %v1143_v44 }
  0xab   : > { %v1151_v52 = vand.u32 4294901760, %v1150_v45  ;;  %18946 = vmatprep.mubr.f32.mxu0 %v21548_v46  ;;  %19006 = vmatprep.mubr.f32.mxu1 %v21548_v46  ;;  %v21558_v53 = vand.u32 4294901760, %v532_v48  ;;  %v20234_v57 = vpack.c.bf16 %v1148_v29, %v1141_v28  ;;  %v20218_v58 = vpack.c.bf16 %v559_v26, %v552_v24 }
  0xac   : > { %18947 = vmatmul.mubr.f32.vlgmr.msra.gmra.mrb[0].mxu0 %v21550_v47  ;;  %20207 = vmatprep.subr.bf16.mxu0 %v20206_v49  ;;  %v21563_v55 = vand.u32 4294901760, %v542_v50  ;;  %v20242_v59 = vpack.c.bf16 %v1149_v37, %v1142_v36  ;;  %v1623_v62 = vand.u32 4294901760, %v1620_v60  ;;  %v1626_v63 = vand.u32 4294901760, %v1621_v61 }
  0xad   : > { %v20230_v56 = vpack.c.bf16 %v1151_v52, %v1144_v51  ;;  %19007 = vmatmul.mubr.f32.vlgmr.msra.gmra.mrb[0].mxu1 %v21550_v47  ;;  %20209 = vmatpush3.bf16.msra.mxu0 %v20206_v49  ;;  %v21178_v12 = vmov 0.0   ;;  %vm4019_vm3 = vcmask 64512   ;;  %vm9552_vm4 = vcmask 64544  }
  0xae   : > { %18949 = vmatprep.mubr.f32.mxu0 %v21558_v53  ;;  %19009 = vmatprep.mubr.f32.mxu1 %v21558_v53  ;;  %v1731_v0 = vsub.f32 %v1620_v60, %v1623_v62  ;;  %v1738_v1 = vsub.f32 %v1621_v61, %v1626_v63  ;;  %v20250_v4 = vpack.c.bf16 %v1626_v63, %v1623_v62  ;;  %vm13241_vm5 = vcmask 97344  }
  0xaf   : > { %20231 = vmatprep.subr.bf16.mxu1 %v20230_v56  ;;  %20211 = vmatprep.subr.bf16.mxu0 %v20210_v54  ;;  %vm16930_vm6 = vcmask 130144  }
  0xb0   : > { %18950 = vmatmul.mubr.f32.gmra.mrb[2].mxu0 %v21563_v55  ;;  %20233 = vmatpush3.bf16.msra.mxu1 %v20230_v56  ;;  %v1732_v2 = vand.u32 4294901760, %v1731_v0  ;;  %v1739_v3 = vand.u32 4294901760, %v1738_v1  ;;  %v20258_v10 = vpack.c.bf16 %v1738_v1, %v1731_v0 }
  0xb1   : > { %19010 = vmatmul.mubr.f32.gmra.mrb[2].mxu1 %v21563_v55  ;;  %18956 = vmatprep.mubr.f32.mxu0 %v21494_v15 }
  0xb2   : > { %19016 = vmatprep.mubr.f32.mxu1 %v21494_v15  ;;  %20235 = vmatprep.subr.bf16.mxu1 %v20234_v57  ;;  %v1733_v5 = vsub.f32 %v1731_v0, %v1732_v2  ;;  %v1740_v6 = vsub.f32 %v1738_v1, %v1739_v3  ;;  %v20266_v11 = vpack.c.bf16 %v1739_v3, %v1732_v2 }
  0xb4   : > { %18957 = vmatmul.mubr.f32.vlgmr.msra.gmra.mrb[0].mxu0 %v21496_v16  ;;  %v1734_v7 = vand.u32 4294901760, %v1733_v5  ;;  %v1741_v8 = vand.u32 4294901760, %v1740_v6 }
  0xb5   : > { %19017 = vmatmul.mubr.f32.vlgmr.msra.gmra.mrb[0].mxu1 %v21496_v16  ;;  %20213 = vmatpush3.bf16.msra.mxu0 %v20210_v54 }
  0xb6   : > { %18959 = vmatprep.mubr.f32.mxu0 %v21514_v25  ;;  %19019 = vmatprep.mubr.f32.mxu1 %v21514_v25  ;;  %v20254_v9 = vpack.c.bf16 %v1741_v8, %v1734_v7 }
  0xb7   : > { %20237 = vmatpush3.bf16.msra.mxu1 %v20234_v57  ;;  %20215 = vmatprep.subr.bf16.mxu0 %v21492_v14 }
  0xb8   : > { %18960 = vmatmul.mubr.f32.gmra.mrb[2].mxu0 %v21519_v27  ;;  %20239 = vmatprep.subr.bf16.mxu1 %v21500_v18 }
  0xb9   : > { %19020 = vmatmul.mubr.f32.gmra.mrb[2].mxu1 %v21519_v27  ;;  %18966 = vmatprep.mubr.f32.mxu0 %v21508_v22 }
  0xba   : > { %19026 = vmatprep.mubr.f32.mxu1 %v21508_v22 }
  0xbc   : > { %18967 = vmatmul.mubr.f32.vlgmr.msra.gmra.mrb[0].mxu0 %v21511_v23 }
  0xbd   : > { %19027 = vmatmul.mubr.f32.vlgmr.msra.gmra.mrb[0].mxu1 %v21511_v23  ;;  %20217 = vmatpush3.bf16.msra.mxu0 %v21492_v14 }
  0xbe   : > { %18969 = vmatprep.mubr.f32.mxu0 %v21532_v33  ;;  %19029 = vmatprep.mubr.f32.mxu1 %v21532_v33 }
  0xbf   : > { %20241 = vmatpush3.bf16.msra.mxu1 %v21500_v18  ;;  %20219 = vmatprep.subr.bf16.mxu0 %v20218_v58 }
  0xc0   : > { %18970 = vmatmul.mubr.f32.gmra.mrb[2].mxu0 %v21536_v35  ;;  %20243 = vmatprep.subr.bf16.mxu1 %v20242_v59 }
  0xc1   : > { %19030 = vmatmul.mubr.f32.gmra.mrb[2].mxu1 %v21536_v35  ;;  %18976 = vmatprep.mubr.f32.mxu0 %v21523_v30 }
  0xc2   : > { %19036 = vmatprep.mubr.f32.mxu1 %v21523_v30 }
  0xc4   : > { %18977 = vmatmul.mubr.f32.vlgmr.msra.gmra.mrb[0].mxu0 %v21526_v31 }
  0xc5   : > { %19037 = vmatmul.mubr.f32.vlgmr.msra.gmra.mrb[0].mxu1 %v21526_v31  ;;  %20221 = vmatpush3.bf16.msra.mxu0 %v20218_v58 }
  0xc6   : > { %18979 = vmatprep.mubr.f32.mxu0 %v21543_v41  ;;  %19039 = vmatprep.mubr.f32.mxu1 %v21543_v41 }
  0xc7   : > { %20245 = vmatpush3.bf16.msra.mxu1 %v20242_v59  ;;  %20223 = vmatprep.subr.bf16.mxu0 %v21492_v14 }
  0xc8   : > { %18980 = vmatmul.mubr.f32.gmra.mrb[2].mxu0 %v21546_v43  ;;  %20247 = vmatprep.subr.bf16.mxu1 %v21500_v18 }
  0xc9   : > { %19040 = vmatmul.mubr.f32.gmra.mrb[2].mxu1 %v21546_v43  ;;  %18986 = vmatprep.mubr.f32.mxu0 %v21494_v15 }
  0xca   : > { %19046 = vmatprep.mubr.f32.mxu1 %v21494_v15 }
  0xcc   : > { %18987 = vmatmul.mubr.f32.vlgmr.msra.gmra.mrb[0].mxu0 %v21496_v16 }
  0xcd   : > { %19047 = vmatmul.mubr.f32.vlgmr.msra.gmra.mrb[0].mxu1 %v21496_v16  ;;  %20225 = vmatpush3.bf16.msra.mxu0 %v21492_v14 }
  0xce   : > { %18989 = vmatprep.mubr.f32.mxu0 %v21514_v25  ;;  %19049 = vmatprep.mubr.f32.mxu1 %v21514_v25 }
  0xcf   : > { %20249 = vmatpush3.bf16.msra.mxu1 %v21500_v18  ;;  %20251 = vmatprep.subr.bf16.mxu0 %v20250_v4 }
  0xd0   : > { %18990 = vmatmul.mubr.f32.gmra.mrb[2].mxu0 %v21519_v27  ;;  %19122 = vmatprep.subr.mxu1 %v21178_v12 }
  0xd1   : > { %19050 = vmatmul.mubr.f32.gmra.mrb[2].mxu1 %v21519_v27  ;;  %18996 = vmatprep.mubr.f32.mxu0 %v21494_v15 }
  0xd2   : > { %19056 = vmatprep.mubr.f32.mxu1 %v21494_v15 }
  0xd4   : > { %18997 = vmatmul.mubr.f32.vlgmr.msra.gmra.mrb[0].mxu0 %v21496_v16 }
  0xd5   : > { %19057 = vmatmul.mubr.f32.vlgmr.msra.gmra.mrb[0].mxu1 %v21496_v16  ;;  %18999 = vmatprep.mubr.f32.mxu0 %v21514_v25 }
  0xd6   : > { %19059 = vmatprep.mubr.f32.mxu1 %v21514_v25  ;;  %20253 = vmatpush3.bf16.msra.mxu0 %v20250_v4 }
  0xd7   : > { %20255 = vmatprep.subr.bf16.mxu0 %v20254_v9 }
  0xd8   : > { %19000 = vmatmul.mubr.f32.gmra.mrb[2].mxu0 %v21519_v27 }
  0xd9   : > { %19060 = vmatmul.mubr.f32.gmra.mrb[2].mxu1 %v21519_v27  ;;  %19066 = vmatprep.mubr.f32.mxu0 %v21548_v46 }
  0xda   : > { %19124 = vmatprep.mubr.msk.f32.mxu1 %vm21179_vm1, %v21178_v12 }
  0xdc   : > { %19067 = vmatmul.mubr.f32.vlgmr.msra.gmra.mrb[4].mxu0 %v21550_v47 }
  0xdd   : > { %19069 = vmatprep.mubr.f32.mxu0 %v21558_v53  ;;  %20257 = vmatpush3.bf16.msra.mxu0 %v20254_v9 }
  0xde   : > { %20259 = vmatprep.subr.bf16.mxu0 %v20258_v10 }
  0xe0   : > { %19070 = vmatmul.mubr.f32.gmra.mrb[6].mxu0 %v21563_v55 }
  0xe1   : > { %19076 = vmatprep.mubr.f32.mxu0 %v21494_v15 }
  0xe4   : > { %19077 = vmatmul.mubr.f32.vlgmr.msra.gmra.mrb[4].mxu0 %v21496_v16 }
  0xe5   : > { %19079 = vmatprep.mubr.f32.mxu0 %v21514_v25  ;;  %20261 = vmatpush3.bf16.msra.mxu0 %v20258_v10 }
  0xe6   : > { %20263 = vmatprep.subr.bf16.mxu0 %v20250_v4 }
  0xe8   : > { %19080 = vmatmul.mubr.f32.gmra.mrb[6].mxu0 %v21519_v27 }
  0xe9   : > { %19086 = vmatprep.mubr.f32.mxu0 %v21508_v22 }
  0xec   : > { %19087 = vmatmul.mubr.f32.vlgmr.msra.gmra.mrb[4].mxu0 %v21511_v23 }
  0xed   : > { %19089 = vmatprep.mubr.f32.mxu0 %v21532_v33  ;;  %20265 = vmatpush3.bf16.msra.mxu0 %v20250_v4 }
  0xee   : > { %20267 = vmatprep.subr.bf16.mxu0 %v20266_v11 }
  0xf0   : > { %19090 = vmatmul.mubr.f32.gmra.mrb[6].mxu0 %v21536_v35 }
  0xf1   : > { %19096 = vmatprep.mubr.f32.mxu0 %v21523_v30 }
  0xf4   : > { %19097 = vmatmul.mubr.f32.vlgmr.msra.gmra.mrb[4].mxu0 %v21526_v31 }
  0xf5   : > { %19099 = vmatprep.mubr.f32.mxu0 %v21543_v41  ;;  %20269 = vmatpush3.bf16.msra.mxu0 %v20266_v11 }
  0xf6   : > { %20271 = vmatprep.subr.bf16.mxu0 %v20250_v4 }
  0xf8   : > { %19100 = vmatmul.mubr.f32.gmra.mrb[6].mxu0 %v21546_v43 }
  0xf9   : > { %19106 = vmatprep.mubr.f32.mxu0 %v21494_v15 }
  0xfc   : > { %19107 = vmatmul.mubr.f32.vlgmr.msra.gmra.mrb[4].mxu0 %v21496_v16 }
  0xfd   : > { %20273 = vmatpush3.bf16.msra.mxu0 %v20250_v4  ;;  %19109 = vmatprep.mubr.f32.mxu0 %v21514_v25 }
  0xfe   : > { %19182 = vmatprep.subr.mxu0 %v21178_v12 }
 0x100   : > { %19110 = vmatmul.mubr.f32.gmra.mrb[6].mxu0 %v21519_v27 }
 0x101   : > { %19116 = vmatprep.mubr.f32.mxu0 %v21494_v15 }
 0x104   : > { %19117 = vmatmul.mubr.f32.vlgmr.msra.gmra.mrb[4].mxu0 %v21496_v16 }
 0x105   : > { %19119 = vmatprep.mubr.f32.mxu0 %v21514_v25 }
 0x108   : > { %19120 = vmatmul.mubr.f32.gmra.mrb[6].mxu0 %v21519_v27 }
 0x109   : > { %19184 = vmatprep.mubr.msk.f32.mxu0 %vm21179_vm1, %v21178_v12 }
 0x1a7   : > { %v21650_v13 = vpop.f32.mrb[0].mxu0 }
 0x1a8   : > { %v21652_v14 = vpop.f32.mrb[0].mxu1  ;;  %v21654_v15 = vpop.f32.mrb[1].mxu0  ;;  %v2664_v45 = vsel %vm2210_vm2, %v21650_v13, 0 }
 0x1a9   : > { %v2212_v16 = vsel %vm2210_vm2, %v21654_v15, 0  ;;  %v21658_v17 = vpop.f32.mrb[1].mxu1  ;;  %v2667_v46 = vsel %vm2210_vm2, %v21652_v14, 0  ;;  %v21713_v47 = vand.u32 4294901760, %v2664_v45 }
 0x1aa   : > { %v21660_v18 = vand.u32 4294901760, %v2212_v16  ;;  %v2215_v19 = vsel %vm2210_vm2, %v21658_v17, 0  ;;  %v2670_v48 = vand.u32 4294901760, %v2667_v46 }
 0x1ab   : > { %v21664_v20 = vand.u32 4294901760, %v2215_v19  ;;  %v21666_v21 = vpop.f32.mrb[2].mxu0  ;;  %v2736_v49 = vsub.f32 %v2664_v45, %v21713_v47 }
 0x1ac   : > { %v2284_v22 = vsub.f32 %v2212_v16, %v21660_v18  ;;  %v21669_v23 = vpop.f32.mrb[2].mxu1  ;;  %v21671_v24 = vpop.f32.mrb[3].mxu0  ;;  %v2747_v50 = vsub.f32 %v2667_v46, %v2670_v48  ;;  %v3568_v62 = vsel %vm2210_vm2, %v21666_v21, 0 }
 0x1ad   : > { %v2295_v25 = vsub.f32 %v2215_v19, %v21664_v20  ;;  %v3116_v26 = vsel %vm2210_vm2, %v21671_v24, 0  ;;  %v21676_v27 = vpop.f32.mrb[3].mxu1  ;;  %19123 = vmatpush3.xpose.msra.mxu1 %v21664_v20  ;;  %v2737_v51 = vand.u32 4294901760, %v2736_v49  ;;  %v3571_v63 = vsel %vm2210_vm2, %v21669_v23, 0 }
 0x1ae   : > { %v2285_v28 = vand.u32 4294901760, %v2284_v22  ;;  %v21679_v29 = vand.u32 4294901760, %v3116_v26  ;;  %v3119_v30 = vsel %vm2210_vm2, %v21676_v27, 0  ;;  %19127 = vmatprep.subr.mxu1 %v21178_v12  ;;  %v2748_v52 = vand.u32 4294901760, %v2747_v50 }
 0x1af   : > { %v3122_v31 = vand.u32 4294901760, %v3119_v30  ;;  %v2296_v32 = vand.u32 4294901760, %v2295_v25  ;;  %v2738_v55 = vsub.f32 %v2736_v49, %v2737_v51  ;;  %v3639_v0 = vand.u32 4294901760, %v3568_v62 }
 0x1b0   : > { %v2286_v33 = vsub.f32 %v2284_v22, %v2285_v28  ;;  %v3188_v34 = vsub.f32 %v3116_v26, %v21679_v29  ;;  %v2749_v56 = vsub.f32 %v2747_v50, %v2748_v52  ;;  %v3574_v1 = vand.u32 4294901760, %v3571_v63 }
 0x1b1   : > { %v3199_v35 = vsub.f32 %v3119_v30, %v3122_v31  ;;  %19183 = vmatpush3.xpose.msra.mxu0 %v3122_v31  ;;  %v2297_v36 = vsub.f32 %v2295_v25, %v2296_v32  ;;  %v2739_v59 = vand.u32 4294901760, %v2738_v55  ;;  %v3640_v2 = vsub.f32 %v3568_v62, %v3639_v0 }
 0x1b2   : > { %v2287_v37 = vand.u32 4294901760, %v2286_v33  ;;  %v3189_v38 = vand.u32 4294901760, %v3188_v34  ;;  %19187 = vmatprep.subr.mxu0 %v21178_v12  ;;  %v2750_v60 = vand.u32 4294901760, %v2749_v56  ;;  %v3651_v3 = vsub.f32 %v3571_v63, %v3574_v1 }
 0x1b3   : > { %v2298_v39 = vand.u32 4294901760, %v2297_v36  ;;  %v3200_v40 = vand.u32 4294901760, %v3199_v35  ;;  %v3641_v4 = vand.u32 4294901760, %v3640_v2 }
 0x1b4   : > { %v3190_v41 = vsub.f32 %v3188_v34, %v3189_v38  ;;  %19125 = vmatmul.mubr.f32.vlgmr.msra.gmra.mrb[4].mxu1 %v2287_v37  ;;  %v3652_v5 = vand.u32 4294901760, %v3651_v3 }
 0x1b5   : > { %19128 = vmatpush3.xpose.msra.mxu1 %v2298_v39  ;;  %v3201_v42 = vsub.f32 %v3199_v35, %v3200_v40  ;;  %19129 = vmatprep.mubr.msk.f32.mxu1 %vm21179_vm1, %v21178_v12  ;;  %v3642_v6 = vsub.f32 %v3640_v2, %v3641_v4 }
 0x1b6   : > { %v3191_v43 = vand.u32 4294901760, %v3190_v41  ;;  %19132 = vmatprep.subr.mxu1 %v21178_v12  ;;  %v3653_v7 = vsub.f32 %v3651_v3, %v3652_v5 }
 0x1b7   : > { %v3202_v44 = vand.u32 4294901760, %v3201_v42  ;;  %v3643_v8 = vand.u32 4294901760, %v3642_v6 }
 0x1b8   : > { %19185 = vmatmul.mubr.f32.vlgmr.msra.gmra.mrb[8].mxu0 %v3191_v43  ;;  %v3654_v9 = vand.u32 4294901760, %v3653_v7 }
 0x1b9   : > { %19188 = vmatpush3.xpose.msra.mxu0 %v3202_v44  ;;  %19189 = vmatprep.mubr.msk.f32.mxu0 %vm21179_vm1, %v21178_v12 }
 0x1ba   : > { %19192 = vmatprep.subr.mxu0 %v21178_v12 }
 0x1bc   : > { %19130 = vmatmul.mubr.f32.vlgmr.msra.gmra.mrb[4].mxu1 %v21660_v18 }
 0x1bd   : > { %19133 = vmatpush3.xpose.msra.mxu1 %v2295_v25  ;;  %19134 = vmatprep.mubr.msk.f32.mxu1 %vm21179_vm1, %v21178_v12 }
 0x1be   : > { %19137 = vmatprep.subr.mxu1 %v21178_v12 }
 0x1c0   : > { %19190 = vmatmul.mubr.f32.vlgmr.msra.gmra.mrb[8].mxu0 %v21679_v29 }
 0x1c1   : > { %19193 = vmatpush3.xpose.msra.mxu0 %v3199_v35  ;;  %19194 = vmatprep.mubr.msk.f32.mxu0 %vm21179_vm1, %v21178_v12 }
 0x1c2   : > { %19197 = vmatprep.subr.mxu0 %v21178_v12 }
 0x1c4   : > { %19135 = vmatmul.mubr.f32.vlgmr.msra.gmra.mrb[4].mxu1 %v2284_v22 }
 0x1c5   : > { %19138 = vmatpush3.xpose.msra.mxu1 %v21664_v20  ;;  %19139 = vmatprep.mubr.msk.f32.mxu1 %vm21179_vm1, %v21178_v12 }
 0x1c6   : > { %19142 = vmatprep.subr.mxu1 %v21178_v12 }
 0x1c8   : > { %19195 = vmatmul.mubr.f32.vlgmr.msra.gmra.mrb[8].mxu0 %v3188_v34 }
 0x1c9   : > { %19198 = vmatpush3.xpose.msra.mxu0 %v3122_v31  ;;  %19199 = vmatprep.mubr.msk.f32.mxu0 %vm21179_vm1, %v21178_v12 }
 0x1ca   : > { %19202 = vmatprep.subr.mxu0 %v21178_v12 }
 0x1cc   : > { %19140 = vmatmul.mubr.f32.vlgmr.msra.gmra.mrb[4].mxu1 %v2285_v28 }
 0x1cd   : > { %19143 = vmatpush3.xpose.msra.mxu1 %v2296_v32  ;;  %19144 = vmatprep.mubr.msk.f32.mxu1 %vm21179_vm1, %v21178_v12 }
 0x1ce   : > { %19147 = vmatprep.subr.mxu1 %v21178_v12 }
 0x1d0   : > { %19200 = vmatmul.mubr.f32.vlgmr.msra.gmra.mrb[8].mxu0 %v3189_v38 }
 0x1d1   : > { %19203 = vmatpush3.xpose.msra.mxu0 %v3200_v40  ;;  %19204 = vmatprep.mubr.msk.f32.mxu0 %vm21179_vm1, %v21178_v12 }
 0x1d2   : > { %19207 = vmatprep.subr.mxu0 %v21178_v12 }
 0x1d4   : > { %19145 = vmatmul.mubr.f32.vlgmr.msra.gmra.mrb[4].mxu1 %v21660_v18 }
 0x1d5   : > { %19148 = vmatpush3.xpose.msra.mxu1 %v21664_v20  ;;  %19149 = vmatprep.mubr.msk.f32.mxu1 %vm21179_vm1, %v21178_v12 }
 0x1d6   : > { %19152 = vmatprep.subr.mxu1 %v21178_v12 }
 0x1d7   : > { %v21725_v53 = vpop.f32.mrb[4].mxu0 }
 0x1d8   : > { %19205 = vmatmul.mubr.f32.vlgmr.msra.gmra.mrb[8].mxu0 %v21679_v29  ;;  %v21728_v54 = vpop.f32.mrb[5].mxu0  ;;  %v21790_v10 = vand.u32 4294901760, %v21725_v53 }
 0x1d9   : > { %19208 = vmatpush3.xpose.msra.mxu0 %v3122_v31  ;;  %19209 = vmatprep.mubr.msk.f32.mxu0 %vm21179_vm1, %v21178_v12  ;;  %v21743_v61 = vand.u32 4294901760, %v21728_v54 }
 0x1da   : > { %19242 = vmatprep.subr.mxu0 %v21178_v12 }
 0x1db   : > { %v21733_v57 = vpop.f32.mrb[6].mxu0 }
 0x1dc   : > { %19150 = vmatmul.mubr.f32.vlgmr.msra.gmra.mrb[4].mxu1 %v21660_v18  ;;  %v21736_v58 = vpop.f32.mrb[7].mxu0 }
 0x1dd   : > { %19153 = vmatpush3.xpose.msra.mxu1 %v2670_v48  ;;  %19154 = vmatprep.mubr.msk.f32.mxu1 %vm21179_vm1, %v21178_v12 }
 0x1de   : > { %19157 = vmatprep.subr.mxu1 %v21178_v12 }
 0x1e0   : > { %19155 = vmatmul.mubr.f32.vlgmr.msra.gmra.mrb[6].mxu1 %v2739_v59  ;;  %19210 = vmatmul.mubr.f32.vlgmr.msra.gmra.mrb[8].mxu0 %v21679_v29  ;;  %v4145_v59 = vsub.f32 %v21728_v54, %v21743_v61 }
 0x1e1   : > { %19158 = vmatpush3.xpose.msra.mxu1 %v2750_v60  ;;  %19159 = vmatprep.mubr.msk.f32.mxu1 %vm21179_vm1, %v21178_v12 }
 0x1e2   : > { %19162 = vmatprep.subr.mxu1 %v21178_v12  ;;  %19243 = vmatpush3.msra.mxu0 %v21743_v61  ;;  %v4146_v63 = vand.u32 4294901760, %v4145_v59 }
 0x1e3   : > { %19244 = vmatprep.mubr.msk.f32.mxu0 %vm21179_vm1, %v21178_v12  ;;  %19247 = vmatprep.subr.mxu0 %v21178_v12 }
 0x1e8   : > { %19160 = vmatmul.mubr.f32.vlgmr.msra.gmra.mrb[6].mxu1 %v21713_v47 }
 0x1e9   : > { %19163 = vmatpush3.xpose.msra.mxu1 %v2747_v50  ;;  %19164 = vmatprep.mubr.msk.f32.mxu1 %vm21179_vm1, %v21178_v12 }
 0x1ea   : > { %19167 = vmatprep.subr.mxu1 %v21178_v12 }
 0x1f0   : > { %19165 = vmatmul.mubr.f32.vlgmr.msra.gmra.mrb[6].mxu1 %v2736_v49 }
 0x1f1   : > { %19168 = vmatpush3.xpose.msra.mxu1 %v2670_v48  ;;  %19169 = vmatprep.mubr.msk.f32.mxu1 %vm21179_vm1, %v21178_v12 }
 0x1f2   : > { %19172 = vmatprep.subr.mxu1 %v21178_v12 }
 0x1f8   : > { %19170 = vmatmul.mubr.f32.vlgmr.msra.gmra.mrb[6].mxu1 %v2737_v51 }
 0x1f9   : > { %19173 = vmatpush3.xpose.msra.mxu1 %v2748_v52  ;;  %19174 = vmatprep.mubr.msk.f32.mxu1 %vm21179_vm1, %v21178_v12 }
 0x1fa   : > { %19177 = vmatprep.subr.mxu1 %v21178_v12 }
 0x200   : > { %19175 = vmatmul.mubr.f32.vlgmr.msra.gmra.mrb[6].mxu1 %v21713_v47 }
 0x201   : > { %19178 = vmatpush3.xpose.msra.mxu1 %v2670_v48  ;;  %19179 = vmatprep.mubr.msk.f32.mxu1 %vm21179_vm1, %v21178_v12 }
 0x202   : > { %19212 = vmatprep.subr.mxu1 %v21178_v12 }
 0x208   : > { %19180 = vmatmul.mubr.f32.vlgmr.msra.gmra.mrb[6].mxu1 %v21713_v47 }
 0x209   : > { %19213 = vmatpush3.xpose.msra.mxu1 %v3574_v1  ;;  %19214 = vmatprep.mubr.msk.f32.mxu1 %vm21179_vm1, %v21178_v12 }
 0x20a   : > { %19217 = vmatprep.subr.mxu1 %v21178_v12 }
 0x20c   : > { %19215 = vmatmul.mubr.f32.vlgmr.msra.gmra.mrb[8].mxu1 %v3643_v8 }
 0x20d   : > { %19218 = vmatpush3.xpose.msra.mxu1 %v3654_v9  ;;  %19219 = vmatprep.mubr.msk.f32.mxu1 %vm21179_vm1, %v21178_v12 }
 0x20e   : > { %19222 = vmatprep.subr.mxu1 %v21178_v12 }
 0x214   : > { %19220 = vmatmul.mubr.f32.vlgmr.msra.gmra.mrb[8].mxu1 %v3639_v0 }
 0x215   : > { %19223 = vmatpush3.xpose.msra.mxu1 %v3651_v3  ;;  %19224 = vmatprep.mubr.msk.f32.mxu1 %vm21179_vm1, %v21178_v12 }
 0x216   : > { %19227 = vmatprep.subr.mxu1 %v21178_v12 }
 0x21c   : > { %19225 = vmatmul.mubr.f32.vlgmr.msra.gmra.mrb[8].mxu1 %v3640_v2  ;;  %v4147_v2 = vsub.f32 %v4145_v59, %v4146_v63 }
 0x21d   : > { %19228 = vmatpush3.xpose.msra.mxu1 %v3574_v1  ;;  %19229 = vmatprep.mubr.msk.f32.mxu1 %vm21179_vm1, %v21178_v12 }
 0x21e   : > { %19232 = vmatprep.subr.mxu1 %v21178_v12 }
 0x224   : > { %19230 = vmatmul.mubr.f32.vlgmr.msra.gmra.mrb[8].mxu1 %v3641_v4 }
 0x225   : > { %19233 = vmatpush3.xpose.msra.mxu1 %v3652_v5  ;;  %19234 = vmatprep.mubr.msk.f32.mxu1 %vm21179_vm1, %v21178_v12  ;;  %v4148_v5 = vand.u32 4294901760, %v4147_v2 }
 0x226   : > { %19237 = vmatprep.subr.mxu1 %v21178_v12 }
 0x22c   : > { %19235 = vmatmul.mubr.f32.vlgmr.msra.gmra.mrb[8].mxu1 %v3639_v0 }
 0x22d   : > { %19238 = vmatpush3.xpose.msra.mxu1 %v3574_v1  ;;  %19239 = vmatprep.mubr.msk.f32.mxu1 %vm21179_vm1, %v21178_v12 }
 0x22e   : > { %19272 = vmatprep.subr.mxu1 %v21178_v12 }
 0x234   : > { %19240 = vmatmul.mubr.f32.vlgmr.msra.gmra.mrb[8].mxu1 %v3639_v0 }
 0x235   : > { %19273 = vmatpush3.msra.mxu1 %v21790_v10  ;;  %19274 = vmatprep.mubr.msk.f32.mxu1 %vm21179_vm1, %v21178_v12 }
 0x236   : > { %19277 = vmatprep.subr.mxu1 %v21178_v12 }
 0x2af   : > { %v2659_v11 = vpop.f32.mrb[4].mxu1 }
 0x2b0   : > { %v19151_v16 = vpop.f32.mrb[5].mxu1  ;;  %v4020_v18 = vsel %vm4019_vm3, %v2659_v11, -inf }
 0x2b1   : > { %4021 = vmax.xlane.f32.xlu0 %v4020_v18  ;;  %v21843_v18 = vand.u32 4294901760, %v21736_v58 }
 0x2b3   : > { %v3563_v19 = vpop.f32.mrb[8].mxu0 }
 0x2b4   : > { %v19211_v20 = vpop.f32.mrb[9].mxu0  ;;  %v4026_v22 = vsel %vm4019_vm3, %v3563_v19, -inf }
 0x2b5   : > { %4027 = vmax.xlane.f32.xlu1 %v4026_v22 }
 0x2db   : > { %v3111_v25 = vpop.f32.mrb[6].mxu1 }
 0x2dc   : > { %v19181_v26 = vpop.f32.mrb[7].mxu1  ;;  %v4023_v28 = vsel %vm4019_vm3, %v3111_v25, -inf }
 0x2dd   : > { %4024 = vmax.xlane.f32.xlu0 %v4023_v28  ;;  %v5043_v26 = vsub.f32 %v21736_v58, %v21843_v18 }
 0x307   : > { %v4015_v29 = vpop.f32.mrb[8].mxu1 }
 0x308   : > { %v19241_v30 = vpop.f32.mrb[9].mxu1  ;;  %v4029_v31 = vsel %vm4019_vm3, %v4015_v29, -inf }
 0x309   : > { %4030 = vmax.xlane.f32.xlu1 %v4029_v31 }
 0x33e   : > { %v4022_v32 = vpop.xlane.xlu0 %4021 }
 0x33f   : > { %v4032_v33 = vsub.f32 %v2659_v11, %v4022_v32  ;;  %v5044_v32 = vand.u32 4294901760, %v5043_v26 }
 0x341   : > { %v4036_v34 = vmul.f32 1.442695, %v4032_v33 }
 0x342   : > { %v4028_v35 = vpop.xlane.xlu1 %4027 }
 0x343   : > { %20853 = vpow2.f32 %v4036_v34  ;;  %v4034_v36 = vsub.f32 %v3563_v19, %v4028_v35 }
 0x345   : > { %v4040_v37 = vmul.f32 1.442695, %v4034_v36 }
 0x347   : > { %20855 = vpow2.f32 %v4040_v37  ;;  %v5045_v37 = vsub.f32 %v5043_v26, %v5044_v32 }
 0x34d   : > { %v20854_v38 = vpop.eup %20853 }
 0x34e   : > { %v4044_v39 = vsel %vm4019_vm3, %v20854_v38, 0.0 }
 0x34f   : > { %4045 = vadd.xlane.f32.xlu0 %v4044_v39 }
 0x351   : > { %v20856_v40 = vpop.eup %20855 }
 0x352   : > { %v4050_v41 = vsel %vm4019_vm3, %v20856_v40, 0.0 }
 0x353   : > { %4051 = vadd.xlane.f32.xlu0 %v4050_v41  ;;  %v5046_v41 = vand.u32 4294901760, %v5045_v37 }
 0x369   : > { %5864 = vrot.lane.b32.xlu0 %v21654_v15, %s21180_s15 }
 0x36a   : > { %v4025_v42 = vpop.xlane.xlu0 %4024 }
 0x36b   : > { %v4033_v43 = vsub.f32 %v3111_v25, %v4025_v42  ;;  %v4594_v25 = vsub.f32 %v21725_v53, %v21790_v10 }
 0x36d   : > { %v4038_v44 = vmul.f32 1.442695, %v4033_v43  ;;  %6772 = vrot.lane.b32.xlu0 %v21671_v24, %s21180_s15  ;;  %v4595_v31 = vand.u32 4294901760, %v4594_v25 }
 0x36f   : > { %20857 = vpow2.f32 %v4038_v44  ;;  %v4596_v36 = vsub.f32 %v4594_v25, %v4595_v31 }
 0x371   : > { %6774 = vrot.lane.b32.xlu0 %v21676_v27, %s21180_s15 }
 0x379   : > { %v20858_v45 = vpop.eup %20857 }
 0x37a   : > { %v4047_v46 = vsel %vm4019_vm3, %v20858_v45, 0.0 }
 0x37b   : > { %4048 = vadd.xlane.f32.xlu1 %v4047_v46 }
 0x396   : > { %v4031_v47 = vpop.xlane.xlu1 %4030 }
 0x397   : > { %v4035_v48 = vsub.f32 %v4015_v29, %v4031_v47 }
 0x399   : > { %v4042_v49 = vmul.f32 1.442695, %v4035_v48  ;;  %v21896_v48 = vand.u32 4294901760, %v21733_v57 }
 0x39b   : > { %20859 = vpow2.f32 %v4042_v49 }
 0x3a5   : > { %v21809_v50 = vpop.eup %20859 }
 0x3a6   : > { %v4053_v51 = vsel %vm4019_vm3, %v21809_v50, 0.0 }
 0x3a7   : > { %4054 = vadd.xlane.f32.xlu1 %v4053_v51 }
 0x3b8   : > { %6318 = vrot.lane.b32.xlu1 %v21650_v13, %s21180_s15 }
 0x3bc   : > { %5866 = vrot.lane.b32.xlu1 %v21658_v17, %s21180_s15 }
 0x3c0   : > { %6320 = vrot.lane.b32.xlu1 %v21652_v14, %s21180_s15 }
 0x3c4   : > { %7226 = vrot.lane.b32.xlu1 %v21666_v21, %s21180_s15 }
 0x3c8   : > { %7228 = vrot.lane.b32.xlu1 %v21669_v23, %s21180_s15 }
 0x3dc   : > { %v4046_v52 = vpop.xlane.xlu0 %4045 }
 0x3dd   : > { %20861 = vrcp.f32 %v4046_v52 }
 0x3e0   : > { %v4052_v6 = vpop.xlane.xlu0 %4051 }
 0x3e1   : > { %20863 = vrcp.f32 %v4052_v6 }
 0x3e4   : > { %v5865_v43 = vpop.permute.xlu0 %5864 }
 0x3e5   : > { %v5868_v44 = vsel %vm2210_vm2, %v5865_v43, 0 }
 0x3e6   : > { %v21887_v46 = vand.u32 4294901760, %v5868_v44 }
 0x3e7   : > { %v20862_v55 = vpop.eup %20861 }
 0x3e8   : > { %v4057_v56 = vmul.f32 %v20862_v55, %v20854_v38  ;;  %v21902_v55 = vsub.f32 %v5868_v44, %v21887_v46 }
 0x3ea   : > { %v4065_v60 = vsel %vm4019_vm3, %v4057_v56, 0 }
 0x3eb   : > { %v4133_v62 = vand.u32 4294901760, %v4065_v60  ;;  %v20864_v7 = vpop.eup %20863 }
 0x3ec   : > { %v4061_v8 = vmul.f32 %v20864_v7, %v20856_v40  ;;  %v4597_v40 = vand.u32 4294901760, %v4596_v36 }
 0x3ed   : > { %v4134_v0 = vsub.f32 %v4065_v60, %v4133_v62  ;;  %v21910_v60 = vsub.f32 %v21733_v57, %v21896_v48 }
 0x3ee   : > { %v4963_v11 = vsel %vm4019_vm3, %v4061_v8, 0 }
 0x3ef   : > { %v4135_v1 = vand.u32 4294901760, %v4134_v0  ;;  %v21840_v16 = vand.u32 4294901760, %v4963_v11 }
 0x3f1   : > { %v4136_v3 = vsub.f32 %v4134_v0, %v4135_v1  ;;  %v5032_v20 = vsub.f32 %v4963_v11, %v21840_v16 }
 0x3f3   : > { %v4137_v4 = vand.u32 4294901760, %v4136_v3  ;;  %v5033_v30 = vand.u32 4294901760, %v5032_v20 }
 0x3f5   : > { %19245 = vmatmul.mubr.f32.vlgmr.msra.gmra.mrb[10].mxu0 %v4137_v4  ;;  %v5034_v35 = vsub.f32 %v5032_v20, %v5033_v30 }
 0x3f6   : > { %19248 = vmatpush3.msra.mxu0 %v4148_v5  ;;  %19249 = vmatprep.mubr.msk.f32.mxu0 %vm21179_vm1, %v21178_v12 }
 0x3f7   : > { %19252 = vmatprep.subr.mxu0 %v21178_v12  ;;  %v5035_v39 = vand.u32 4294901760, %v5034_v35 }
 0x3fd   : > { %19250 = vmatmul.mubr.f32.vlgmr.msra.gmra.mrb[10].mxu0 %v4133_v62 }
 0x3fe   : > { %19253 = vmatpush3.msra.mxu0 %v4145_v59  ;;  %19254 = vmatprep.mubr.msk.f32.mxu0 %vm21179_vm1, %v21178_v12 }
 0x3ff   : > { %19257 = vmatprep.subr.mxu0 %v21178_v12 }
 0x405   : > { %19255 = vmatmul.mubr.f32.vlgmr.msra.gmra.mrb[10].mxu0 %v4134_v0 }
 0x406   : > { %19258 = vmatpush3.msra.mxu0 %v21743_v61  ;;  %19259 = vmatprep.mubr.msk.f32.mxu0 %vm21179_vm1, %v21178_v12 }
 0x407   : > { %19262 = vmatprep.subr.mxu0 %v21178_v12 }
 0x408   : > { %v4049_v9 = vpop.xlane.xlu1 %4048 }
 0x409   : > { %20865 = vrcp.f32 %v4049_v9 }
 0x40d   : > { %19260 = vmatmul.mubr.f32.vlgmr.msra.gmra.mrb[10].mxu0 %v4135_v1 }
 0x40e   : > { %19263 = vmatpush3.msra.mxu0 %v4146_v63  ;;  %19264 = vmatprep.mubr.msk.f32.mxu0 %vm21179_vm1, %v21178_v12  ;;  %v5940_v63 = vand.u32 4294901760, %v21902_v55 }
 0x40f   : > { %19267 = vmatprep.subr.mxu0 %v21178_v12 }
 0x410   : > { %v5941_v2 = vsub.f32 %v21902_v55, %v5940_v63 }
 0x412   : > { %v5942_v7 = vand.u32 4294901760, %v5941_v2 }
 0x413   : > { %v20866_v19 = vpop.eup %20865 }
 0x414   : > { %v4059_v22 = vmul.f32 %v20866_v19, %v20858_v45 }
 0x415   : > { %19265 = vmatmul.mubr.f32.vlgmr.msra.gmra.mrb[10].mxu0 %v4133_v62 }
 0x416   : > { %19268 = vmatpush3.msra.mxu0 %v21743_v61  ;;  %19269 = vmatprep.mubr.msk.f32.mxu0 %vm21179_vm1, %v21178_v12  ;;  %v4514_v28 = vsel %vm4019_vm3, %v4059_v22, 0 }
 0x417   : > { %19302 = vmatprep.subr.mxu0 %v21178_v12  ;;  %v21855_v29 = vand.u32 4294901760, %v4514_v28 }
 0x419   : > { %v4583_v33 = vsub.f32 %v4514_v28, %v21855_v29 }
 0x41b   : > { %v4584_v34 = vand.u32 4294901760, %v4583_v33 }
 0x41d   : > { %19270 = vmatmul.mubr.f32.vlgmr.msra.gmra.mrb[10].mxu0 %v4133_v62  ;;  %v4585_v61 = vsub.f32 %v4583_v33, %v4584_v34 }
 0x41e   : > { %19303 = vmatpush3.msra.mxu0 %v21843_v18  ;;  %19304 = vmatprep.mubr.msk.f32.mxu0 %vm21179_vm1, %v21178_v12 }
 0x41f   : > { %19307 = vmatprep.subr.mxu0 %v21178_v12  ;;  %v4586_v38 = vand.u32 4294901760, %v4585_v61 }
 0x421   : > { %19275 = vmatmul.mubr.f32.vlgmr.msra.gmra.mrb[10].mxu1 %v4586_v38  ;;  %19305 = vmatmul.mubr.f32.vlgmr.msra.gmra.mrb[12].mxu0 %v5035_v39 }
 0x422   : > { %19278 = vmatpush3.msra.mxu1 %v4597_v40  ;;  %19308 = vmatpush3.msra.mxu0 %v5046_v41 }
 0x423   : > { %19279 = vmatprep.mubr.msk.f32.mxu1 %vm21179_vm1, %v21178_v12  ;;  %19282 = vmatprep.subr.mxu1 %v21178_v12 }
 0x424   : > { %19309 = vmatprep.mubr.msk.f32.mxu0 %vm21179_vm1, %v21178_v12  ;;  %19312 = vmatprep.subr.mxu0 %v21178_v12 }
 0x429   : > { %19280 = vmatmul.mubr.f32.vlgmr.msra.gmra.mrb[10].mxu1 %v21855_v29  ;;  %19310 = vmatmul.mubr.f32.vlgmr.msra.gmra.mrb[12].mxu0 %v21840_v16 }
 0x42a   : > { %19283 = vmatpush3.msra.mxu1 %v4594_v25  ;;  %19313 = vmatpush3.msra.mxu0 %v5043_v26 }
 0x42b   : > { %19284 = vmatprep.mubr.msk.f32.mxu1 %vm21179_vm1, %v21178_v12  ;;  %19287 = vmatprep.subr.mxu1 %v21178_v12 }
 0x42c   : > { %19314 = vmatprep.mubr.msk.f32.mxu0 %vm21179_vm1, %v21178_v12  ;;  %19317 = vmatprep.subr.mxu0 %v21178_v12 }
 0x431   : > { %19285 = vmatmul.mubr.f32.vlgmr.msra.gmra.mrb[10].mxu1 %v4583_v33  ;;  %19315 = vmatmul.mubr.f32.vlgmr.msra.gmra.mrb[12].mxu0 %v5032_v20 }
 0x432   : > { %19288 = vmatpush3.msra.mxu1 %v21790_v10  ;;  %19318 = vmatpush3.msra.mxu0 %v21843_v18 }
 0x433   : > { %19289 = vmatprep.mubr.msk.f32.mxu1 %vm21179_vm1, %v21178_v12  ;;  %19292 = vmatprep.subr.mxu1 %v21178_v12 }
 0x434   : > { %v4055_v42 = vpop.xlane.xlu1 %4054  ;;  %19319 = vmatprep.mubr.msk.f32.mxu0 %vm21179_vm1, %v21178_v12  ;;  %19322 = vmatprep.subr.mxu0 %v21178_v12 }
 0x435   : > { %20867 = vrcp.f32 %v4055_v42 }
 0x438   : > { %v21885_v45 = vpop.permute.xlu1 %6318 }
 0x439   : > { %19290 = vmatmul.mubr.f32.vlgmr.msra.gmra.mrb[10].mxu1 %v4584_v34  ;;  %19320 = vmatmul.mubr.f32.vlgmr.msra.gmra.mrb[12].mxu0 %v5033_v30  ;;  %v6322_v22 = vsel %vm2210_vm2, %v21885_v45, 0 }
 0x43a   : > { %19293 = vmatpush3.msra.mxu1 %v4595_v31  ;;  %19323 = vmatpush3.msra.mxu0 %v5044_v32 }
 0x43b   : > { %19294 = vmatprep.mubr.msk.f32.mxu1 %vm21179_vm1, %v21178_v12  ;;  %19297 = vmatprep.subr.mxu1 %v21178_v12 }
 0x43c   : > { %v5867_v47 = vpop.permute.xlu1 %5866  ;;  %19324 = vmatprep.mubr.msk.f32.mxu0 %vm21179_vm1, %v21178_v12  ;;  %19327 = vmatprep.subr.mxu0 %v21178_v12 }
 0x43d   : > { %v5870_v49 = vsel %vm2210_vm2, %v5867_v47, 0 }
 0x43e   : > { %v21899_v51 = vand.u32 4294901760, %v5870_v49 }
 0x43f   : > { %v20868_v52 = vpop.eup %20867 }
 0x440   : > { %v4063_v56 = vmul.f32 %v20868_v52, %v21809_v50  ;;  %v21906_v59 = vsub.f32 %v5870_v49, %v21899_v51  ;;  %v6321_v19 = vpop.permute.xlu1 %6320 }
 0x441   : > { %19295 = vmatmul.mubr.f32.vlgmr.msra.gmra.mrb[10].mxu1 %v21855_v29  ;;  %19325 = vmatmul.mubr.f32.vlgmr.msra.gmra.mrb[12].mxu0 %v21840_v16  ;;  %v6324_v26 = vsel %vm2210_vm2, %v6321_v19, 0 }
 0x442   : > { %19298 = vmatpush3.msra.mxu1 %v21790_v10  ;;  %19328 = vmatpush3.msra.mxu0 %v21843_v18  ;;  %v5412_v62 = vsel %vm4019_vm3, %v4063_v56, 0  ;;  %v5951_v0 = vand.u32 4294901760, %v21906_v59  ;;  %v5493_v10 = vand.u32 4294901760, %v21910_v60  ;;  %v21981_v31 = vand.u32 4294901760, %v6324_v26 }
 0x443   : > { %19299 = vmatprep.mubr.msk.f32.mxu1 %vm21179_vm1, %v21178_v12  ;;  %19329 = vmatprep.mubr.msk.f32.mxu0 %vm21179_vm1, %v21178_v12  ;;  %v21922_v50 = vand.u32 4294901760, %v5412_v62 }
 0x444   : > { %19332 = vmatprep.subr.mxu1 %v21178_v12  ;;  %19362 = vmatprep.subr.mxu0 %v21178_v12  ;;  %v5952_v4 = vsub.f32 %v21906_v59, %v5951_v0  ;;  %v5494_v5 = vsub.f32 %v21910_v60, %v5493_v10  ;;  %v6404_v35 = vsub.f32 %v6324_v26, %v21981_v31 }
 0x445   : > { %v5481_v1 = vsub.f32 %v5412_v62, %v21922_v50 }
 0x446   : > { %v5953_v9 = vand.u32 4294901760, %v5952_v4  ;;  %v5495_v11 = vand.u32 4294901760, %v5494_v5  ;;  %v6405_v38 = vand.u32 4294901760, %v6404_v35 }
 0x447   : > { %v5482_v3 = vand.u32 4294901760, %v5481_v1 }
 0x448   : > { %v6406_v42 = vsub.f32 %v6404_v35, %v6405_v38 }
 0x449   : > { %19300 = vmatmul.mubr.f32.vlgmr.msra.gmra.mrb[10].mxu1 %v21855_v29  ;;  %19330 = vmatmul.mubr.f32.vlgmr.msra.gmra.mrb[12].mxu0 %v21840_v16  ;;  %v5483_v6 = vsub.f32 %v5481_v1, %v5482_v3  ;;  %v6773_v16 = vpop.permute.xlu0 %6772  ;;  %v21974_v29 = vand.u32 4294901760, %v6322_v22 }
 0x44a   : > { %19333 = vmatpush3.msra.mxu1 %v21896_v48  ;;  %19363 = vmatpush3.xpose.msra.mxu0 %v21899_v51  ;;  %v6776_v20 = vsel %vm2210_vm2, %v6773_v16, 0  ;;  %v6407_v47 = vand.u32 4294901760, %v6406_v42 }
 0x44b   : > { %19334 = vmatprep.mubr.msk.f32.mxu1 %vm21179_vm1, %v21178_v12  ;;  %19337 = vmatprep.subr.mxu1 %v21178_v12  ;;  %v5484_v8 = vand.u32 4294901760, %v5483_v6  ;;  %v21972_v28 = vand.u32 4294901760, %v6776_v20  ;;  %v6393_v33 = vsub.f32 %v6322_v22, %v21974_v29 }
 0x44c   : > { %19364 = vmatprep.mubr.msk.f32.mxu0 %vm21179_vm1, %v21178_v12  ;;  %19367 = vmatprep.subr.mxu0 %v21178_v12 }
 0x44d   : > { %19335 = vmatmul.mubr.f32.vlgmr.msra.gmra.mrb[12].mxu1 %v5484_v8  ;;  %19365 = vmatmul.mubr.f32.vlgmr.msra.gmra.mrb[14].mxu0 %v5942_v7  ;;  %v6775_v18 = vpop.permute.xlu0 %6774  ;;  %v6847_v32 = vsub.f32 %v6776_v20, %v21972_v28  ;;  %v6394_v37 = vand.u32 4294901760, %v6393_v33 }
 0x44e   : > { %19338 = vmatpush3.msra.mxu1 %v5495_v11  ;;  %19368 = vmatpush3.xpose.msra.mxu0 %v5953_v9  ;;  %v6778_v25 = vsel %vm2210_vm2, %v6775_v18, 0 }
 0x44f   : > { %19339 = vmatprep.mubr.msk.f32.mxu1 %vm21179_vm1, %v21178_v12  ;;  %19342 = vmatprep.subr.mxu1 %v21178_v12  ;;  %v21979_v30 = vand.u32 4294901760, %v6778_v25  ;;  %v6848_v36 = vand.u32 4294901760, %v6847_v32  ;;  %v6395_v40 = vsub.f32 %v6393_v33, %v6394_v37 }
 0x450   : > { %19369 = vmatprep.mubr.msk.f32.mxu0 %vm21179_vm1, %v21178_v12  ;;  %19372 = vmatprep.subr.mxu0 %v21178_v12 }
 0x451   : > { %v6858_v34 = vsub.f32 %v6778_v25, %v21979_v30  ;;  %v6849_v39 = vsub.f32 %v6847_v32, %v6848_v36  ;;  %v6396_v44 = vand.u32 4294901760, %v6395_v40 }
 0x453   : > { %v6859_v61 = vand.u32 4294901760, %v6858_v34  ;;  %v6850_v43 = vand.u32 4294901760, %v6849_v39 }
 0x455   : > { %19340 = vmatmul.mubr.f32.vlgmr.msra.gmra.mrb[12].mxu1 %v21922_v50  ;;  %19370 = vmatmul.mubr.f32.vlgmr.msra.gmra.mrb[14].mxu0 %v21887_v46  ;;  %v6860_v41 = vsub.f32 %v6858_v34, %v6859_v61 }
 0x456   : > { %19343 = vmatpush3.msra.mxu1 %v21910_v60  ;;  %19373 = vmatpush3.xpose.msra.mxu0 %v21906_v59 }
 0x457   : > { %19344 = vmatprep.mubr.msk.f32.mxu1 %vm21179_vm1, %v21178_v12  ;;  %19347 = vmatprep.subr.mxu1 %v21178_v12  ;;  %v6861_v45 = vand.u32 4294901760, %v6860_v41 }
 0x458   : > { %19374 = vmatprep.mubr.msk.f32.mxu0 %vm21179_vm1, %v21178_v12  ;;  %19377 = vmatprep.subr.mxu0 %v21178_v12 }
 0x45d   : > { %19345 = vmatmul.mubr.f32.vlgmr.msra.gmra.mrb[12].mxu1 %v5481_v1  ;;  %19375 = vmatmul.mubr.f32.vlgmr.msra.gmra.mrb[14].mxu0 %v21902_v55 }
 0x45e   : > { %19348 = vmatpush3.msra.mxu1 %v21896_v48  ;;  %19378 = vmatpush3.xpose.msra.mxu0 %v21899_v51 }
 0x45f   : > { %19349 = vmatprep.mubr.msk.f32.mxu1 %vm21179_vm1, %v21178_v12  ;;  %19352 = vmatprep.subr.mxu1 %v21178_v12 }
 0x460   : > { %19379 = vmatprep.mubr.msk.f32.mxu0 %vm21179_vm1, %v21178_v12  ;;  %19382 = vmatprep.subr.mxu0 %v21178_v12 }
 0x465   : > { %19350 = vmatmul.mubr.f32.vlgmr.msra.gmra.mrb[12].mxu1 %v5482_v3  ;;  %19380 = vmatmul.mubr.f32.vlgmr.msra.gmra.mrb[14].mxu0 %v5940_v63 }
 0x466   : > { %19353 = vmatpush3.msra.mxu1 %v5493_v10  ;;  %19383 = vmatpush3.xpose.msra.mxu0 %v5951_v0 }
 0x467   : > { %19354 = vmatprep.mubr.msk.f32.mxu1 %vm21179_vm1, %v21178_v12  ;;  %19357 = vmatprep.subr.mxu1 %v21178_v12 }
 0x468   : > { %19384 = vmatprep.mubr.msk.f32.mxu0 %vm21179_vm1, %v21178_v12  ;;  %19387 = vmatprep.subr.mxu0 %v21178_v12 }
 0x46d   : > { %19355 = vmatmul.mubr.f32.vlgmr.msra.gmra.mrb[12].mxu1 %v21922_v50  ;;  %19385 = vmatmul.mubr.f32.vlgmr.msra.gmra.mrb[14].mxu0 %v21887_v46 }
 0x46e   : > { %19358 = vmatpush3.msra.mxu1 %v21896_v48  ;;  %19388 = vmatpush3.xpose.msra.mxu0 %v21899_v51 }
 0x46f   : > { %19359 = vmatprep.mubr.msk.f32.mxu1 %vm21179_vm1, %v21178_v12  ;;  %19389 = vmatprep.mubr.msk.f32.mxu0 %vm21179_vm1, %v21178_v12 }
 0x470   : > { %19392 = vmatprep.subr.mxu1 %v21178_v12  ;;  %19422 = vmatprep.subr.mxu0 %v21178_v12 }
 0x475   : > { %19360 = vmatmul.mubr.f32.vlgmr.msra.gmra.mrb[12].mxu1 %v21922_v50  ;;  %19390 = vmatmul.mubr.f32.vlgmr.msra.gmra.mrb[14].mxu0 %v21887_v46  ;;  %v7227_v46 = vpop.permute.xlu1 %7226 }
 0x476   : > { %19393 = vmatpush3.xpose.msra.mxu1 %v21981_v31  ;;  %19423 = vmatpush3.xpose.msra.mxu0 %v21979_v30  ;;  %v7230_v49 = vsel %vm2210_vm2, %v7227_v46, 0 }
 0x477   : > { %19394 = vmatprep.mubr.msk.f32.mxu1 %vm21179_vm1, %v21178_v12  ;;  %19397 = vmatprep.subr.mxu1 %v21178_v12  ;;  %v7300_v52 = vand.u32 4294901760, %v7230_v49 }
 0x478   : > { %19424 = vmatprep.mubr.msk.f32.mxu0 %vm21179_vm1, %v21178_v12  ;;  %19427 = vmatprep.subr.mxu0 %v21178_v12 }
 0x479   : > { %19395 = vmatmul.mubr.f32.vlgmr.msra.gmra.mrb[14].mxu1 %v6396_v44  ;;  %19425 = vmatmul.mubr.f32.vlgmr.msra.gmra.mrb[16].mxu0 %v6850_v43  ;;  %v7229_v48 = vpop.permute.xlu1 %7228  ;;  %v7301_v56 = vsub.f32 %v7230_v49, %v7300_v52 }
 0x47a   : > { %19398 = vmatpush3.xpose.msra.mxu1 %v6407_v47  ;;  %19428 = vmatpush3.xpose.msra.mxu0 %v6861_v45  ;;  %v7232_v51 = vsel %vm2210_vm2, %v7229_v48, 0 }
 0x47b   : > { %19399 = vmatprep.mubr.msk.f32.mxu1 %vm21179_vm1, %v21178_v12  ;;  %19402 = vmatprep.subr.mxu1 %v21178_v12  ;;  %v7235_v55 = vand.u32 4294901760, %v7232_v51  ;;  %v7302_v60 = vand.u32 4294901760, %v7301_v56 }
 0x47c   : > { %19429 = vmatprep.mubr.msk.f32.mxu0 %vm21179_vm1, %v21178_v12  ;;  %19432 = vmatprep.subr.mxu0 %v21178_v12 }
 0x47d   : > { %v7312_v59 = vsub.f32 %v7232_v51, %v7235_v55  ;;  %v7303_v63 = vsub.f32 %v7301_v56, %v7302_v60 }
 0x47f   : > { %v7313_v62 = vand.u32 4294901760, %v7312_v59  ;;  %v7304_v0 = vand.u32 4294901760, %v7303_v63 }
 0x481   : > { %19400 = vmatmul.mubr.f32.vlgmr.msra.gmra.mrb[14].mxu1 %v21974_v29  ;;  %19430 = vmatmul.mubr.f32.vlgmr.msra.gmra.mrb[16].mxu0 %v21972_v28  ;;  %v7314_v50 = vsub.f32 %v7312_v59, %v7313_v62 }
 0x482   : > { %19403 = vmatpush3.xpose.msra.mxu1 %v6404_v35  ;;  %19433 = vmatpush3.xpose.msra.mxu0 %v6858_v34 }
 0x483   : > { %19404 = vmatprep.mubr.msk.f32.mxu1 %vm21179_vm1, %v21178_v12  ;;  %19407 = vmatprep.subr.mxu1 %v21178_v12  ;;  %v7315_v10 = vand.u32 4294901760, %v7314_v50 }
 0x484   : > { %19434 = vmatprep.mubr.msk.f32.mxu0 %vm21179_vm1, %v21178_v12  ;;  %19437 = vmatprep.subr.mxu0 %v21178_v12 }
 0x489   : > { %19405 = vmatmul.mubr.f32.vlgmr.msra.gmra.mrb[14].mxu1 %v6393_v33  ;;  %19435 = vmatmul.mubr.f32.vlgmr.msra.gmra.mrb[16].mxu0 %v6847_v32 }
 0x48a   : > { %19408 = vmatpush3.xpose.msra.mxu1 %v21981_v31  ;;  %19438 = vmatpush3.xpose.msra.mxu0 %v21979_v30 }
 0x48b   : > { %19409 = vmatprep.mubr.msk.f32.mxu1 %vm21179_vm1, %v21178_v12  ;;  %19412 = vmatprep.subr.mxu1 %v21178_v12 }
 0x48c   : > { %19439 = vmatprep.mubr.msk.f32.mxu0 %vm21179_vm1, %v21178_v12  ;;  %19442 = vmatprep.subr.mxu0 %v21178_v12 }
 0x491   : > { %19410 = vmatmul.mubr.f32.vlgmr.msra.gmra.mrb[14].mxu1 %v6394_v37  ;;  %19440 = vmatmul.mubr.f32.vlgmr.msra.gmra.mrb[16].mxu0 %v6848_v36 }
 0x492   : > { %19413 = vmatpush3.xpose.msra.mxu1 %v6405_v38  ;;  %19443 = vmatpush3.xpose.msra.mxu0 %v6859_v61 }
 0x493   : > { %19414 = vmatprep.mubr.msk.f32.mxu1 %vm21179_vm1, %v21178_v12  ;;  %19417 = vmatprep.subr.mxu1 %v21178_v12 }
 0x494   : > { %19444 = vmatprep.mubr.msk.f32.mxu0 %vm21179_vm1, %v21178_v12  ;;  %19447 = vmatprep.subr.mxu0 %v21178_v12 }
 0x499   : > { %19415 = vmatmul.mubr.f32.vlgmr.msra.gmra.mrb[14].mxu1 %v21974_v29  ;;  %19445 = vmatmul.mubr.f32.vlgmr.msra.gmra.mrb[16].mxu0 %v21972_v28 }
 0x49a   : > { %19418 = vmatpush3.xpose.msra.mxu1 %v21981_v31  ;;  %19448 = vmatpush3.xpose.msra.mxu0 %v21979_v30 }
 0x49b   : > { %19419 = vmatprep.mubr.msk.f32.mxu1 %vm21179_vm1, %v21178_v12  ;;  %19449 = vmatprep.mubr.msk.f32.mxu0 %vm21179_vm1, %v21178_v12 }
 0x49c   : > { %19452 = vmatprep.subr.mxu1 %v21178_v12  ;;  %19482 = vmatprep.subr.mxu0 %v21178_v12 }
 0x4a1   : > { %19420 = vmatmul.mubr.f32.vlgmr.msra.gmra.mrb[14].mxu1 %v21974_v29  ;;  %19450 = vmatmul.mubr.f32.vlgmr.msra.gmra.mrb[16].mxu0 %v21972_v28 }
 0x4a2   : > { %19453 = vmatpush3.xpose.msra.mxu1 %v7235_v55  ;;  %19454 = vmatprep.mubr.msk.f32.mxu1 %vm21179_vm1, %v21178_v12 }
 0x4a3   : > { %19457 = vmatprep.subr.mxu1 %v21178_v12  ;;  %19484 = vmatprep.mubr.msk.f32.mxu0 %vm21179_vm1, %v21178_v12 }
 0x4a5   : > { %19455 = vmatmul.mubr.f32.vlgmr.msra.gmra.mrb[16].mxu1 %v7304_v0 }
 0x4a6   : > { %19458 = vmatpush3.xpose.msra.mxu1 %v7315_v10  ;;  %19459 = vmatprep.mubr.msk.f32.mxu1 %vm21179_vm1, %v21178_v12 }
 0x4a7   : > { %19462 = vmatprep.subr.mxu1 %v21178_v12 }
 0x4ad   : > { %19460 = vmatmul.mubr.f32.vlgmr.msra.gmra.mrb[16].mxu1 %v7300_v52 }
 0x4ae   : > { %19463 = vmatpush3.xpose.msra.mxu1 %v7312_v59  ;;  %19464 = vmatprep.mubr.msk.f32.mxu1 %vm21179_vm1, %v21178_v12 }
 0x4af   : > { %19467 = vmatprep.subr.mxu1 %v21178_v12 }
 0x4b5   : > { %19465 = vmatmul.mubr.f32.vlgmr.msra.gmra.mrb[16].mxu1 %v7301_v56 }
 0x4b6   : > { %19468 = vmatpush3.xpose.msra.mxu1 %v7235_v55  ;;  %19469 = vmatprep.mubr.msk.f32.mxu1 %vm21179_vm1, %v21178_v12 }
 0x4b7   : > { %19472 = vmatprep.subr.mxu1 %v21178_v12 }
 0x4bd   : > { %19470 = vmatmul.mubr.f32.vlgmr.msra.gmra.mrb[16].mxu1 %v7302_v60 }
 0x4be   : > { %19473 = vmatpush3.xpose.msra.mxu1 %v7313_v62  ;;  %19474 = vmatprep.mubr.msk.f32.mxu1 %vm21179_vm1, %v21178_v12 }
 0x4bf   : > { %19477 = vmatprep.subr.mxu1 %v21178_v12 }
 0x4c5   : > { %19475 = vmatmul.mubr.f32.vlgmr.msra.gmra.mrb[16].mxu1 %v7300_v52 }
 0x4c6   : > { %19478 = vmatpush3.xpose.msra.mxu1 %v7235_v55  ;;  %19479 = vmatprep.mubr.msk.f32.mxu1 %vm21179_vm1, %v21178_v12 }
 0x4c7   : > { %19512 = vmatprep.subr.mxu1 %v21178_v12 }
 0x4cd   : > { %19480 = vmatmul.mubr.f32.vlgmr.msra.gmra.mrb[16].mxu1 %v7300_v52 }
 0x4ce   : > { %19514 = vmatprep.mubr.msk.f32.mxu1 %vm21179_vm1, %v21178_v12 }
 0x4f0   : > { %v4509_v1 = vpop.f32.mrb[10].mxu0 }
 0x4f1   : > { %5860 = vst.msk [vmem:[#allocation2] sm:$0xff] %vm2210_vm2, %v4509_v1  ;;  %v19271_v2 = vpop.f32.mrb[11].mxu0 }
 0x51c   : > { %v4958_v3 = vpop.f32.mrb[10].mxu1  ;;  %v5407_v4 = vpop.f32.mrb[12].mxu0 }
 0x51d   : > { %5861 = vst.msk [vmem:[#allocation2 + $0x8] sm:$0xff] %vm2210_vm2, %v4958_v3  ;;  %5862 = vst.msk [vmem:[#allocation2 + $0x10] sm:$0xff] %vm2210_vm2, %v5407_v4  ;;  %v19301_v5 = vpop.f32.mrb[11].mxu1  ;;  %v19331_v6 = vpop.f32.mrb[13].mxu0 }
 0x548   : > { %v5856_v7 = vpop.f32.mrb[12].mxu1  ;;  %v6314_v8 = vpop.f32.mrb[14].mxu0 }
 0x549   : > { %5863 = vst.msk [vmem:[#allocation2 + $0x18] sm:$0xff] %vm2210_vm2, %v5856_v7  ;;  %v19361_v9 = vpop.f32.mrb[13].mxu1  ;;  %v19391_v11 = vpop.f32.mrb[15].mxu0  ;;  %v7680_v16 = vsel %vm4019_vm3, %v6314_v8, -inf }
 0x54a   : > { %7681 = vmax.xlane.f32.xlu0 %v7680_v16 }
 0x574   : > { %v6768_v18 = vpop.f32.mrb[14].mxu1  ;;  %v7222_v19 = vpop.f32.mrb[16].mxu0 }
 0x575   : > { %v19421_v20 = vpop.f32.mrb[15].mxu1  ;;  %v19451_v22 = vpop.f32.mrb[17].mxu0  ;;  %v7683_v25 = vsel %vm4019_vm3, %v6768_v18, -inf  ;;  %v7686_v26 = vsel %vm4019_vm3, %v7222_v19, -inf }
 0x576   : > { %7684 = vmax.xlane.f32.xlu1 %v7683_v25  ;;  %7687 = vmax.xlane.f32.xlu0 %v7686_v26 }
 0x5a0   : > { %v7676_v28 = vpop.f32.mrb[16].mxu1 }
 0x5a1   : > { %v19481_v29 = vpop.f32.mrb[17].mxu1  ;;  %v7689_v30 = vsel %vm4019_vm3, %v7676_v28, -inf }
 0x5a2   : > { %7690 = vmax.xlane.f32.xlu0 %v7689_v30 }
 0x5d7   : > { %v7682_v31 = vpop.xlane.xlu0 %7681 }
 0x5d8   : > { %v7692_v32 = vsub.f32 %v6314_v8, %v7682_v31 }
 0x5da   : > { %v7696_v33 = vmul.f32 1.442695, %v7692_v32 }
 0x5dc   : > { %20869 = vpow2.f32 %v7696_v33 }
 0x5e6   : > { %v20870_v34 = vpop.eup %20869 }
 0x5e7   : > { %v7704_v35 = vsel %vm4019_vm3, %v20870_v34, 0.0 }
 0x5e8   : > { %7705 = vadd.xlane.f32.xlu0 %v7704_v35 }
 0x5fe   : > { %7725 = vrot.lane.b32.xlu0 %v21728_v54, %s21180_s15 }
 0x603   : > { %v7685_v36 = vpop.xlane.xlu1 %7684  ;;  %v7688_v40 = vpop.xlane.xlu0 %7687 }
 0x604   : > { %v7693_v37 = vsub.f32 %v6768_v18, %v7685_v36  ;;  %v7694_v44 = vsub.f32 %v7222_v19, %v7688_v40 }
 0x606   : > { %v7698_v61 = vmul.f32 1.442695, %v7693_v37  ;;  %v7700_v45 = vmul.f32 1.442695, %v7694_v44 }
 0x608   : > { %20871 = vpow2.f32 %v7698_v61 }
 0x612   : > { %v22085_v38 = vpop.eup %20871 }
 0x613   : > { %v7707_v39 = vsel %vm4019_vm3, %v22085_v38, 0.0 }
 0x614   : > { %7708 = vadd.xlane.f32.xlu1 %v7707_v39 }
 0x625   : > { %8178 = vrot.lane.b32.xlu1 %v21725_v53, %s21180_s15 }
 0x62f   : > { %v7691_v41 = vpop.xlane.xlu0 %7690 }
 0x630   : > { %v7695_v42 = vsub.f32 %v7676_v28, %v7691_v41 }
 0x632   : > { %v7702_v43 = vmul.f32 1.442695, %v7695_v42 }
 0x634   : > { %20873 = vpow2.f32 %v7702_v43 }
 0x635   : > { %20875 = vpow2.f32 %v7700_v45 }
 0x63e   : > { %v22091_v47 = vpop.eup %20873 }
 0x63f   : > { %v7713_v46 = vsel %vm4019_vm3, %v22091_v47, 0.0  ;;  %v22095_v48 = vpop.eup %20875 }
 0x640   : > { %7714 = vadd.xlane.f32.xlu0 %v7713_v46  ;;  %v7710_v49 = vsel %vm4019_vm3, %v22095_v48, 0.0 }
 0x649   : > { %7711 = vadd.xlane.f32.xlu1 %v7710_v49 }
 0x656   : > { %8631 = vrot.lane.b32.xlu0 %v21736_v58, %s21180_s15 }
 0x65a   : > { %9084 = vrot.lane.b32.xlu1 %v21733_v57, %s21180_s15  ;;  %9559 = vrot.lane.b32.xlu0 %v21658_v17, %s21181_s17  ;;  %s22953_s15 = scalar_lea.hbm %s23065_s9, %s18376_s29 }
 0x65e   : > { %9557 = vrot.lane.b32.xlu1 %v21654_v15, %s21181_s17  ;;  %10465 = vrot.lane.b32.xlu0 %v21671_v24, %s21181_s17 }
 0x662   : > { %10011 = vrot.lane.b32.xlu1 %v21650_v13, %s21181_s17  ;;  %10467 = vrot.lane.b32.xlu0 %v21676_v27, %s21181_s17 }
 0x666   : > { %10013 = vrot.lane.b32.xlu1 %v21652_v14, %s21181_s17 }
 0x66a   : > { %10919 = vrot.lane.b32.xlu1 %v21666_v21, %s21181_s17 }
 0x66e   : > { %10921 = vrot.lane.b32.xlu1 %v21669_v23, %s21181_s17 }
 0x675   : > { %v7706_v51 = vpop.xlane.xlu0 %7705 }
 0x676   : > { %20877 = vrcp.f32 %v7706_v51 }
 0x679   : > { %v7726_v52 = vpop.permute.xlu0 %7725 }
 0x67a   : > { %v7732_v55 = vand.u32 4294901760, %v7726_v52 }
 0x67c   : > { %19483 = vmatpush3.msra.mxu0 %v7732_v55  ;;  %v7809_v60 = vsub.f32 %v7726_v52, %v7732_v55 }
 0x67d   : > { %19487 = vmatprep.subr.mxu0 %v21178_v12 }
 0x67e   : > { %v7810_v50 = vand.u32 4294901760, %v7809_v60 }
 0x680   : > { %v20878_v56 = vpop.eup %20877  ;;  %v7811_v1 = vsub.f32 %v7809_v60, %v7810_v50 }
 0x681   : > { %v7717_v59 = vmul.f32 %v20878_v56, %v20870_v34 }
 0x682   : > { %v7812_v4 = vand.u32 4294901760, %v7811_v1 }
 0x683   : > { %v7729_v62 = vsel %vm4019_vm3, %v7717_v59, 0 }
 0x684   : > { %v7797_v63 = vand.u32 4294901760, %v7729_v62 }
 0x686   : > { %v7798_v0 = vsub.f32 %v7729_v62, %v7797_v63 }
 0x688   : > { %v7799_v10 = vand.u32 4294901760, %v7798_v0 }
 0x68a   : > { %v7800_v2 = vsub.f32 %v7798_v0, %v7799_v10 }
 0x68c   : > { %v7801_v3 = vand.u32 4294901760, %v7800_v2 }
 0x68e   : > { %19485 = vmatmul.mubr.f32.vlgmr.msra.gmra.mrb[18].mxu0 %v7801_v3 }
 0x68f   : > { %19488 = vmatpush3.msra.mxu0 %v7812_v4  ;;  %19489 = vmatprep.mubr.msk.f32.mxu0 %vm21179_vm1, %v21178_v12 }
 0x690   : > { %19492 = vmatprep.subr.mxu0 %v21178_v12 }
 0x696   : > { %19490 = vmatmul.mubr.f32.vlgmr.msra.gmra.mrb[18].mxu0 %v7797_v63 }
 0x697   : > { %19493 = vmatpush3.msra.mxu0 %v7809_v60  ;;  %19494 = vmatprep.mubr.msk.f32.mxu0 %vm21179_vm1, %v21178_v12 }
 0x698   : > { %19497 = vmatprep.subr.mxu0 %v21178_v12 }
 0x69e   : > { %19495 = vmatmul.mubr.f32.vlgmr.msra.gmra.mrb[18].mxu0 %v7798_v0 }
 0x69f   : > { %19498 = vmatpush3.msra.mxu0 %v7732_v55  ;;  %19499 = vmatprep.mubr.msk.f32.mxu0 %vm21179_vm1, %v21178_v12 }
 0x6a0   : > { %19502 = vmatprep.subr.mxu0 %v21178_v12 }
 0x6a1   : > { %v7709_v5 = vpop.xlane.xlu1 %7708 }
 0x6a2   : > { %20879 = vrcp.f32 %v7709_v5 }
 0x6a5   : > { %v8179_v6 = vpop.permute.xlu1 %8178 }
 0x6a6   : > { %v8185_v7 = vand.u32 4294901760, %v8179_v6  ;;  %19500 = vmatmul.mubr.f32.vlgmr.msra.gmra.mrb[18].mxu0 %v7799_v10 }
 0x6a7   : > { %19503 = vmatpush3.msra.mxu0 %v7810_v50  ;;  %19504 = vmatprep.mubr.msk.f32.mxu0 %vm21179_vm1, %v21178_v12 }
 0x6a8   : > { %19513 = vmatpush3.msra.mxu1 %v8185_v7  ;;  %19507 = vmatprep.subr.mxu0 %v21178_v12  ;;  %v8262_v11 = vsub.f32 %v8179_v6, %v8185_v7 }
 0x6a9   : > { %19517 = vmatprep.subr.mxu1 %v21178_v12 }
 0x6aa   : > { %v8263_v19 = vand.u32 4294901760, %v8262_v11 }
 0x6ac   : > { %v20880_v8 = vpop.eup %20879  ;;  %v8264_v25 = vsub.f32 %v8262_v11, %v8263_v19 }
 0x6ad   : > { %v7719_v9 = vmul.f32 %v20880_v8, %v22085_v38 }
 0x6ae   : > { %19505 = vmatmul.mubr.f32.vlgmr.msra.gmra.mrb[18].mxu0 %v7797_v63  ;;  %v8265_v29 = vand.u32 4294901760, %v8264_v25 }
 0x6af   : > { %19508 = vmatpush3.msra.mxu0 %v7732_v55  ;;  %19509 = vmatprep.mubr.msk.f32.mxu0 %vm21179_vm1, %v21178_v12  ;;  %v8182_v16 = vsel %vm4019_vm3, %v7719_v9, 0 }
 0x6b0   : > { %v8250_v18 = vand.u32 4294901760, %v8182_v16  ;;  %19542 = vmatprep.subr.mxu0 %v21178_v12 }
 0x6b2   : > { %v8251_v20 = vsub.f32 %v8182_v16, %v8250_v18 }
 0x6b4   : > { %v8252_v22 = vand.u32 4294901760, %v8251_v20 }
 0x6b6   : > { %19510 = vmatmul.mubr.f32.vlgmr.msra.gmra.mrb[18].mxu0 %v7797_v63  ;;  %v8253_v26 = vsub.f32 %v8251_v20, %v8252_v22 }
 0x6b7   : > { %19544 = vmatprep.mubr.msk.f32.mxu0 %vm21179_vm1, %v21178_v12 }
 0x6b8   : > { %v8254_v28 = vand.u32 4294901760, %v8253_v26 }
 0x6ba   : > { %19515 = vmatmul.mubr.f32.vlgmr.msra.gmra.mrb[18].mxu1 %v8254_v28 }
 0x6bb   : > { %19518 = vmatpush3.msra.mxu1 %v8265_v29  ;;  %19519 = vmatprep.mubr.msk.f32.mxu1 %vm21179_vm1, %v21178_v12 }
 0x6bc   : > { %19522 = vmatprep.subr.mxu1 %v21178_v12 }
 0x6c2   : > { %19520 = vmatmul.mubr.f32.vlgmr.msra.gmra.mrb[18].mxu1 %v8250_v18 }
 0x6c3   : > { %19523 = vmatpush3.msra.mxu1 %v8262_v11  ;;  %19524 = vmatprep.mubr.msk.f32.mxu1 %vm21179_vm1, %v21178_v12 }
 0x6c4   : > { %19527 = vmatprep.subr.mxu1 %v21178_v12 }
 0x6ca   : > { %19525 = vmatmul.mubr.f32.vlgmr.msra.gmra.mrb[18].mxu1 %v8251_v20 }
 0x6cb   : > { %19528 = vmatpush3.msra.mxu1 %v8185_v7  ;;  %19529 = vmatprep.mubr.msk.f32.mxu1 %vm21179_vm1, %v21178_v12 }
 0x6cc   : > { %19532 = vmatprep.subr.mxu1 %v21178_v12 }
 0x6cd   : > { %v7715_v30 = vpop.xlane.xlu0 %7714 }
 0x6ce   : > { %20881 = vrcp.f32 %v7715_v30 }
 0x6d1   : > { %v8632_v31 = vpop.permute.xlu0 %8631 }
 0x6d2   : > { %v22150_v32 = vand.u32 4294901760, %v8632_v31  ;;  %19530 = vmatmul.mubr.f32.vlgmr.msra.gmra.mrb[18].mxu1 %v8252_v22 }
 0x6d3   : > { %19533 = vmatpush3.msra.mxu1 %v8263_v19  ;;  %19534 = vmatprep.mubr.msk.f32.mxu1 %vm21179_vm1, %v21178_v12 }
 0x6d4   : > { %19543 = vmatpush3.msra.mxu0 %v22150_v32  ;;  %19537 = vmatprep.subr.mxu1 %v21178_v12  ;;  %v8715_v46 = vsub.f32 %v8632_v31, %v22150_v32 }
 0x6d5   : > { %19547 = vmatprep.subr.mxu0 %v21178_v12 }
 0x6d6   : > { %v7712_v33 = vpop.xlane.xlu1 %7711  ;;  %v8716_v56 = vand.u32 4294901760, %v8715_v46 }
 0x6d7   : > { %20883 = vrcp.f32 %v7712_v33 }
 0x6d8   : > { %v20882_v34 = vpop.eup %20881  ;;  %v8717_v60 = vsub.f32 %v8715_v46, %v8716_v56 }
 0x6d9   : > { %v7723_v35 = vmul.f32 %v20882_v34, %v22091_v47 }
 0x6da   : > { %19535 = vmatmul.mubr.f32.vlgmr.msra.gmra.mrb[18].mxu1 %v8250_v18  ;;  %v9085_v36 = vpop.permute.xlu1 %9084  ;;  %v8718_v50 = vand.u32 4294901760, %v8717_v60 }
 0x6db   : > { %19538 = vmatpush3.msra.mxu1 %v8185_v7  ;;  %v22158_v37 = vand.u32 4294901760, %v9085_v36  ;;  %19539 = vmatprep.mubr.msk.f32.mxu1 %vm21179_vm1, %v21178_v12  ;;  %v9088_v61 = vsel %vm4019_vm3, %v7723_v35, 0  ;;  %v9560_v7 = vpop.permute.xlu0 %9559 }
 0x6dc   : > { %19572 = vmatprep.subr.mxu1 %v21178_v12  ;;  %v22164_v38 = vand.u32 4294901760, %v9088_v61  ;;  %v9563_v11 = vsel %vm2210_vm2, %v9560_v7, 0 }
 0x6dd   : > { %v9168_v39 = vsub.f32 %v9085_v36, %v22158_v37  ;;  %v22229_v20 = vand.u32 4294901760, %v9563_v11 }
 0x6de   : > { %v9157_v40 = vsub.f32 %v9088_v61, %v22164_v38  ;;  %v9558_v0 = vpop.permute.xlu1 %9557 }
 0x6df   : > { %v9169_v41 = vand.u32 4294901760, %v9168_v39  ;;  %v9561_v9 = vsel %vm2210_vm2, %v9558_v0, 0  ;;  %v22238_v28 = vsub.f32 %v9563_v11, %v22229_v20 }
 0x6e0   : > { %v9158_v42 = vand.u32 4294901760, %v9157_v40  ;;  %v22226_v19 = vand.u32 4294901760, %v9561_v9 }
 0x6e1   : > { %v20884_v43 = vpop.eup %20883  ;;  %v9170_v44 = vsub.f32 %v9168_v39, %v9169_v41  ;;  %v9644_v33 = vand.u32 4294901760, %v22238_v28 }
 0x6e2   : > { %v7721_v45 = vmul.f32 %v20884_v43, %v22095_v48  ;;  %19540 = vmatmul.mubr.f32.vlgmr.msra.gmra.mrb[18].mxu1 %v8250_v18  ;;  %v9159_v47 = vsub.f32 %v9157_v40, %v9158_v42  ;;  %v10012_v10 = vpop.permute.xlu1 %10011  ;;  %v22234_v26 = vsub.f32 %v9561_v9, %v22226_v19 }
 0x6e3   : > { %v9171_v49 = vand.u32 4294901760, %v9170_v44  ;;  %19573 = vmatpush3.msra.mxu1 %v22158_v37  ;;  %19574 = vmatprep.mubr.msk.f32.mxu1 %vm21179_vm1, %v21178_v12  ;;  %v10015_v2 = vsel %vm2210_vm2, %v10012_v10, 0 }
 0x6e4   : > { %19577 = vmatprep.subr.mxu1 %v21178_v12  ;;  %v9160_v51 = vand.u32 4294901760, %v9159_v47  ;;  %v8635_v52 = vsel %vm4019_vm3, %v7721_v45, 0  ;;  %v22200_v4 = vand.u32 4294901760, %v10015_v2  ;;  %v9633_v31 = vand.u32 4294901760, %v22234_v26 }
 0x6e5   : > { %v22175_v55 = vand.u32 4294901760, %v8635_v52 }
 0x6e6   : > { %19575 = vmatmul.mubr.f32.vlgmr.msra.gmra.mrb[20].mxu1 %v9160_v51  ;;  %v10014_v1 = vpop.permute.xlu1 %10013  ;;  %v22210_v6 = vsub.f32 %v10015_v2, %v22200_v4  ;;  %v9634_v34 = vsub.f32 %v22234_v26, %v9633_v31 }
 0x6e7   : > { %19578 = vmatpush3.msra.mxu1 %v9171_v49  ;;  %19579 = vmatprep.mubr.msk.f32.mxu1 %vm21179_vm1, %v21178_v12  ;;  %v8704_v48 = vsub.f32 %v8635_v52, %v22175_v55  ;;  %v10017_v3 = vsel %vm2210_vm2, %v10014_v1, 0 }
 0x6e8   : > { %19582 = vmatprep.subr.mxu1 %v21178_v12  ;;  %v22203_v5 = vand.u32 4294901760, %v10017_v3  ;;  %v10087_v16 = vand.u32 4294901760, %v22210_v6  ;;  %v9635_v35 = vand.u32 4294901760, %v9634_v34 }
 0x6e9   : > { %v8705_v59 = vand.u32 4294901760, %v8704_v48 }
 0x6ea   : > { %v22213_v8 = vsub.f32 %v10017_v3, %v22203_v5  ;;  %v10088_v22 = vsub.f32 %v22210_v6, %v10087_v16 }
 0x6eb   : > { %v8706_v62 = vsub.f32 %v8704_v48, %v8705_v59 }
 0x6ec   : > { %v10098_v18 = vand.u32 4294901760, %v22213_v8  ;;  %v10089_v29 = vand.u32 4294901760, %v10088_v22 }
 0x6ed   : > { %v8707_v63 = vand.u32 4294901760, %v8706_v62 }
 0x6ee   : > { %19580 = vmatmul.mubr.f32.vlgmr.msra.gmra.mrb[20].mxu1 %v22164_v38  ;;  %v10099_v25 = vsub.f32 %v22213_v8, %v10098_v18 }
 0x6ef   : > { %19583 = vmatpush3.msra.mxu1 %v9168_v39  ;;  %19584 = vmatprep.mubr.msk.f32.mxu1 %vm21179_vm1, %v21178_v12 }
 0x6f0   : > { %19545 = vmatmul.mubr.f32.vlgmr.msra.gmra.mrb[20].mxu0 %v8707_v63  ;;  %19587 = vmatprep.subr.mxu1 %v21178_v12  ;;  %v10100_v30 = vand.u32 4294901760, %v10099_v25 }
 0x6f1   : > { %19548 = vmatpush3.msra.mxu0 %v8718_v50  ;;  %19549 = vmatprep.mubr.msk.f32.mxu0 %vm21179_vm1, %v21178_v12 }
 0x6f2   : > { %19552 = vmatprep.subr.mxu0 %v21178_v12 }
 0x6f6   : > { %19585 = vmatmul.mubr.f32.vlgmr.msra.gmra.mrb[20].mxu1 %v9157_v40  ;;  %v10466_v40 = vpop.permute.xlu0 %10465 }
 0x6f7   : > { %19588 = vmatpush3.msra.mxu1 %v22158_v37  ;;  %19589 = vmatprep.mubr.msk.f32.mxu1 %vm21179_vm1, %v21178_v12  ;;  %v10469_v47 = vsel %vm2210_vm2, %v10466_v40, 0 }
 0x6f8   : > { %19550 = vmatmul.mubr.f32.vlgmr.msra.gmra.mrb[20].mxu0 %v22175_v55  ;;  %19592 = vmatprep.subr.mxu1 %v21178_v12  ;;  %v22304_v52 = vand.u32 4294901760, %v10469_v47 }
 0x6f9   : > { %19553 = vmatpush3.msra.mxu0 %v8715_v46  ;;  %19554 = vmatprep.mubr.msk.f32.mxu0 %vm21179_vm1, %v21178_v12 }
 0x6fa   : > { %19557 = vmatprep.subr.mxu0 %v21178_v12  ;;  %v10468_v44 = vpop.permute.xlu0 %10467 }
 0x6fb   : > { %v10471_v46 = vsel %vm2210_vm2, %v10468_v44, 0 }
 0x6fe   : > { %19590 = vmatmul.mubr.f32.vlgmr.msra.gmra.mrb[20].mxu1 %v9158_v42 }
 0x6ff   : > { %19593 = vmatpush3.msra.mxu1 %v9169_v41  ;;  %19594 = vmatprep.mubr.msk.f32.mxu1 %vm21179_vm1, %v21178_v12 }
 0x700   : > { %19555 = vmatmul.mubr.f32.vlgmr.msra.gmra.mrb[20].mxu0 %v8704_v48  ;;  %19597 = vmatprep.subr.mxu1 %v21178_v12 }
 0x701   : > { %19558 = vmatpush3.msra.mxu0 %v22150_v32  ;;  %19559 = vmatprep.mubr.msk.f32.mxu0 %vm21179_vm1, %v21178_v12 }
 0x702   : > { %19562 = vmatprep.subr.mxu0 %v21178_v12 }
 0x706   : > { %19595 = vmatmul.mubr.f32.vlgmr.msra.gmra.mrb[20].mxu1 %v22164_v38 }
 0x707   : > { %19598 = vmatpush3.msra.mxu1 %v22158_v37  ;;  %19599 = vmatprep.mubr.msk.f32.mxu1 %vm21179_vm1, %v21178_v12  ;;  %v10920_v37 = vpop.permute.xlu1 %10919 }
 0x708   : > { %19560 = vmatmul.mubr.f32.vlgmr.msra.gmra.mrb[20].mxu0 %v8705_v59  ;;  %19632 = vmatprep.subr.mxu1 %v21178_v12  ;;  %v10540_v59 = vsub.f32 %v10469_v47, %v22304_v52 }
 0x709   : > { %19563 = vmatpush3.msra.mxu0 %v8716_v56  ;;  %19564 = vmatprep.mubr.msk.f32.mxu0 %vm21179_vm1, %v21178_v12 }
 0x70a   : > { %19567 = vmatprep.subr.mxu0 %v21178_v12  ;;  %v10541_v50 = vand.u32 4294901760, %v10540_v59 }
 0x70b   : > { %v10922_v61 = vpop.permute.xlu1 %10921 }
 0x70c   : > { %v10925_v39 = vsel %vm2210_vm2, %v10922_v61, 0  ;;  %v10542_v10 = vsub.f32 %v10540_v59, %v10541_v50 }
 0x70d   : > { %v22287_v42 = vand.u32 4294901760, %v10925_v39 }
 0x70e   : > { %19600 = vmatmul.mubr.f32.vlgmr.msra.gmra.mrb[20].mxu1 %v22164_v38  ;;  %v10923_v38 = vsel %vm2210_vm2, %v10920_v37, 0  ;;  %v10543_v2 = vand.u32 4294901760, %v10542_v10 }
 0x70f   : > { %19633 = vmatpush3.xpose.msra.mxu1 %v22203_v5  ;;  %19634 = vmatprep.mubr.msk.f32.mxu1 %vm21179_vm1, %v21178_v12  ;;  %v22283_v41 = vand.u32 4294901760, %v10923_v38  ;;  %v11005_v45 = vsub.f32 %v10925_v39, %v22287_v42 }
 0x710   : > { %19565 = vmatmul.mubr.f32.vlgmr.msra.gmra.mrb[20].mxu0 %v22175_v55  ;;  %19637 = vmatprep.subr.mxu1 %v21178_v12 }
 0x711   : > { %19568 = vmatpush3.msra.mxu0 %v22150_v32  ;;  %19569 = vmatprep.mubr.msk.f32.mxu0 %vm21179_vm1, %v21178_v12  ;;  %v9645_v32 = vsub.f32 %v22238_v28, %v9644_v33  ;;  %v10994_v43 = vsub.f32 %v10923_v38, %v22283_v41  ;;  %v11006_v51 = vand.u32 4294901760, %v11005_v45 }
 0x712   : > { %19635 = vmatmul.mubr.f32.vlgmr.msra.gmra.mrb[22].mxu1 %v10089_v29  ;;  %19602 = vmatprep.subr.mxu0 %v21178_v12 }
 0x713   : > { %19638 = vmatpush3.xpose.msra.mxu1 %v10100_v30  ;;  %19639 = vmatprep.mubr.msk.f32.mxu1 %vm21179_vm1, %v21178_v12  ;;  %v9646_v36 = vand.u32 4294901760, %v9645_v32  ;;  %v10995_v49 = vand.u32 4294901760, %v10994_v43  ;;  %v11007_v48 = vsub.f32 %v11005_v45, %v11006_v51 }
 0x714   : > { %19642 = vmatprep.subr.mxu1 %v21178_v12 }
 0x715   : > { %v10996_v56 = vsub.f32 %v10994_v43, %v10995_v49  ;;  %v11008_v63 = vand.u32 4294901760, %v11007_v48 }
 0x717   : > { %v10997_v62 = vand.u32 4294901760, %v10996_v56 }
 0x718   : > { %19570 = vmatmul.mubr.f32.vlgmr.msra.gmra.mrb[20].mxu0 %v22175_v55  ;;  %v22307_v55 = vand.u32 4294901760, %v10471_v46 }
 0x719   : > { %19603 = vmatpush3.xpose.msra.mxu0 %v22229_v20  ;;  %19604 = vmatprep.mubr.msk.f32.mxu0 %vm21179_vm1, %v21178_v12 }
 0x71a   : > { %19607 = vmatprep.subr.mxu0 %v21178_v12  ;;  %19640 = vmatmul.mubr.f32.vlgmr.msra.gmra.mrb[22].mxu1 %v22200_v4  ;;  %v10551_v60 = vsub.f32 %v10471_v46, %v22307_v55 }
 0x71b   : > { %19643 = vmatpush3.xpose.msra.mxu1 %v22213_v8  ;;  %19644 = vmatprep.mubr.msk.f32.mxu1 %vm21179_vm1, %v21178_v12 }
 0x71c   : > { %19605 = vmatmul.mubr.f32.vlgmr.msra.gmra.mrb[22].mxu0 %v9635_v35  ;;  %19647 = vmatprep.subr.mxu1 %v21178_v12  ;;  %v10552_v0 = vand.u32 4294901760, %v10551_v60 }
 0x71d   : > { %19608 = vmatpush3.xpose.msra.mxu0 %v9646_v36  ;;  %19609 = vmatprep.mubr.msk.f32.mxu0 %vm21179_vm1, %v21178_v12 }
 0x71e   : > { %19612 = vmatprep.subr.mxu0 %v21178_v12  ;;  %v10553_v1 = vsub.f32 %v10551_v60, %v10552_v0 }
 0x720   : > { %v10554_v3 = vand.u32 4294901760, %v10553_v1 }
 0x722   : > { %19645 = vmatmul.mubr.f32.vlgmr.msra.gmra.mrb[22].mxu1 %v22210_v6 }
 0x723   : > { %19648 = vmatpush3.xpose.msra.mxu1 %v22203_v5  ;;  %19649 = vmatprep.mubr.msk.f32.mxu1 %vm21179_vm1, %v21178_v12 }
 0x724   : > { %19610 = vmatmul.mubr.f32.vlgmr.msra.gmra.mrb[22].mxu0 %v22226_v19  ;;  %19652 = vmatprep.subr.mxu1 %v21178_v12 }
 0x725   : > { %19613 = vmatpush3.xpose.msra.mxu0 %v22238_v28  ;;  %19614 = vmatprep.mubr.msk.f32.mxu0 %vm21179_vm1, %v21178_v12 }
 0x726   : > { %19617 = vmatprep.subr.mxu0 %v21178_v12 }
 0x72a   : > { %19650 = vmatmul.mubr.f32.vlgmr.msra.gmra.mrb[22].mxu1 %v10087_v16 }
 0x72b   : > { %19653 = vmatpush3.xpose.msra.mxu1 %v10098_v18  ;;  %19654 = vmatprep.mubr.msk.f32.mxu1 %vm21179_vm1, %v21178_v12 }
 0x72c   : > { %19615 = vmatmul.mubr.f32.vlgmr.msra.gmra.mrb[22].mxu0 %v22234_v26  ;;  %19657 = vmatprep.subr.mxu1 %v21178_v12 }
 0x72d   : > { %19618 = vmatpush3.xpose.msra.mxu0 %v22229_v20  ;;  %19619 = vmatprep.mubr.msk.f32.mxu0 %vm21179_vm1, %v21178_v12 }
 0x72e   : > { %19622 = vmatprep.subr.mxu0 %v21178_v12 }
 0x732   : > { %19655 = vmatmul.mubr.f32.vlgmr.msra.gmra.mrb[22].mxu1 %v22200_v4 }
 0x733   : > { %19658 = vmatpush3.xpose.msra.mxu1 %v22203_v5  ;;  %19659 = vmatprep.mubr.msk.f32.mxu1 %vm21179_vm1, %v21178_v12 }
 0x734   : > { %19620 = vmatmul.mubr.f32.vlgmr.msra.gmra.mrb[22].mxu0 %v9633_v31  ;;  %19692 = vmatprep.subr.mxu1 %v21178_v12 }
 0x735   : > { %19623 = vmatpush3.xpose.msra.mxu0 %v9644_v33  ;;  %19624 = vmatprep.mubr.msk.f32.mxu0 %vm21179_vm1, %v21178_v12 }
 0x736   : > { %19627 = vmatprep.subr.mxu0 %v21178_v12 }
 0x73a   : > { %19660 = vmatmul.mubr.f32.vlgmr.msra.gmra.mrb[22].mxu1 %v22200_v4 }
 0x73b   : > { %19693 = vmatpush3.xpose.msra.mxu1 %v22287_v42  ;;  %19694 = vmatprep.mubr.msk.f32.mxu1 %vm21179_vm1, %v21178_v12 }
 0x73c   : > { %19625 = vmatmul.mubr.f32.vlgmr.msra.gmra.mrb[22].mxu0 %v22226_v19  ;;  %19697 = vmatprep.subr.mxu1 %v21178_v12 }
 0x73d   : > { %19628 = vmatpush3.xpose.msra.mxu0 %v22229_v20  ;;  %19629 = vmatprep.mubr.msk.f32.mxu0 %vm21179_vm1, %v21178_v12 }
 0x73e   : > { %19695 = vmatmul.mubr.f32.vlgmr.msra.gmra.mrb[24].mxu1 %v10997_v62  ;;  %19662 = vmatprep.subr.mxu0 %v21178_v12 }
 0x73f   : > { %19698 = vmatpush3.xpose.msra.mxu1 %v11008_v63  ;;  %19699 = vmatprep.mubr.msk.f32.mxu1 %vm21179_vm1, %v21178_v12 }
 0x740   : > { %19702 = vmatprep.subr.mxu1 %v21178_v12 }
 0x744   : > { %19630 = vmatmul.mubr.f32.vlgmr.msra.gmra.mrb[22].mxu0 %v22226_v19 }
 0x745   : > { %19663 = vmatpush3.xpose.msra.mxu0 %v22307_v55  ;;  %19664 = vmatprep.mubr.msk.f32.mxu0 %vm21179_vm1, %v21178_v12 }
 0x746   : > { %19667 = vmatprep.subr.mxu0 %v21178_v12  ;;  %19700 = vmatmul.mubr.f32.vlgmr.msra.gmra.mrb[24].mxu1 %v22283_v41 }
 0x747   : > { %19703 = vmatpush3.xpose.msra.mxu1 %v11005_v45  ;;  %19704 = vmatprep.mubr.msk.f32.mxu1 %vm21179_vm1, %v21178_v12 }
 0x748   : > { %19665 = vmatmul.mubr.f32.vlgmr.msra.gmra.mrb[24].mxu0 %v10543_v2  ;;  %19707 = vmatprep.subr.mxu1 %v21178_v12 }
 0x749   : > { %19668 = vmatpush3.xpose.msra.mxu0 %v10554_v3  ;;  %19669 = vmatprep.mubr.msk.f32.mxu0 %vm21179_vm1, %v21178_v12 }
 0x74a   : > { %19672 = vmatprep.subr.mxu0 %v21178_v12 }
 0x74e   : > { %19705 = vmatmul.mubr.f32.vlgmr.msra.gmra.mrb[24].mxu1 %v10994_v43 }
 0x74f   : > { %19708 = vmatpush3.xpose.msra.mxu1 %v22287_v42  ;;  %19709 = vmatprep.mubr.msk.f32.mxu1 %vm21179_vm1, %v21178_v12 }
 0x750   : > { %19670 = vmatmul.mubr.f32.vlgmr.msra.gmra.mrb[24].mxu0 %v22304_v52  ;;  %19712 = vmatprep.subr.mxu1 %v21178_v12 }
 0x751   : > { %19673 = vmatpush3.xpose.msra.mxu0 %v10551_v60  ;;  %19674 = vmatprep.mubr.msk.f32.mxu0 %vm21179_vm1, %v21178_v12 }
 0x752   : > { %19677 = vmatprep.subr.mxu0 %v21178_v12 }
 0x756   : > { %19710 = vmatmul.mubr.f32.vlgmr.msra.gmra.mrb[24].mxu1 %v10995_v49 }
 0x757   : > { %19713 = vmatpush3.xpose.msra.mxu1 %v11006_v51  ;;  %19714 = vmatprep.mubr.msk.f32.mxu1 %vm21179_vm1, %v21178_v12 }
 0x758   : > { %19675 = vmatmul.mubr.f32.vlgmr.msra.gmra.mrb[24].mxu0 %v10540_v59  ;;  %19717 = vmatprep.subr.mxu1 %v21178_v12 }
 0x759   : > { %19678 = vmatpush3.xpose.msra.mxu0 %v22307_v55  ;;  %19679 = vmatprep.mubr.msk.f32.mxu0 %vm21179_vm1, %v21178_v12 }
 0x75a   : > { %19682 = vmatprep.subr.mxu0 %v21178_v12 }
 0x75e   : > { %19715 = vmatmul.mubr.f32.vlgmr.msra.gmra.mrb[24].mxu1 %v22283_v41 }
 0x75f   : > { %19718 = vmatpush3.xpose.msra.mxu1 %v22287_v42  ;;  %19719 = vmatprep.mubr.msk.f32.mxu1 %vm21179_vm1, %v21178_v12 }
 0x760   : > { %19680 = vmatmul.mubr.f32.vlgmr.msra.gmra.mrb[24].mxu0 %v10541_v50  ;;  %19752 = vmatprep.subr.mxu1 %v21178_v12 }
 0x761   : > { %19683 = vmatpush3.xpose.msra.mxu0 %v10552_v0  ;;  %19684 = vmatprep.mubr.msk.f32.mxu0 %vm21179_vm1, %v21178_v12 }
 0x762   : > { %19687 = vmatprep.subr.mxu0 %v21178_v12 }
 0x766   : > { %19720 = vmatmul.mubr.f32.vlgmr.msra.gmra.mrb[24].mxu1 %v22283_v41 }
 0x767   : > { %19754 = vmatprep.mubr.msk.f32.mxu1 %vm21179_vm1, %v21178_v12 }
 0x768   : > { %19685 = vmatmul.mubr.f32.vlgmr.msra.gmra.mrb[24].mxu0 %v22304_v52 }
 0x769   : > { %19688 = vmatpush3.xpose.msra.mxu0 %v22307_v55  ;;  %19689 = vmatprep.mubr.msk.f32.mxu0 %vm21179_vm1, %v21178_v12 }
 0x76a   : > { %19722 = vmatprep.subr.mxu0 %v21178_v12 }
 0x770   : > { %19690 = vmatmul.mubr.f32.vlgmr.msra.gmra.mrb[24].mxu0 %v22304_v52 }
 0x771   : > { %19724 = vmatprep.mubr.msk.f32.mxu0 %vm21179_vm1, %v21178_v12 }
 0x789   : > { %v22370_v4 = vpop.f32.mrb[18].mxu0 }
 0x78a   : > { %v19511_v5 = vpop.f32.mrb[19].mxu0 }
 0x7b5   : > { %v22372_v6 = vpop.f32.mrb[18].mxu1 }
 0x7b6   : > { %v19541_v7 = vpop.f32.mrb[19].mxu1 }
 0x7e1   : > { %v22374_v8 = vpop.f32.mrb[20].mxu1 }
 0x7e2   : > { %v19601_v9 = vpop.f32.mrb[21].mxu1 }
 0x7eb   : > { %v22376_v11 = vpop.f32.mrb[20].mxu0 }
 0x7ec   : > { %v19571_v16 = vpop.f32.mrb[21].mxu0 }
 0x80d   : > { %v10461_v18 = vpop.f32.mrb[22].mxu1 }
 0x80e   : > { %v19661_v19 = vpop.f32.mrb[23].mxu1  ;;  %v11376_v20 = vsel %vm4019_vm3, %v10461_v18, -inf }
 0x80f   : > { %11377 = vmax.xlane.f32.xlu1 %v11376_v20 }
 0x817   : > { %v10007_v22 = vpop.f32.mrb[22].mxu0 }
 0x818   : > { %v19631_v25 = vpop.f32.mrb[23].mxu0  ;;  %v11373_v26 = vsel %vm4019_vm3, %v10007_v22, -inf }
 0x819   : > { %11374 = vmax.xlane.f32.xlu0 %v11373_v26 }
 0x839   : > { %v11369_v28 = vpop.f32.mrb[24].mxu1 }
 0x83a   : > { %v19721_v29 = vpop.f32.mrb[25].mxu1  ;;  %v11382_v34 = vsel %vm4019_vm3, %v11369_v28, -inf }
 0x843   : > { %v10915_v30 = vpop.f32.mrb[24].mxu0 }
 0x844   : > { %v19691_v31 = vpop.f32.mrb[25].mxu0  ;;  %v11379_v33 = vsel %vm4019_vm3, %v10915_v30, -inf }
 0x845   : > { %11380 = vmax.xlane.f32.xlu0 %v11379_v33 }
 0x849   : > { %11383 = vmax.xlane.f32.xlu0 %v11382_v34 }
 0x89c   : > { %v11378_v32 = vpop.xlane.xlu1 %11377 }
 0x89d   : > { %v11386_v35 = vsub.f32 %v10461_v18, %v11378_v32 }
 0x89f   : > { %v11391_v36 = vmul.f32 1.442695, %v11386_v35 }
 0x8a1   : > { %20885 = vpow2.f32 %v11391_v36 }
 0x8a6   : > { %v11375_v37 = vpop.xlane.xlu0 %11374 }
 0x8a7   : > { %v11385_v61 = vsub.f32 %v10007_v22, %v11375_v37 }
 0x8a9   : > { %v11389_v38 = vmul.f32 1.442695, %v11385_v61 }
 0x8ab   : > { %v20886_v39 = vpop.eup %20885  ;;  %20887 = vpow2.f32 %v11389_v38 }
 0x8ac   : > { %v11400_v40 = vsel %vm4019_vm3, %v20886_v39, 0.0 }
 0x8ad   : > { %11401 = vadd.xlane.f32.xlu1 %v11400_v40 }
 0x8b5   : > { %v20888_v41 = vpop.eup %20887 }
 0x8b6   : > { %v11397_v42 = vsel %vm4019_vm3, %v20888_v41, 0.0 }
 0x8b7   : > { %11398 = vadd.xlane.f32.xlu0 %v11397_v42 }
 0x8be   : > { %11869 = vrot.lane.b32.xlu1 %v21725_v53, %s21181_s17 }
 0x8cd   : > { %11417 = vrot.lane.b32.xlu0 %v21728_v54, %s21181_s17 }
 0x8d2   : > { %v11381_v43 = vpop.xlane.xlu0 %11380 }
 0x8d3   : > { %v11387_v44 = vsub.f32 %v10915_v30, %v11381_v43 }
 0x8d5   : > { %v11393_v45 = vmul.f32 1.442695, %v11387_v44 }
 0x8d6   : > { %v11384_v47 = vpop.xlane.xlu0 %11383 }
 0x8d7   : > { %20889 = vpow2.f32 %v11393_v45  ;;  %v11388_v46 = vsub.f32 %v11369_v28, %v11384_v47 }
 0x8d9   : > { %v11395_v49 = vmul.f32 1.442695, %v11388_v46 }
 0x8db   : > { %20891 = vpow2.f32 %v11395_v49 }
 0x8e1   : > { %v22388_v51 = vpop.eup %20889 }
 0x8e2   : > { %v11403_v52 = vsel %vm4019_vm3, %v22388_v51, 0.0 }
 0x8e3   : > { %11404 = vadd.xlane.f32.xlu1 %v11403_v52 }
 0x8e5   : > { %v22392_v55 = vpop.eup %20891 }
 0x8e6   : > { %v11406_v56 = vsel %vm4019_vm3, %v22392_v55, 0.0 }
 0x8ec   : > { %11407 = vadd.xlane.f32.xlu0 %v11406_v56 }
 0x8f4   : > { %12773 = vrot.lane.b32.xlu1 %v21733_v57, %s21181_s17 }
 0x8f8   : > { %13246 = vrot.lane.b32.xlu1 %v21654_v15, %s21182_s25 }
 0x8fc   : > { %13700 = vrot.lane.b32.xlu1 %v21650_v13, %s21182_s25 }
 0x900   : > { %13702 = vrot.lane.b32.xlu1 %v21652_v14, %s21182_s25 }
 0x902   : > { %12321 = vrot.lane.b32.xlu0 %v21736_v58, %s21181_s17 }
 0x904   : > { %14608 = vrot.lane.b32.xlu1 %v21666_v21, %s21182_s25 }
 0x906   : > { %13248 = vrot.lane.b32.xlu0 %v21658_v17, %s21182_s25 }
 0x908   : > { %14610 = vrot.lane.b32.xlu1 %v21669_v23, %s21182_s25 }
 0x90a   : > { %14154 = vrot.lane.b32.xlu0 %v21671_v24, %s21182_s25 }
 0x90e   : > { %14156 = vrot.lane.b32.xlu0 %v21676_v27, %s21182_s25 }
 0x93a   : > { %v11402_v13 = vpop.xlane.xlu1 %11401 }
 0x93b   : > { %20893 = vrcp.f32 %v11402_v13 }
 0x93e   : > { %v11870_v14 = vpop.permute.xlu1 %11869 }
 0x93f   : > { %v22416_v15 = vand.u32 4294901760, %v11870_v14 }
 0x941   : > { %19753 = vmatpush3.msra.mxu1 %v22416_v15  ;;  %v11953_v23 = vsub.f32 %v11870_v14, %v22416_v15 }
 0x942   : > { %19757 = vmatprep.subr.mxu1 %v21178_v12 }
 0x943   : > { %v11954_v62 = vand.u32 4294901760, %v11953_v23 }
 0x944   : > { %v11399_v21 = vpop.xlane.xlu0 %11398 }
 0x945   : > { %v20894_v17 = vpop.eup %20893  ;;  %20895 = vrcp.f32 %v11399_v21  ;;  %v11955_v0 = vsub.f32 %v11953_v23, %v11954_v62 }
 0x946   : > { %v11412_v48 = vmul.f32 %v20894_v17, %v20886_v39 }
 0x947   : > { %v11956_v7 = vand.u32 4294901760, %v11955_v0 }
 0x948   : > { %v11418_v59 = vpop.permute.xlu0 %11417  ;;  %v11873_v24 = vsel %vm4019_vm3, %v11412_v48, 0 }
 0x949   : > { %v22422_v60 = vand.u32 4294901760, %v11418_v59  ;;  %v22424_v27 = vand.u32 4294901760, %v11873_v24 }
 0x94b   : > { %19723 = vmatpush3.msra.mxu0 %v22422_v60  ;;  %v11942_v63 = vsub.f32 %v11873_v24, %v22424_v27  ;;  %v11501_v3 = vsub.f32 %v11418_v59, %v22422_v60 }
 0x94c   : > { %19727 = vmatprep.subr.mxu0 %v21178_v12 }
 0x94d   : > { %v11943_v50 = vand.u32 4294901760, %v11942_v63  ;;  %v11502_v18 = vand.u32 4294901760, %v11501_v3 }
 0x94f   : > { %v20896_v10 = vpop.eup %20895  ;;  %v11944_v1 = vsub.f32 %v11942_v63, %v11943_v50  ;;  %v11503_v22 = vsub.f32 %v11501_v3, %v11502_v18 }
 0x950   : > { %v11410_v2 = vmul.f32 %v20896_v10, %v20888_v41 }
 0x951   : > { %v11945_v5 = vand.u32 4294901760, %v11944_v1  ;;  %v11504_v28 = vand.u32 4294901760, %v11503_v22 }
 0x952   : > { %v11421_v9 = vsel %vm4019_vm3, %v11410_v2, 0 }
 0x953   : > { %19755 = vmatmul.mubr.f32.vlgmr.msra.gmra.mrb[26].mxu1 %v11945_v5  ;;  %v22431_v16 = vand.u32 4294901760, %v11421_v9 }
 0x954   : > { %19758 = vmatpush3.msra.mxu1 %v11956_v7  ;;  %19759 = vmatprep.mubr.msk.f32.mxu1 %vm21179_vm1, %v21178_v12 }
 0x955   : > { %19762 = vmatprep.subr.mxu1 %v21178_v12  ;;  %v11490_v19 = vsub.f32 %v11421_v9, %v22431_v16 }
 0x957   : > { %v11491_v20 = vand.u32 4294901760, %v11490_v19 }
 0x959   : > { %v11492_v25 = vsub.f32 %v11490_v19, %v11491_v20 }
 0x95b   : > { %19760 = vmatmul.mubr.f32.vlgmr.msra.gmra.mrb[26].mxu1 %v22424_v27  ;;  %v11493_v26 = vand.u32 4294901760, %v11492_v25 }
 0x95c   : > { %19763 = vmatpush3.msra.mxu1 %v11953_v23  ;;  %19764 = vmatprep.mubr.msk.f32.mxu1 %vm21179_vm1, %v21178_v12 }
 0x95d   : > { %19725 = vmatmul.mubr.f32.vlgmr.msra.gmra.mrb[26].mxu0 %v11493_v26  ;;  %19767 = vmatprep.subr.mxu1 %v21178_v12 }
 0x95e   : > { %19728 = vmatpush3.msra.mxu0 %v11504_v28  ;;  %19729 = vmatprep.mubr.msk.f32.mxu0 %vm21179_vm1, %v21178_v12 }
 0x95f   : > { %19732 = vmatprep.subr.mxu0 %v21178_v12 }
 0x963   : > { %19765 = vmatmul.mubr.f32.vlgmr.msra.gmra.mrb[26].mxu1 %v11942_v63 }
 0x964   : > { %19768 = vmatpush3.msra.mxu1 %v22416_v15  ;;  %19769 = vmatprep.mubr.msk.f32.mxu1 %vm21179_vm1, %v21178_v12 }
 0x965   : > { %19730 = vmatmul.mubr.f32.vlgmr.msra.gmra.mrb[26].mxu0 %v22431_v16  ;;  %19772 = vmatprep.subr.mxu1 %v21178_v12 }
 0x966   : > { %19733 = vmatpush3.msra.mxu0 %v11501_v3  ;;  %19734 = vmatprep.mubr.msk.f32.mxu0 %vm21179_vm1, %v21178_v12 }
 0x967   : > { %19737 = vmatprep.subr.mxu0 %v21178_v12 }
 0x96b   : > { %19770 = vmatmul.mubr.f32.vlgmr.msra.gmra.mrb[26].mxu1 %v11943_v50 }
 0x96c   : > { %19773 = vmatpush3.msra.mxu1 %v11954_v62  ;;  %19774 = vmatprep.mubr.msk.f32.mxu1 %vm21179_vm1, %v21178_v12 }
 0x96d   : > { %19735 = vmatmul.mubr.f32.vlgmr.msra.gmra.mrb[26].mxu0 %v11490_v19  ;;  %19777 = vmatprep.subr.mxu1 %v21178_v12 }
 0x96e   : > { %19738 = vmatpush3.msra.mxu0 %v22422_v60  ;;  %19739 = vmatprep.mubr.msk.f32.mxu0 %vm21179_vm1, %v21178_v12 }
 0x96f   : > { %19742 = vmatprep.subr.mxu0 %v21178_v12 }
 0x970   : > { %v11405_v29 = vpop.xlane.xlu1 %11404 }
 0x971   : > { %20897 = vrcp.f32 %v11405_v29 }
 0x973   : > { %19775 = vmatmul.mubr.f32.vlgmr.msra.gmra.mrb[26].mxu1 %v22424_v27 }
 0x974   : > { %19778 = vmatpush3.msra.mxu1 %v22416_v15  ;;  %19779 = vmatprep.mubr.msk.f32.mxu1 %vm21179_vm1, %v21178_v12  ;;  %v12774_v30 = vpop.permute.xlu1 %12773 }
 0x975   : > { %19740 = vmatmul.mubr.f32.vlgmr.msra.gmra.mrb[26].mxu0 %v11491_v20  ;;  %19812 = vmatprep.subr.mxu1 %v21178_v12  ;;  %v22467_v33 = vand.u32 4294901760, %v12774_v30 }
 0x976   : > { %19743 = vmatpush3.msra.mxu0 %v11502_v18  ;;  %19744 = vmatprep.mubr.msk.f32.mxu0 %vm21179_vm1, %v21178_v12 }
 0x977   : > { %19747 = vmatprep.subr.mxu0 %v21178_v12  ;;  %v12857_v47 = vsub.f32 %v12774_v30, %v22467_v33 }
 0x978   : > { %v13247_v48 = vpop.permute.xlu1 %13246 }
 0x979   : > { %v11408_v31 = vpop.xlane.xlu0 %11407  ;;  %v13250_v59 = vsel %vm2210_vm2, %v13247_v48, 0 }
 0x97a   : > { %20899 = vrcp.f32 %v11408_v31 }
 0x97b   : > { %v20898_v34 = vpop.eup %20897  ;;  %19780 = vmatmul.mubr.f32.vlgmr.msra.gmra.mrb[26].mxu1 %v22424_v27  ;;  %v22520_v27 = vand.u32 4294901760, %v13250_v59 }
 0x97c   : > { %v11414_v32 = vmul.f32 %v20898_v34, %v22388_v51  ;;  %19813 = vmatpush3.msra.mxu1 %v22467_v33  ;;  %19814 = vmatprep.mubr.msk.f32.mxu1 %vm21179_vm1, %v21178_v12 }
 0x97d   : > { %19745 = vmatmul.mubr.f32.vlgmr.msra.gmra.mrb[26].mxu0 %v22431_v16  ;;  %v12322_v35 = vpop.permute.xlu0 %12321  ;;  %19817 = vmatprep.subr.mxu1 %v21178_v12  ;;  %v22530_v63 = vsub.f32 %v13250_v59, %v22520_v27 }
 0x97e   : > { %19748 = vmatpush3.msra.mxu0 %v22422_v60  ;;  %v22477_v36 = vand.u32 4294901760, %v12322_v35  ;;  %19749 = vmatprep.mubr.msk.f32.mxu0 %vm21179_vm1, %v21178_v12  ;;  %v12325_v37 = vsel %vm4019_vm3, %v11414_v32, 0  ;;  %v13701_v60 = vpop.permute.xlu1 %13700 }
 0x97f   : > { %19782 = vmatprep.subr.mxu0 %v21178_v12  ;;  %v22483_v61 = vand.u32 4294901760, %v12325_v37  ;;  %v13704_v10 = vsel %vm2210_vm2, %v13701_v60, 0  ;;  %v13322_v1 = vand.u32 4294901760, %v22530_v63 }
 0x980   : > { %v12405_v38 = vsub.f32 %v12322_v35, %v22477_v36  ;;  %v22546_v5 = vand.u32 4294901760, %v13704_v10 }
 0x981   : > { %v12394_v39 = vsub.f32 %v12325_v37, %v22483_v61  ;;  %v13249_v23 = vpop.permute.xlu0 %13248  ;;  %v13323_v9 = vsub.f32 %v22530_v63, %v13322_v1 }
 0x982   : > { %v12406_v40 = vand.u32 4294901760, %v12405_v38  ;;  %v13252_v24 = vsel %vm2210_vm2, %v13249_v23, 0  ;;  %v13703_v50 = vpop.permute.xlu1 %13702  ;;  %v22554_v18 = vsub.f32 %v13704_v10, %v22546_v5 }
 0x983   : > { %v12395_v41 = vand.u32 4294901760, %v12394_v39  ;;  %v22523_v62 = vand.u32 4294901760, %v13252_v24  ;;  %v13706_v2 = vsel %vm2210_vm2, %v13703_v50, 0  ;;  %v13324_v20 = vand.u32 4294901760, %v13323_v9 }
 0x984   : > { %v20900_v42 = vpop.eup %20899  ;;  %v12407_v43 = vsub.f32 %v12405_v38, %v12406_v40  ;;  %v22549_v7 = vand.u32 4294901760, %v13706_v2  ;;  %v13776_v25 = vand.u32 4294901760, %v22554_v18 }
 0x985   : > { %v11416_v44 = vmul.f32 %v20900_v42, %v22392_v55  ;;  %19750 = vmatmul.mubr.f32.vlgmr.msra.gmra.mrb[26].mxu0 %v22431_v16  ;;  %v12396_v45 = vsub.f32 %v12394_v39, %v12395_v41  ;;  %v12858_v55 = vand.u32 4294901760, %v12857_v47  ;;  %v22533_v0 = vsub.f32 %v13252_v24, %v22523_v62 }
 0x986   : > { %v12408_v46 = vand.u32 4294901760, %v12407_v43  ;;  %19783 = vmatpush3.msra.mxu0 %v22477_v36  ;;  %19784 = vmatprep.mubr.msk.f32.mxu0 %vm21179_vm1, %v21178_v12  ;;  %v22558_v19 = vsub.f32 %v13706_v2, %v22549_v7  ;;  %v13777_v28 = vsub.f32 %v22554_v18, %v13776_v25 }
 0x987   : > { %19787 = vmatprep.subr.mxu0 %v21178_v12  ;;  %v12397_v49 = vand.u32 4294901760, %v12396_v45  ;;  %v12777_v51 = vsel %vm4019_vm3, %v11416_v44, 0  ;;  %v12859_v14 = vsub.f32 %v12857_v47, %v12858_v55  ;;  %v13333_v3 = vand.u32 4294901760, %v22533_v0 }
 0x988   : > { %v22495_v52 = vand.u32 4294901760, %v12777_v51  ;;  %v13787_v26 = vand.u32 4294901760, %v22558_v19  ;;  %v13778_v30 = vand.u32 4294901760, %v13777_v28 }
 0x989   : > { %19785 = vmatmul.mubr.f32.vlgmr.msra.gmra.mrb[28].mxu0 %v12397_v49  ;;  %v12860_v17 = vand.u32 4294901760, %v12859_v14  ;;  %v13334_v16 = vsub.f32 %v22533_v0, %v13333_v3 }
 0x98a   : > { %19788 = vmatpush3.msra.mxu0 %v12408_v46  ;;  %19789 = vmatprep.mubr.msk.f32.mxu0 %vm21179_vm1, %v21178_v12  ;;  %v12846_v56 = vsub.f32 %v12777_v51, %v22495_v52  ;;  %v13788_v29 = vsub.f32 %v22558_v19, %v13787_v26 }
 0x98b   : > { %19792 = vmatprep.subr.mxu0 %v21178_v12  ;;  %v13335_v22 = vand.u32 4294901760, %v13334_v16 }
 0x98c   : > { %v12847_v13 = vand.u32 4294901760, %v12846_v56  ;;  %v13789_v31 = vand.u32 4294901760, %v13788_v29 }
 0x98e   : > { %v12848_v15 = vsub.f32 %v12846_v56, %v12847_v13 }
 0x990   : > { %v12849_v21 = vand.u32 4294901760, %v12848_v15 }
 0x991   : > { %19790 = vmatmul.mubr.f32.vlgmr.msra.gmra.mrb[28].mxu0 %v22483_v61 }
 0x992   : > { %19793 = vmatpush3.msra.mxu0 %v12405_v38  ;;  %19794 = vmatprep.mubr.msk.f32.mxu0 %vm21179_vm1, %v21178_v12 }
 0x993   : > { %19815 = vmatmul.mubr.f32.vlgmr.msra.gmra.mrb[28].mxu1 %v12849_v21  ;;  %19797 = vmatprep.subr.mxu0 %v21178_v12 }
 0x994   : > { %19818 = vmatpush3.msra.mxu1 %v12860_v17  ;;  %19819 = vmatprep.mubr.msk.f32.mxu1 %vm21179_vm1, %v21178_v12 }
 0x995   : > { %19822 = vmatprep.subr.mxu1 %v21178_v12 }
 0x999   : > { %19795 = vmatmul.mubr.f32.vlgmr.msra.gmra.mrb[28].mxu0 %v12394_v39 }
 0x99a   : > { %19798 = vmatpush3.msra.mxu0 %v22477_v36  ;;  %19799 = vmatprep.mubr.msk.f32.mxu0 %vm21179_vm1, %v21178_v12 }
 0x99b   : > { %19820 = vmatmul.mubr.f32.vlgmr.msra.gmra.mrb[28].mxu1 %v22495_v52  ;;  %19802 = vmatprep.subr.mxu0 %v21178_v12 }
 0x99c   : > { %19823 = vmatpush3.msra.mxu1 %v12857_v47  ;;  %19824 = vmatprep.mubr.msk.f32.mxu1 %vm21179_vm1, %v21178_v12 }
 0x99d   : > { %19827 = vmatprep.subr.mxu1 %v21178_v12 }
 0x9a1   : > { %19800 = vmatmul.mubr.f32.vlgmr.msra.gmra.mrb[28].mxu0 %v12395_v41 }
 0x9a2   : > { %19803 = vmatpush3.msra.mxu0 %v12406_v40  ;;  %19804 = vmatprep.mubr.msk.f32.mxu0 %vm21179_vm1, %v21178_v12 }
 0x9a3   : > { %19825 = vmatmul.mubr.f32.vlgmr.msra.gmra.mrb[28].mxu1 %v12846_v56  ;;  %19807 = vmatprep.subr.mxu0 %v21178_v12 }
 0x9a4   : > { %19828 = vmatpush3.msra.mxu1 %v22467_v33  ;;  %19829 = vmatprep.mubr.msk.f32.mxu1 %vm21179_vm1, %v21178_v12 }
 0x9a5   : > { %19832 = vmatprep.subr.mxu1 %v21178_v12 }
 0x9a9   : > { %19805 = vmatmul.mubr.f32.vlgmr.msra.gmra.mrb[28].mxu0 %v22483_v61 }
 0x9aa   : > { %19808 = vmatpush3.msra.mxu0 %v22477_v36  ;;  %19809 = vmatprep.mubr.msk.f32.mxu0 %vm21179_vm1, %v21178_v12  ;;  %v14609_v36 = vpop.permute.xlu1 %14608 }
 0x9ab   : > { %19830 = vmatmul.mubr.f32.vlgmr.msra.gmra.mrb[28].mxu1 %v12847_v13  ;;  %19842 = vmatprep.subr.mxu0 %v21178_v12  ;;  %v14612_v41 = vsel %vm2210_vm2, %v14609_v36, 0 }
 0x9ac   : > { %19833 = vmatpush3.msra.mxu1 %v12858_v55  ;;  %19834 = vmatprep.mubr.msk.f32.mxu1 %vm21179_vm1, %v21178_v12  ;;  %v22624_v45 = vand.u32 4294901760, %v14612_v41 }
 0x9ad   : > { %19837 = vmatprep.subr.mxu1 %v21178_v12 }
 0x9ae   : > { %v14611_v39 = vpop.permute.xlu1 %14610  ;;  %v14683_v51 = vsub.f32 %v14612_v41, %v22624_v45 }
 0x9af   : > { %v14614_v43 = vsel %vm2210_vm2, %v14611_v39, 0 }
 0x9b0   : > { %v22627_v47 = vand.u32 4294901760, %v14614_v43  ;;  %v14684_v13 = vand.u32 4294901760, %v14683_v51 }
 0x9b1   : > { %19810 = vmatmul.mubr.f32.vlgmr.msra.gmra.mrb[28].mxu0 %v22483_v61 }
 0x9b2   : > { %19843 = vmatpush3.xpose.msra.mxu0 %v22523_v62  ;;  %19844 = vmatprep.mubr.msk.f32.mxu0 %vm21179_vm1, %v21178_v12  ;;  %v14685_v15 = vsub.f32 %v14683_v51, %v14684_v13 }
 0x9b3   : > { %19835 = vmatmul.mubr.f32.vlgmr.msra.gmra.mrb[28].mxu1 %v22495_v52  ;;  %19847 = vmatprep.subr.mxu0 %v21178_v12 }
 0x9b4   : > { %19838 = vmatpush3.msra.mxu1 %v22467_v33  ;;  %19839 = vmatprep.mubr.msk.f32.mxu1 %vm21179_vm1, %v21178_v12  ;;  %v14155_v33 = vpop.permute.xlu0 %14154  ;;  %v14686_v17 = vand.u32 4294901760, %v14685_v15 }
 0x9b5   : > { %19845 = vmatmul.mubr.f32.vlgmr.msra.gmra.mrb[30].mxu0 %v13324_v20  ;;  %19872 = vmatprep.subr.mxu1 %v21178_v12  ;;  %v14158_v32 = vsel %vm2210_vm2, %v14155_v33, 0 }
 0x9b6   : > { %19848 = vmatpush3.xpose.msra.mxu0 %v13335_v22  ;;  %19849 = vmatprep.mubr.msk.f32.mxu0 %vm21179_vm1, %v21178_v12  ;;  %v22603_v37 = vand.u32 4294901760, %v14158_v32 }
 0x9b7   : > { %19852 = vmatprep.subr.mxu0 %v21178_v12 }
 0x9b8   : > { %v14157_v34 = vpop.permute.xlu0 %14156  ;;  %v14229_v38 = vsub.f32 %v14158_v32, %v22603_v37 }
 0x9b9   : > { %v14160_v35 = vsel %vm2210_vm2, %v14157_v34, 0 }
 0x9ba   : > { %v22607_v61 = vand.u32 4294901760, %v14160_v35  ;;  %v14230_v42 = vand.u32 4294901760, %v14229_v38 }
 0x9bb   : > { %19840 = vmatmul.mubr.f32.vlgmr.msra.gmra.mrb[28].mxu1 %v22495_v52  ;;  %v14694_v52 = vsub.f32 %v14614_v43, %v22627_v47 }
 0x9bc   : > { %19873 = vmatpush3.xpose.msra.mxu1 %v22549_v7  ;;  %19874 = vmatprep.mubr.msk.f32.mxu1 %vm21179_vm1, %v21178_v12  ;;  %v14240_v40 = vsub.f32 %v14160_v35, %v22607_v61  ;;  %v14231_v46 = vsub.f32 %v14229_v38, %v14230_v42 }
 0x9bd   : > { %19850 = vmatmul.mubr.f32.vlgmr.msra.gmra.mrb[30].mxu0 %v22520_v27  ;;  %19877 = vmatprep.subr.mxu1 %v21178_v12  ;;  %v14695_v14 = vand.u32 4294901760, %v14694_v52 }
 0x9be   : > { %19853 = vmatpush3.xpose.msra.mxu0 %v22533_v0  ;;  %19854 = vmatprep.mubr.msk.f32.mxu0 %vm21179_vm1, %v21178_v12  ;;  %v14241_v44 = vand.u32 4294901760, %v14240_v40  ;;  %v14232_v55 = vand.u32 4294901760, %v14231_v46 }
 0x9bf   : > { %19875 = vmatmul.mubr.f32.vlgmr.msra.gmra.mrb[30].mxu1 %v13778_v30  ;;  %19857 = vmatprep.subr.mxu0 %v21178_v12  ;;  %v14696_v21 = vsub.f32 %v14694_v52, %v14695_v14 }
 0x9c0   : > { %19878 = vmatpush3.xpose.msra.mxu1 %v13789_v31  ;;  %19879 = vmatprep.mubr.msk.f32.mxu1 %vm21179_vm1, %v21178_v12  ;;  %v14242_v49 = vsub.f32 %v14240_v40, %v14241_v44 }
 0x9c1   : > { %19882 = vmatprep.subr.mxu1 %v21178_v12  ;;  %v14697_v48 = vand.u32 4294901760, %v14696_v21 }
 0x9c2   : > { %v14243_v56 = vand.u32 4294901760, %v14242_v49 }
 0x9c5   : > { %19855 = vmatmul.mubr.f32.vlgmr.msra.gmra.mrb[30].mxu0 %v22530_v63 }
 0x9c6   : > { %19858 = vmatpush3.xpose.msra.mxu0 %v22523_v62  ;;  %19859 = vmatprep.mubr.msk.f32.mxu0 %vm21179_vm1, %v21178_v12 }
 0x9c7   : > { %19880 = vmatmul.mubr.f32.vlgmr.msra.gmra.mrb[30].mxu1 %v22546_v5  ;;  %19862 = vmatprep.subr.mxu0 %v21178_v12 }
 0x9c8   : > { %19883 = vmatpush3.xpose.msra.mxu1 %v22558_v19  ;;  %19884 = vmatprep.mubr.msk.f32.mxu1 %vm21179_vm1, %v21178_v12 }
 0x9c9   : > { %19887 = vmatprep.subr.mxu1 %v21178_v12 }
 0x9cd   : > { %19860 = vmatmul.mubr.f32.vlgmr.msra.gmra.mrb[30].mxu0 %v13322_v1 }
 0x9ce   : > { %19863 = vmatpush3.xpose.msra.mxu0 %v13333_v3  ;;  %19864 = vmatprep.mubr.msk.f32.mxu0 %vm21179_vm1, %v21178_v12 }
 0x9cf   : > { %19885 = vmatmul.mubr.f32.vlgmr.msra.gmra.mrb[30].mxu1 %v22554_v18  ;;  %19867 = vmatprep.subr.mxu0 %v21178_v12 }
 0x9d0   : > { %19888 = vmatpush3.xpose.msra.mxu1 %v22549_v7  ;;  %19889 = vmatprep.mubr.msk.f32.mxu1 %vm21179_vm1, %v21178_v12 }
 0x9d1   : > { %19892 = vmatprep.subr.mxu1 %v21178_v12 }
 0x9d5   : > { %19865 = vmatmul.mubr.f32.vlgmr.msra.gmra.mrb[30].mxu0 %v22520_v27 }
 0x9d6   : > { %19868 = vmatpush3.xpose.msra.mxu0 %v22523_v62  ;;  %19869 = vmatprep.mubr.msk.f32.mxu0 %vm21179_vm1, %v21178_v12 }
 0x9d7   : > { %19890 = vmatmul.mubr.f32.vlgmr.msra.gmra.mrb[30].mxu1 %v13776_v25  ;;  %19902 = vmatprep.subr.mxu0 %v21178_v12 }
 0x9d8   : > { %19893 = vmatpush3.xpose.msra.mxu1 %v13787_v26  ;;  %19894 = vmatprep.mubr.msk.f32.mxu1 %vm21179_vm1, %v21178_v12 }
 0x9d9   : > { %19897 = vmatprep.subr.mxu1 %v21178_v12 }
 0x9dd   : > { %19870 = vmatmul.mubr.f32.vlgmr.msra.gmra.mrb[30].mxu0 %v22520_v27 }
 0x9de   : > { %19903 = vmatpush3.xpose.msra.mxu0 %v22607_v61  ;;  %19904 = vmatprep.mubr.msk.f32.mxu0 %vm21179_vm1, %v21178_v12 }
 0x9df   : > { %19895 = vmatmul.mubr.f32.vlgmr.msra.gmra.mrb[30].mxu1 %v22546_v5  ;;  %19907 = vmatprep.subr.mxu0 %v21178_v12 }
 0x9e0   : > { %19898 = vmatpush3.xpose.msra.mxu1 %v22549_v7  ;;  %19899 = vmatprep.mubr.msk.f32.mxu1 %vm21179_vm1, %v21178_v12 }
 0x9e1   : > { %19905 = vmatmul.mubr.f32.vlgmr.msra.gmra.mrb[32].mxu0 %v14232_v55  ;;  %19932 = vmatprep.subr.mxu1 %v21178_v12 }
 0x9e2   : > { %19908 = vmatpush3.xpose.msra.mxu0 %v14243_v56  ;;  %19909 = vmatprep.mubr.msk.f32.mxu0 %vm21179_vm1, %v21178_v12 }
 0x9e3   : > { %19912 = vmatprep.subr.mxu0 %v21178_v12 }
 0x9e7   : > { %19900 = vmatmul.mubr.f32.vlgmr.msra.gmra.mrb[30].mxu1 %v22546_v5 }
 0x9e8   : > { %19933 = vmatpush3.xpose.msra.mxu1 %v22627_v47  ;;  %19934 = vmatprep.mubr.msk.f32.mxu1 %vm21179_vm1, %v21178_v12 }
 0x9e9   : > { %19910 = vmatmul.mubr.f32.vlgmr.msra.gmra.mrb[32].mxu0 %v22603_v37  ;;  %19937 = vmatprep.subr.mxu1 %v21178_v12 }
 0x9ea   : > { %19913 = vmatpush3.xpose.msra.mxu0 %v14240_v40  ;;  %19914 = vmatprep.mubr.msk.f32.mxu0 %vm21179_vm1, %v21178_v12 }
 0x9eb   : > { %19935 = vmatmul.mubr.f32.vlgmr.msra.gmra.mrb[32].mxu1 %v14686_v17  ;;  %19917 = vmatprep.subr.mxu0 %v21178_v12 }
 0x9ec   : > { %19938 = vmatpush3.xpose.msra.mxu1 %v14697_v48  ;;  %19939 = vmatprep.mubr.msk.f32.mxu1 %vm21179_vm1, %v21178_v12 }
 0x9ed   : > { %19942 = vmatprep.subr.mxu1 %v21178_v12 }
 0x9f1   : > { %19915 = vmatmul.mubr.f32.vlgmr.msra.gmra.mrb[32].mxu0 %v14229_v38 }
 0x9f2   : > { %19918 = vmatpush3.xpose.msra.mxu0 %v22607_v61  ;;  %19919 = vmatprep.mubr.msk.f32.mxu0 %vm21179_vm1, %v21178_v12 }
 0x9f3   : > { %19940 = vmatmul.mubr.f32.vlgmr.msra.gmra.mrb[32].mxu1 %v22624_v45  ;;  %19922 = vmatprep.subr.mxu0 %v21178_v12 }
 0x9f4   : > { %19943 = vmatpush3.xpose.msra.mxu1 %v14694_v52  ;;  %19944 = vmatprep.mubr.msk.f32.mxu1 %vm21179_vm1, %v21178_v12 }
 0x9f5   : > { %19947 = vmatprep.subr.mxu1 %v21178_v12 }
 0x9f9   : > { %19920 = vmatmul.mubr.f32.vlgmr.msra.gmra.mrb[32].mxu0 %v14230_v42 }
 0x9fa   : > { %19923 = vmatpush3.xpose.msra.mxu0 %v14241_v44  ;;  %19924 = vmatprep.mubr.msk.f32.mxu0 %vm21179_vm1, %v21178_v12 }
 0x9fb   : > { %19945 = vmatmul.mubr.f32.vlgmr.msra.gmra.mrb[32].mxu1 %v14683_v51  ;;  %19927 = vmatprep.subr.mxu0 %v21178_v12 }
 0x9fc   : > { %19948 = vmatpush3.xpose.msra.mxu1 %v22627_v47  ;;  %19949 = vmatprep.mubr.msk.f32.mxu1 %vm21179_vm1, %v21178_v12 }
 0x9fd   : > { %19952 = vmatprep.subr.mxu1 %v21178_v12 }
 0xa01   : > { %19925 = vmatmul.mubr.f32.vlgmr.msra.gmra.mrb[32].mxu0 %v22603_v37 }
 0xa02   : > { %19928 = vmatpush3.xpose.msra.mxu0 %v22607_v61  ;;  %19929 = vmatprep.mubr.msk.f32.mxu0 %vm21179_vm1, %v21178_v12 }
 0xa03   : > { %19950 = vmatmul.mubr.f32.vlgmr.msra.gmra.mrb[32].mxu1 %v14684_v13  ;;  %19962 = vmatprep.subr.mxu0 %v21178_v12 }
 0xa04   : > { %19953 = vmatpush3.xpose.msra.mxu1 %v14695_v14  ;;  %19954 = vmatprep.mubr.msk.f32.mxu1 %vm21179_vm1, %v21178_v12 }
 0xa05   : > { %19957 = vmatprep.subr.mxu1 %v21178_v12 }
 0xa09   : > { %19930 = vmatmul.mubr.f32.vlgmr.msra.gmra.mrb[32].mxu0 %v22603_v37 }
 0xa0a   : > { %19964 = vmatprep.mubr.msk.f32.mxu0 %vm21179_vm1, %v21178_v12 }
 0xa0b   : > { %19955 = vmatmul.mubr.f32.vlgmr.msra.gmra.mrb[32].mxu1 %v22624_v45 }
 0xa0c   : > { %19958 = vmatpush3.xpose.msra.mxu1 %v22627_v47  ;;  %19959 = vmatprep.mubr.msk.f32.mxu1 %vm21179_vm1, %v21178_v12 }
 0xa0d   : > { %19992 = vmatprep.subr.mxu1 %v21178_v12 }
 0xa13   : > { %19960 = vmatmul.mubr.f32.vlgmr.msra.gmra.mrb[32].mxu1 %v22624_v45 }
 0xa14   : > { %19994 = vmatprep.mubr.msk.f32.mxu1 %vm21179_vm1, %v21178_v12 }
 0xa4e   : > { %v12317_v23 = vpop.f32.mrb[26].mxu1 }
 0xa4f   : > { %v19781_v59 = vpop.f32.mrb[27].mxu1 }
 0xa58   : > { %v11865_v24 = vpop.f32.mrb[26].mxu0 }
 0xa59   : > { %v19751_v60 = vpop.f32.mrb[27].mxu0 }
 0xa84   : > { %v12769_v27 = vpop.f32.mrb[28].mxu0 }
 0xa85   : > { %v19811_v62 = vpop.f32.mrb[29].mxu0 }
 0xa8e   : > { %v13221_v63 = vpop.f32.mrb[28].mxu1 }
 0xa8f   : > { %v19841_v50 = vpop.f32.mrb[29].mxu1 }
 0xab0   : > { %v13696_v0 = vpop.f32.mrb[30].mxu0 }
 0xab1   : > { %v19871_v10 = vpop.f32.mrb[31].mxu0  ;;  %v15062_v1 = vsel %vm4019_vm3, %v13696_v0, -inf }
 0xab2   : > { %15063 = vmax.xlane.f32.xlu0 %v15062_v1 }
 0xaba   : > { %v14150_v2 = vpop.f32.mrb[30].mxu1 }
 0xabb   : > { %v19901_v3 = vpop.f32.mrb[31].mxu1  ;;  %v15065_v5 = vsel %vm4019_vm3, %v14150_v2, -inf }
 0xabc   : > { %15066 = vmax.xlane.f32.xlu1 %v15065_v5 }
 0xadc   : > { %v14604_v7 = vpop.f32.mrb[32].mxu0 }
 0xadd   : > { %v19931_v9 = vpop.f32.mrb[33].mxu0  ;;  %v15068_v16 = vsel %vm4019_vm3, %v14604_v7, -inf }
 0xade   : > { %15069 = vmax.xlane.f32.xlu0 %v15068_v16 }
 0xae6   : > { %v15058_v18 = vpop.f32.mrb[32].mxu1 }
 0xae7   : > { %v19961_v19 = vpop.f32.mrb[33].mxu1  ;;  %v15071_v20 = vsel %vm4019_vm3, %v15058_v18, -inf }
 0xae8   : > { %15072 = vmax.xlane.f32.xlu0 %v15071_v20 }
 0xb3f   : > { %v15064_v22 = vpop.xlane.xlu0 %15063 }
 0xb40   : > { %v15074_v25 = vsub.f32 %v13696_v0, %v15064_v22 }
 0xb42   : > { %v15078_v26 = vmul.f32 1.442695, %v15074_v25 }
 0xb44   : > { %20901 = vpow2.f32 %v15078_v26 }
 0xb49   : > { %v15067_v28 = vpop.xlane.xlu1 %15066 }
 0xb4a   : > { %v15075_v29 = vsub.f32 %v14150_v2, %v15067_v28 }
 0xb4c   : > { %v15080_v30 = vmul.f32 1.442695, %v15075_v29 }
 0xb4e   : > { %v20902_v31 = vpop.eup %20901  ;;  %20903 = vpow2.f32 %v15080_v30 }
 0xb4f   : > { %v15086_v33 = vsel %vm4019_vm3, %v20902_v31, 0.0 }
 0xb50   : > { %15087 = vadd.xlane.f32.xlu0 %v15086_v33 }
 0xb58   : > { %v20904_v34 = vpop.eup %20903 }
 0xb59   : > { %v15089_v32 = vsel %vm4019_vm3, %v20904_v34, 0.0 }
 0xb5a   : > { %15090 = vadd.xlane.f32.xlu1 %v15089_v32 }
 0xb66   : > { %15106 = vrot.lane.b32.xlu0 %v21728_v54, %s21182_s25 }
 0xb6b   : > { %15558 = vrot.lane.b32.xlu1 %v21725_v53, %s21182_s25  ;;  %v15070_v35 = vpop.xlane.xlu0 %15069 }
 0xb6c   : > { %v15076_v38 = vsub.f32 %v14604_v7, %v15070_v35 }
 0xb6e   : > { %v15082_v39 = vmul.f32 1.442695, %v15076_v38 }
 0xb75   : > { %v15073_v36 = vpop.xlane.xlu0 %15072 }
 0xb76   : > { %v15077_v37 = vsub.f32 %v15058_v18, %v15073_v36 }
 0xb78   : > { %v15084_v61 = vmul.f32 1.442695, %v15077_v37 }
 0xb7a   : > { %20905 = vpow2.f32 %v15084_v61 }
 0xb7b   : > { %20907 = vpow2.f32 %v15082_v39 }
 0xb84   : > { %v22700_v40 = vpop.eup %20905 }
 0xb85   : > { %v15095_v41 = vsel %vm4019_vm3, %v22700_v40, 0.0  ;;  %v22704_v42 = vpop.eup %20907 }
 0xb86   : > { %15096 = vadd.xlane.f32.xlu0 %v15095_v41  ;;  %v15092_v54 = vsel %vm4019_vm3, %v22704_v42, 0.0 }
 0xb8f   : > { %15093 = vadd.xlane.f32.xlu1 %v15092_v54 }
 0xb9c   : > { %16010 = vrot.lane.b32.xlu0 %v21736_v58, %s21182_s25 }
 0xba0   : > { %16462 = vrot.lane.b32.xlu1 %v21733_v57, %s21182_s25  ;;  %13229 = vrot.lane.b32.xlu0 %v11865_v24, %s23046_s26  ;;  %s22924_s25 = scalar_lea.vmem [#allocation12], %s21468_s21 }
 0xba4   : > { %9540 = vrot.lane.b32.xlu1 %v22370_v4, %s21184_s19  ;;  %9544 = vrot.lane.b32.xlu0 %v22376_v11, %s21184_s19 }
 0xba8   : > { %9542 = vrot.lane.b32.xlu1 %v22372_v6, %s21184_s19  ;;  %13233 = vrot.lane.b32.xlu0 %v12769_v27, %s23046_s26 }
 0xbac   : > { %13231 = vrot.lane.b32.xlu1 %v12317_v23, %s23046_s26 }
 0xbb0   : > { %9546 = vrot.lane.b32.xlu1 %v22374_v8, %s21184_s19  ;;  %s18188_s19 = sshll.u32 %s22924_s25, 4  ;;  %s22933_s19 = int_to_ptr.vmem [resolvable:$true] %s18188_s19 }
 0xbb1   : > { %s21063_s17 = scalar_lea.vmem %s22933_s19, 512 }
 0xbb2   : > { %p21064_p3 = scmp.ne.s32.totalorder %s22933_s19, %s21063_s17 }
 0xbb4   : > { %13235 = vrot.lane.b32.xlu1 %v13221_v63, %s23046_s26  ;;  %p21065_p5 = pnand %p21064_p3, %p21410_p10 }
 0xbb6   : > { %p21066_p7 = pneg %p21065_p5 }
 0xbdd   : > { %v15088_v53 = vpop.xlane.xlu0 %15087 }
 0xbde   : > { %20909 = vrcp.f32 %v15088_v53 }
 0xbe1   : > { %v15107_v57 = vpop.permute.xlu0 %15106 }
 0xbe2   : > { %v22720_v58 = vand.u32 4294901760, %v15107_v57 }
 0xbe4   : > { %19963 = vmatpush3.msra.mxu0 %v22720_v58  ;;  %v15190_v43 = vsub.f32 %v15107_v57, %v22720_v58 }
 0xbe5   : > { %19967 = vmatprep.subr.mxu0 %v21178_v12 }
 0xbe6   : > { %v15191_v46 = vand.u32 4294901760, %v15190_v43 }
 0xbe7   : > { %v15091_v4 = vpop.xlane.xlu1 %15090 }
 0xbe8   : > { %v20910_v11 = vpop.eup %20909  ;;  %20911 = vrcp.f32 %v15091_v4  ;;  %v15192_v52 = vsub.f32 %v15190_v43, %v15191_v46 }
 0xbe9   : > { %v15099_v6 = vmul.f32 %v20910_v11, %v20902_v31 }
 0xbea   : > { %v15193_v21 = vand.u32 4294901760, %v15192_v52 }
 0xbeb   : > { %v15559_v44 = vpop.permute.xlu1 %15558  ;;  %v15110_v8 = vsel %vm4019_vm3, %v15099_v6, 0 }
 0xbec   : > { %v22726_v45 = vand.u32 4294901760, %v15559_v44  ;;  %v22728_v47 = vand.u32 4294901760, %v15110_v8 }
 0xbee   : > { %19993 = vmatpush3.msra.mxu1 %v22726_v45  ;;  %v15179_v49 = vsub.f32 %v15110_v8, %v22728_v47  ;;  %v15642_v14 = vsub.f32 %v15559_v44, %v22726_v45  ;;  %v16939_v44 = vld [vmem:[#allocation11] sm:$0xff]  ;;  %v16940_v8 = vld [vmem:[#allocation11 + $0x8] sm:$0xff] }
 0xbef   : > { %19997 = vmatprep.subr.mxu1 %v21178_v12 }
 0xbf0   : > { %v15180_v51 = vand.u32 4294901760, %v15179_v49  ;;  %v15643_v23 = vand.u32 4294901760, %v15642_v14 }
 0xbf2   : > { %v20912_v55 = vpop.eup %20911  ;;  %v15181_v56 = vsub.f32 %v15179_v49, %v15180_v51  ;;  %v15644_v60 = vsub.f32 %v15642_v14, %v15643_v23 }
 0xbf3   : > { %v15101_v13 = vmul.f32 %v20912_v55, %v20904_v34 }
 0xbf4   : > { %v15182_v15 = vand.u32 4294901760, %v15181_v56  ;;  %v15645_v63 = vand.u32 4294901760, %v15644_v60 }
 0xbf5   : > { %v15562_v17 = vsel %vm4019_vm3, %v15101_v13, 0 }
 0xbf6   : > { %19965 = vmatmul.mubr.f32.vlgmr.msra.gmra.mrb[34].mxu0 %v15182_v15  ;;  %v22735_v48 = vand.u32 4294901760, %v15562_v17 }
 0xbf7   : > { %19968 = vmatpush3.msra.mxu0 %v15193_v21  ;;  %19969 = vmatprep.mubr.msk.f32.mxu0 %vm21179_vm1, %v21178_v12 }
 0xbf8   : > { %19972 = vmatprep.subr.mxu0 %v21178_v12  ;;  %v15631_v59 = vsub.f32 %v15562_v17, %v22735_v48 }
 0xbfa   : > { %v15632_v24 = vand.u32 4294901760, %v15631_v59 }
 0xbfc   : > { %v15633_v27 = vsub.f32 %v15631_v59, %v15632_v24 }
 0xbfe   : > { %19970 = vmatmul.mubr.f32.vlgmr.msra.gmra.mrb[34].mxu0 %v22728_v47  ;;  %v15634_v62 = vand.u32 4294901760, %v15633_v27 }
 0xbff   : > { %19973 = vmatpush3.msra.mxu0 %v15190_v43  ;;  %19974 = vmatprep.mubr.msk.f32.mxu0 %vm21179_vm1, %v21178_v12 }
 0xc00   : > { %19995 = vmatmul.mubr.f32.vlgmr.msra.gmra.mrb[34].mxu1 %v15634_v62  ;;  %19977 = vmatprep.subr.mxu0 %v21178_v12 }
 0xc01   : > { %19998 = vmatpush3.msra.mxu1 %v15645_v63  ;;  %19999 = vmatprep.mubr.msk.f32.mxu1 %vm21179_vm1, %v21178_v12 }
 0xc02   : > { %20002 = vmatprep.subr.mxu1 %v21178_v12 }
 0xc06   : > { %19975 = vmatmul.mubr.f32.vlgmr.msra.gmra.mrb[34].mxu0 %v15179_v49  ;;  %v17549_v49 = vld [vmem:[%s23035_s5 + $0x8] sm:$0xff] }
 0xc07   : > { %19978 = vmatpush3.msra.mxu0 %v22720_v58  ;;  %19979 = vmatprep.mubr.msk.f32.mxu0 %vm21179_vm1, %v21178_v12 }
 0xc08   : > { %20000 = vmatmul.mubr.f32.vlgmr.msra.gmra.mrb[34].mxu1 %v22735_v48  ;;  %19982 = vmatprep.subr.mxu0 %v21178_v12 }
 0xc09   : > { %20003 = vmatpush3.msra.mxu1 %v15642_v14  ;;  %20004 = vmatprep.mubr.msk.f32.mxu1 %vm21179_vm1, %v21178_v12 }
 0xc0a   : > { %20007 = vmatprep.subr.mxu1 %v21178_v12 }
 0xc0e   : > { %19980 = vmatmul.mubr.f32.vlgmr.msra.gmra.mrb[34].mxu0 %v15180_v51 }
 0xc0f   : > { %19983 = vmatpush3.msra.mxu0 %v15191_v46  ;;  %19984 = vmatprep.mubr.msk.f32.mxu0 %vm21179_vm1, %v21178_v12  ;;  %v16964_v46 = vand.u32 4294901760, %v16940_v8 }
 0xc10   : > { %20005 = vmatmul.mubr.f32.vlgmr.msra.gmra.mrb[34].mxu1 %v15631_v59  ;;  %19987 = vmatprep.subr.mxu0 %v21178_v12 }
 0xc11   : > { %20008 = vmatpush3.msra.mxu1 %v22726_v45  ;;  %20009 = vmatprep.mubr.msk.f32.mxu1 %vm21179_vm1, %v21178_v12  ;;  %v17076_v15 = vsub.f32 %v16940_v8, %v16964_v46 }
 0xc12   : > { %20012 = vmatprep.subr.mxu1 %v21178_v12 }
 0xc13   : > { %v15097_v50 = vpop.xlane.xlu0 %15096 }
 0xc14   : > { %20913 = vrcp.f32 %v15097_v50 }
 0xc16   : > { %19985 = vmatmul.mubr.f32.vlgmr.msra.gmra.mrb[34].mxu0 %v22728_v47 }
 0xc17   : > { %19988 = vmatpush3.msra.mxu0 %v22720_v58  ;;  %v16011_v0 = vpop.permute.xlu0 %16010  ;;  %19989 = vmatprep.mubr.msk.f32.mxu0 %vm21179_vm1, %v21178_v12 }
 0xc18   : > { %20010 = vmatmul.mubr.f32.vlgmr.msra.gmra.mrb[34].mxu1 %v15632_v24  ;;  %20022 = vmatprep.subr.mxu0 %v21178_v12  ;;  %v22771_v2 = vand.u32 4294901760, %v16011_v0 }
 0xc19   : > { %20013 = vmatpush3.msra.mxu1 %v15643_v23  ;;  %20014 = vmatprep.mubr.msk.f32.mxu1 %vm21179_vm1, %v21178_v12  ;;  %v17077_v23 = vand.u32 4294901760, %v17076_v15 }
 0xc1a   : > { %20017 = vmatprep.subr.mxu1 %v21178_v12  ;;  %v16094_v33 = vsub.f32 %v16011_v0, %v22771_v2 }
 0xc1b   : > { %v13230_v10 = vpop.permute.xlu0 %13229  ;;  %v17078_v63 = vsub.f32 %v17076_v15, %v17077_v23 }
 0xc1c   : > { %v15094_v1 = vpop.xlane.xlu1 %15093  ;;  %v16095_v39 = vand.u32 4294901760, %v16094_v33 }
 0xc1d   : > { %20915 = vrcp.f32 %v15094_v1  ;;  %v17079_v1 = vand.u32 4294901760, %v17078_v63 }
 0xc1e   : > { %v20914_v3 = vpop.eup %20913  ;;  %19990 = vmatmul.mubr.f32.vlgmr.msra.gmra.mrb[34].mxu0 %v22728_v47  ;;  %v16096_v54 = vsub.f32 %v16094_v33, %v16095_v39  ;;  %v16961_v47 = vand.u32 4294901760, %v16939_v44 }
 0xc1f   : > { %v15105_v5 = vmul.f32 %v20914_v3, %v22700_v40  ;;  %20023 = vmatpush3.msra.mxu0 %v22771_v2  ;;  %v9545_v7 = vpop.permute.xlu0 %9544  ;;  %20024 = vmatprep.mubr.msk.f32.mxu0 %vm21179_vm1, %v21178_v12 }
 0xc20   : > { %9555 = vst.msk [vmem:[#allocation2 + $0x10] sm:$0xff] %vm9552_vm4, %v9545_v7  ;;  %20015 = vmatmul.mubr.f32.vlgmr.msra.gmra.mrb[34].mxu1 %v22735_v48  ;;  %v16463_v9 = vpop.permute.xlu1 %16462  ;;  %20027 = vmatprep.subr.mxu0 %v21178_v12  ;;  %v16097_v4 = vand.u32 4294901760, %v16096_v54  ;;  %v22849_v55 = vpack.c.bf16 %v16964_v46, %v16961_v47  ;;  %v17069_v14 = vsub.f32 %v16939_v44, %v16961_v47 }
 0xc21   : > { %20018 = vmatpush3.msra.mxu1 %v22726_v45  ;;  %v22782_v16 = vand.u32 4294901760, %v16463_v9  ;;  %20019 = vmatprep.mubr.msk.f32.mxu1 %vm21179_vm1, %v21178_v12  ;;  %v16466_v18 = vsel %vm4019_vm3, %v15105_v5, 0  ;;  %v17548_v45 = vld [vmem:[%s23035_s5] sm:$0xff] }
 0xc22   : > { %20052 = vmatprep.subr.mxu1 %v21178_v12  ;;  %v22788_v19 = vand.u32 4294901760, %v16466_v18  ;;  %v17558_v51 = vand.u32 4294901760, %v17548_v45 }
 0xc23   : > { %v16546_v20 = vsub.f32 %v16463_v9, %v22782_v16  ;;  %v13234_v22 = vpop.permute.xlu0 %13233 }
 0xc24   : > { %13244 = vst.msk [vmem:[#allocation2 + $0x10] sm:$0xff] %vm13241_vm5, %v13234_v22  ;;  %v9541_v25 = vpop.permute.xlu1 %9540  ;;  %v16535_v26 = vsub.f32 %v16466_v18, %v22788_v19  ;;  %v17666_v21 = vsub.f32 %v17548_v45, %v17558_v51  ;;  %v20282_v18 = vpack.c.bf16 %v17076_v15, %v17069_v14 }
 0xc25   : > { %v16547_v28 = vand.u32 4294901760, %v16546_v20  ;;  %9553 = vst.msk [vmem:[#allocation2] sm:$0xff] %vm9552_vm4, %v9541_v25 }
 0xc26   : > { %13242 = vst.msk [vmem:[#allocation2] sm:$0xff] %vm13241_vm5, %v13230_v10  ;;  %v16536_v29 = vand.u32 4294901760, %v16535_v26  ;;  %v17667_v59 = vand.u32 4294901760, %v17666_v21 }
 0xc27   : > { %v20916_v30 = vpop.eup %20915  ;;  %v16548_v31 = vsub.f32 %v16546_v20, %v16547_v28 }
 0xc28   : > { %v15103_v34 = vmul.f32 %v20916_v30, %v22704_v42  ;;  %20020 = vmatmul.mubr.f32.vlgmr.msra.gmra.mrb[34].mxu1 %v22735_v48  ;;  %v9543_v32 = vpop.permute.xlu1 %9542  ;;  %v16537_v35 = vsub.f32 %v16535_v26, %v16536_v29  ;;  %v17070_v48 = vand.u32 4294901760, %v17069_v14  ;;  %v17668_v50 = vsub.f32 %v17666_v21, %v17667_v59 }
 0xc29   : > { %v16549_v36 = vand.u32 4294901760, %v16548_v31  ;;  %20053 = vmatpush3.msra.mxu1 %v22782_v16  ;;  %9554 = vst.msk [vmem:[#allocation2 + $0x8] sm:$0xff] %vm9552_vm4, %v9543_v32  ;;  %20054 = vmatprep.mubr.msk.f32.mxu1 %vm21179_vm1, %v21178_v12 }
 0xc2a   : > { %20057 = vmatprep.subr.mxu1 %v21178_v12  ;;  %v16538_v37 = vand.u32 4294901760, %v16537_v35  ;;  %v16014_v61 = vsel %vm4019_vm3, %v15103_v34, 0  ;;  %v17071_v62 = vsub.f32 %v17069_v14, %v17070_v48 }
 0xc2b   : > { %v16082_v38 = vand.u32 4294901760, %v16014_v61 }
 0xc2c   : > { %v13232_v40 = vpop.permute.xlu1 %13231  ;;  %20055 = vmatmul.mubr.f32.vlgmr.msra.gmra.mrb[36].mxu1 %v16538_v37  ;;  %v17072_v10 = vand.u32 4294901760, %v17071_v62  ;;  %v20917_v62 = vld [vmem:[%s21472_s24 + $0x8] sm:$0xff] }
 0xc2d   : > { %13243 = vst.msk [vmem:[#allocation2 + $0x8] sm:$0xff] %vm13241_vm5, %v13232_v40  ;;  %20058 = vmatpush3.msra.mxu1 %v16549_v36  ;;  %20059 = vmatprep.mubr.msk.f32.mxu1 %vm21179_vm1, %v21178_v12  ;;  %v16083_v41 = vsub.f32 %v16014_v61, %v16082_v38 }
 0xc2e   : > { %20062 = vmatprep.subr.mxu1 %v21178_v12  ;;  %v20278_v5 = vpack.c.bf16 %v17079_v1, %v17072_v10 }
 0xc2f   : > { %v16084_v42 = vand.u32 4294901760, %v16083_v41 }
 0xc30   : > { %v9547_v53 = vpop.permute.xlu1 %9546 }
 0xc31   : > { %9556 = vst.msk [vmem:[#allocation2 + $0x18] sm:$0xff] %vm9552_vm4, %v9547_v53  ;;  %v16085_v57 = vsub.f32 %v16083_v41, %v16084_v42 }
 0xc33   : > { %v16086_v58 = vand.u32 4294901760, %v16085_v57 }
 0xc34   : > { %v13236_v11 = vpop.permute.xlu1 %13235  ;;  %20060 = vmatmul.mubr.f32.vlgmr.msra.gmra.mrb[36].mxu1 %v22788_v19 }
 0xc35   : > { %13245 = vst.msk [vmem:[#allocation2 + $0x18] sm:$0xff] %vm13241_vm5, %v13236_v11  ;;  %20063 = vmatpush3.msra.mxu1 %v16546_v20  ;;  %20025 = vmatmul.mubr.f32.vlgmr.msra.gmra.mrb[36].mxu0 %v16086_v58  ;;  %v22860_v20 = vpack.c.bf16 %v17077_v23, %v17070_v48 }
 0xc36   : > { %20028 = vmatpush3.msra.mxu0 %v16097_v4  ;;  %20064 = vmatprep.mubr.msk.f32.mxu1 %vm21179_vm1, %v21178_v12 }
 0xc37   : > { %20067 = vmatprep.subr.mxu1 %v21178_v12  ;;  %20029 = vmatprep.mubr.msk.f32.mxu0 %vm21179_vm1, %v21178_v12 }
 0xc38   : > { %20032 = vmatprep.subr.mxu0 %v21178_v12 }
 0xc3c   : > { %20065 = vmatmul.mubr.f32.vlgmr.msra.gmra.mrb[36].mxu1 %v16535_v26 }
 0xc3d   : > { %20068 = vmatpush3.msra.mxu1 %v22782_v16  ;;  %20030 = vmatmul.mubr.f32.vlgmr.msra.gmra.mrb[36].mxu0 %v16082_v38 }
 0xc3e   : > { %20033 = vmatpush3.msra.mxu0 %v16094_v33  ;;  %20069 = vmatprep.mubr.msk.f32.mxu1 %vm21179_vm1, %v21178_v12 }
 0xc3f   : > { %20072 = vmatprep.subr.mxu1 %v21178_v12  ;;  %20034 = vmatprep.mubr.msk.f32.mxu0 %vm21179_vm1, %v21178_v12 }
 0xc40   : > { %20037 = vmatprep.subr.mxu0 %v21178_v12 }
 0xc44   : > { %20070 = vmatmul.mubr.f32.vlgmr.msra.gmra.mrb[36].mxu1 %v16536_v29 }
 0xc45   : > { %20073 = vmatpush3.msra.mxu1 %v16547_v28  ;;  %20035 = vmatmul.mubr.f32.vlgmr.msra.gmra.mrb[36].mxu0 %v16083_v41 }
 0xc46   : > { %20038 = vmatpush3.msra.mxu0 %v22771_v2  ;;  %20074 = vmatprep.mubr.msk.f32.mxu1 %vm21179_vm1, %v21178_v12 }
 0xc47   : > { %20077 = vmatprep.subr.mxu1 %v21178_v12  ;;  %20039 = vmatprep.mubr.msk.f32.mxu0 %vm21179_vm1, %v21178_v12 }
 0xc48   : > { %20042 = vmatprep.subr.mxu0 %v21178_v12 }
 0xc4c   : > { %20075 = vmatmul.mubr.f32.vlgmr.msra.gmra.mrb[36].mxu1 %v22788_v19 }
 0xc4d   : > { %20078 = vmatpush3.msra.mxu1 %v22782_v16  ;;  %20040 = vmatmul.mubr.f32.vlgmr.msra.gmra.mrb[36].mxu0 %v16084_v42 }
 0xc4e   : > { %20043 = vmatpush3.msra.mxu0 %v16095_v39  ;;  %20079 = vmatprep.mubr.msk.f32.mxu1 %vm21179_vm1, %v21178_v12 }
 0xc4f   : > { %20044 = vmatprep.mubr.msk.f32.mxu0 %vm21179_vm1, %v21178_v12  ;;  %20047 = vmatprep.subr.mxu0 %v21178_v12 }
 0xc54   : > { %20080 = vmatmul.mubr.f32.vlgmr.msra.gmra.mrb[36].mxu1 %v22788_v19 }
 0xc55   : > { %20045 = vmatmul.mubr.f32.vlgmr.msra.gmra.mrb[36].mxu0 %v16082_v38 }
 0xc56   : > { %20048 = vmatpush3.msra.mxu0 %v22771_v2  ;;  %20049 = vmatprep.mubr.msk.f32.mxu0 %vm21179_vm1, %v21178_v12  ;;  %v17561_v12 = vand.u32 4294901760, %v17549_v49  ;;  %v17669_v2 = vand.u32 4294901760, %v17668_v50 }
 0xc57   : > { %20275 = vmatprep.subr.bf16.mxu0 %v22849_v55 }
 0xc58   : > { %v22852_v13 = vpack.c.bf16 %v17561_v12, %v17558_v51  ;;  %v17673_v17 = vsub.f32 %v17549_v49, %v17561_v12  ;;  %v18365_v51 = vld [vmem:[%s23036_s6] ss:$0 sm:$0xff] }
 0xc59   : > { %v18366_v12 = vld [vmem:[%s23037_s7] ss:$0 sm:$0xff] }
 0xc5a   : > { %20299 = vmatprep.subr.bf16.mxu1 %v22852_v13  ;;  %v17674_v24 = vand.u32 4294901760, %v17673_v17  ;;  %v20306_v19 = vpack.c.bf16 %v17673_v17, %v17666_v21 }
 0xc5b   : > { %20301 = vmatpush3.bf16.msra.mxu1 %v22852_v13 }
 0xc5c   : > { %v17675_v0 = vsub.f32 %v17673_v17, %v17674_v24  ;;  %v22862_v22 = vpack.c.bf16 %v17674_v24, %v17667_v59 }
 0xc5d   : > { %20050 = vmatmul.mubr.f32.vlgmr.msra.gmra.mrb[36].mxu0 %v16082_v38 }
 0xc5e   : > { %20277 = vmatpush3.bf16.msra.mxu0 %v22849_v55  ;;  %v17676_v3 = vand.u32 4294901760, %v17675_v0 }
 0xc5f   : > { %20279 = vmatprep.subr.bf16.mxu0 %v20278_v5 }
 0xc60   : > { %v20302_v7 = vpack.c.bf16 %v17676_v3, %v17669_v2  ;;  %v20918_v3 = vld [vmem:[%s21472_s24] sm:$0xff] }
 0xc62   : > { %20303 = vmatprep.subr.bf16.mxu1 %v20302_v7 }
 0xcf1   : > { %v15554_v6 = vpop.f32.mrb[34].mxu0 }
 0xcf2   : > { %16918 = vrot.lane.b32.xlu0 %v15554_v6, %s21185_s22  ;;  %v19991_v43 = vpop.f32.mrb[35].mxu0 }
 0xcfb   : > { %v16006_v52 = vpop.f32.mrb[34].mxu1 }
 0xcfc   : > { %v20021_v56 = vpop.f32.mrb[35].mxu1  ;;  %16920 = vrot.lane.b32.xlu1 %v16006_v52, %s21185_s22 }
 0xd27   : > { %v16910_v60 = vpop.f32.mrb[36].mxu1 }
 0xd28   : > { %16924 = vrot.lane.b32.xlu1 %v16910_v60, %s21185_s22  ;;  %v20081_v27 = vpop.f32.mrb[37].mxu1 }
 0xd30   : > { %v16458_v9 = vpop.f32.mrb[36].mxu0 }
 0xd31   : > { %16922 = vrot.lane.b32.xlu0 %v16458_v9, %s21185_s22  ;;  %v20051_v16 = vpop.f32.mrb[37].mxu0  ;;  %s419_s22 = scalar_lea.vmem [#allocation13], %s21468_s21  ;;  %s21067_s21 = sshll.u32 %s21186_s13, 4  ;;  %s21068_s21 = int_to_ptr.vmem [resolvable:$false] %s21067_s21 }
 0xd32   : > { %s18204_s20 = sshll.u32 %s419_s22, 4  ;;  %s21069_s26 = scalar_lea.vmem %s21068_s21, 1024  ;;  %s22938_s20 = int_to_ptr.vmem [resolvable:$true] %s18204_s20 }
 0xd33   : > { %p21070_p12 = scmp.lt.s32.totalorder %s22933_s19, %s21068_s21  ;;  %p21071_p1 = scmp.lt.s32.totalorder %s21069_s26, %s21063_s17 }
 0xd35   : > { %p21072_p2 = por %p21071_p1, %p21070_p12 }
 0xd37   : > { %p21073_p13 = pnand %p21072_p2, %p21066_p7 }
 0xd64   : > { %v16919_v25 = vpop.permute.xlu0 %16918 }
 0xd65   : > { %16931 = vst.msk [vmem:[#allocation2] sm:$0xff] %vm16930_vm6, %v16919_v25  ;;  %v20919_v25 = vld [vmem:[%s21472_s24 + $0x18] sm:$0xff] }
 0xd6c   : > { %v16935_v26 = vld [vmem:[#allocation2] sm:$0xff] }
 0xd6d   : > { %v16949_v28 = vsel %vm429_vm0, %v16935_v26, 0 }
 0xd6e   : > { %v16921_v29 = vpop.permute.xlu1 %16920  ;;  %v22866_v30 = vand.u32 4294901760, %v16949_v28 }
 0xd6f   : > { %16932 = vst.msk [vmem:[#allocation2 + $0x8] sm:$0xff] %vm16930_vm6, %v16921_v29  ;;  %v20920_v29 = vld [vmem:[%s21472_s24 + $0x10] sm:$0xff]  ;;  %s18170_s24 = scalar_lea.sflag [#allocation5], %s21465_s30 }
 0xd70   : > { %v17028_v31 = vsub.f32 %v16949_v28, %v22866_v30 }
 0xd72   : > { %v22870_v33 = vand.u32 4294901760, %v17028_v31 }
 0xd74   : > { %v17030_v34 = vsub.f32 %v17028_v31, %v22870_v33 }
 0xd76   : > { %v17031_v32 = vand.u32 4294901760, %v17030_v34  ;;  %v16936_v35 = vld [vmem:[#allocation2 + $0x8] sm:$0xff] }
 0xd77   : > { %v16952_v36 = vsel %vm429_vm0, %v16936_v35, 0 }
 0xd78   : > { %20086 = vmatprep.mubr.f32.mxu0 %v17031_v32  ;;  %20146 = vmatprep.mubr.f32.mxu1 %v17031_v32  ;;  %v22874_v37 = vand.u32 4294901760, %v16952_v36 }
 0xd7a   : > { %v17038_v61 = vsub.f32 %v16952_v36, %v22874_v37 }
 0xd7c   : > { %v17039_v38 = vand.u32 4294901760, %v17038_v61 }
 0xd7e   : > { %v17040_v39 = vsub.f32 %v17038_v61, %v17039_v38 }
 0xd80   : > { %v17041_v40 = vand.u32 4294901760, %v17040_v39 }
 0xd82   : > { %20087 = vmatmul.mubr.f32.vlgmr.msra.gmra.mrb[38].mxu0 %v17041_v40  ;;  %20147 = vmatmul.mubr.f32.vlgmr.msra.gmra.mrb[38].mxu1 %v17041_v40 }
 0xd83   : > { %20281 = vmatpush3.bf16.msra.mxu0 %v20278_v5  ;;  %20305 = vmatpush3.bf16.msra.mxu1 %v20302_v7 }
 0xd84   : > { %20283 = vmatprep.subr.bf16.mxu0 %v20282_v18  ;;  %20307 = vmatprep.subr.bf16.mxu1 %v20306_v19 }
 0xd9a   : > { %v16925_v41 = vpop.permute.xlu1 %16924 }
 0xd9b   : > { %16934 = vst.msk [vmem:[#allocation2 + $0x18] sm:$0xff] %vm16930_vm6, %v16925_v41 }
 0xda2   : > { %v16938_v42 = vld [vmem:[#allocation2 + $0x18] sm:$0xff] }
 0xda3   : > { %v16923_v54 = vpop.permute.xlu0 %16922  ;;  %v16958_v53 = vsel %vm429_vm0, %v16938_v42, 0 }
 0xda4   : > { %16933 = vst.msk [vmem:[#allocation2 + $0x10] sm:$0xff] %vm16930_vm6, %v16923_v54  ;;  %v22880_v57 = vand.u32 4294901760, %v16958_v53 }
 0xda6   : > { %v17058_v58 = vsub.f32 %v16958_v53, %v22880_v57 }
 0xda8   : > { %v17059_v43 = vand.u32 4294901760, %v17058_v58 }
 0xdaa   : > { %v17060_v45 = vsub.f32 %v17058_v58, %v17059_v43 }
 0xdab   : > { %v16937_v4 = vld [vmem:[#allocation2 + $0x10] sm:$0xff] }
 0xdac   : > { %v16955_v11 = vsel %vm429_vm0, %v16937_v4, 0  ;;  %v17061_v49 = vand.u32 4294901760, %v17060_v45 }
 0xdad   : > { %v17047_v6 = vand.u32 4294901760, %v16955_v11 }
 0xdaf   : > { %v17048_v44 = vsub.f32 %v16955_v11, %v17047_v6 }
 0xdb1   : > { %v17049_v8 = vand.u32 4294901760, %v17048_v44 }
 0xdb3   : > { %v17050_v47 = vsub.f32 %v17048_v44, %v17049_v8 }
 0xdb5   : > { %v17051_v46 = vand.u32 4294901760, %v17050_v47 }
 0xdb7   : > { %20089 = vmatprep.mubr.f32.mxu0 %v17051_v46  ;;  %20149 = vmatprep.mubr.f32.mxu1 %v17051_v46 }
 0xdb8   : > { %20090 = vmatmul.mubr.f32.gmra.mrb[40].mxu0 %v17061_v49  ;;  %20150 = vmatmul.mubr.f32.gmra.mrb[40].mxu1 %v17061_v49 }
 0xdb9   : > { %20096 = vmatprep.mubr.f32.mxu0 %v22866_v30  ;;  %20156 = vmatprep.mubr.f32.mxu1 %v22866_v30 }
 0xdbc   : > { %20097 = vmatmul.mubr.f32.vlgmr.msra.gmra.mrb[38].mxu0 %v22874_v37  ;;  %20157 = vmatmul.mubr.f32.vlgmr.msra.gmra.mrb[38].mxu1 %v22874_v37 }
 0xdbd   : > { %20099 = vmatprep.mubr.f32.mxu0 %v17047_v6  ;;  %20285 = vmatpush3.bf16.msra.mxu0 %v20282_v18 }
 0xdbe   : > { %20159 = vmatprep.mubr.f32.mxu1 %v17047_v6  ;;  %20309 = vmatpush3.bf16.msra.mxu1 %v20306_v19 }
 0xdbf   : > { %20287 = vmatprep.subr.bf16.mxu0 %v22849_v55  ;;  %20311 = vmatprep.subr.bf16.mxu1 %v22852_v13 }
 0xdc0   : > { %20100 = vmatmul.mubr.f32.gmra.mrb[40].mxu0 %v22880_v57  ;;  %20160 = vmatmul.mubr.f32.gmra.mrb[40].mxu1 %v22880_v57 }
 0xdc1   : > { %20106 = vmatprep.mubr.f32.mxu0 %v17028_v31  ;;  %20166 = vmatprep.mubr.f32.mxu1 %v17028_v31 }
 0xdc4   : > { %20107 = vmatmul.mubr.f32.vlgmr.msra.gmra.mrb[38].mxu0 %v17038_v61  ;;  %20167 = vmatmul.mubr.f32.vlgmr.msra.gmra.mrb[38].mxu1 %v17038_v61 }
 0xdc5   : > { %20109 = vmatprep.mubr.f32.mxu0 %v17048_v44  ;;  %20289 = vmatpush3.bf16.msra.mxu0 %v22849_v55 }
 0xdc6   : > { %20169 = vmatprep.mubr.f32.mxu1 %v17048_v44  ;;  %20313 = vmatpush3.bf16.msra.mxu1 %v22852_v13 }
 0xdc7   : > { %20291 = vmatprep.subr.bf16.mxu0 %v22860_v20  ;;  %20315 = vmatprep.subr.bf16.mxu1 %v22862_v22 }
 0xdc8   : > { %20110 = vmatmul.mubr.f32.gmra.mrb[40].mxu0 %v17058_v58  ;;  %20170 = vmatmul.mubr.f32.gmra.mrb[40].mxu1 %v17058_v58 }
 0xdc9   : > { %20116 = vmatprep.mubr.f32.mxu0 %v22870_v33  ;;  %20176 = vmatprep.mubr.f32.mxu1 %v22870_v33 }
 0xdcc   : > { %20117 = vmatmul.mubr.f32.vlgmr.msra.gmra.mrb[38].mxu0 %v17039_v38  ;;  %20177 = vmatmul.mubr.f32.vlgmr.msra.gmra.mrb[38].mxu1 %v17039_v38 }
 0xdcd   : > { %20119 = vmatprep.mubr.f32.mxu0 %v17049_v8  ;;  %20293 = vmatpush3.bf16.msra.mxu0 %v22860_v20 }
 0xdce   : > { %20179 = vmatprep.mubr.f32.mxu1 %v17049_v8  ;;  %20317 = vmatpush3.bf16.msra.mxu1 %v22862_v22 }
 0xdcf   : > { %20295 = vmatprep.subr.bf16.mxu0 %v22849_v55  ;;  %20319 = vmatprep.subr.bf16.mxu1 %v22852_v13 }
 0xdd0   : > { %20120 = vmatmul.mubr.f32.gmra.mrb[40].mxu0 %v17059_v43  ;;  %20180 = vmatmul.mubr.f32.gmra.mrb[40].mxu1 %v17059_v43 }
 0xdd1   : > { %20126 = vmatprep.mubr.f32.mxu0 %v22866_v30  ;;  %20186 = vmatprep.mubr.f32.mxu1 %v22866_v30 }
 0xdd4   : > { %20127 = vmatmul.mubr.f32.vlgmr.msra.gmra.mrb[38].mxu0 %v22874_v37  ;;  %20187 = vmatmul.mubr.f32.vlgmr.msra.gmra.mrb[38].mxu1 %v22874_v37 }
 0xdd5   : > { %20129 = vmatprep.mubr.f32.mxu0 %v17047_v6  ;;  %20297 = vmatpush3.bf16.msra.mxu0 %v22849_v55 }
 0xdd6   : > { %20189 = vmatprep.mubr.f32.mxu1 %v17047_v6  ;;  %20321 = vmatpush3.bf16.msra.mxu1 %v22852_v13 }
 0xdd8   : > { %20130 = vmatmul.mubr.f32.gmra.mrb[40].mxu0 %v22880_v57  ;;  %20190 = vmatmul.mubr.f32.gmra.mrb[40].mxu1 %v22880_v57 }
 0xdd9   : > { %20136 = vmatprep.mubr.f32.mxu0 %v22866_v30  ;;  %20196 = vmatprep.mubr.f32.mxu1 %v22866_v30 }
 0xddc   : > { %20137 = vmatmul.mubr.f32.vlgmr.msra.gmra.mrb[38].mxu0 %v22874_v37  ;;  %20197 = vmatmul.mubr.f32.vlgmr.msra.gmra.mrb[38].mxu1 %v22874_v37 }
 0xddd   : > { %20139 = vmatprep.mubr.f32.mxu0 %v17047_v6  ;;  %20199 = vmatprep.mubr.f32.mxu1 %v17047_v6 }
 0xde0   : > { %20140 = vmatmul.mubr.f32.gmra.mrb[40].mxu0 %v22880_v57  ;;  %20200 = vmatmul.mubr.f32.gmra.mrb[40].mxu1 %v22880_v57 }
 0xeaf   : > { %v20138_v52 = vpop.f32.mrb[38].mxu0  ;;  %v20198_v55 = vpop.f32.mrb[38].mxu1 }
 0xeb0   : > { %v20322_v56 = vadd.f32 %v20138_v52, %v18365_v51  ;;  %v20326_v13 = vadd.f32 %v20198_v55, %v18366_v12  ;;  %v17526_v14 = vpop.f32.mrb[39].mxu0  ;;  %v18123_v15 = vpop.f32.mrb[39].mxu1 }
 0xeb1   : > { %v20323_v21 = vadd.f32 %v18365_v51, %v17526_v14  ;;  %v20327_v17 = vadd.f32 %v18366_v12, %v18123_v15 }
 0xeb2   : > { %v18146_v48 = vmax.f32 %v20322_v56, 0.0  ;;  %v18150_v23 = vmax.f32 %v20326_v13, 0.0 }
 0xeb3   : > { %v18145_v59 = vmax.f32 %v20323_v21, 0.0  ;;  %v18149_v24 = vmax.f32 %v20327_v17, 0.0  ;;  %v20141_v60 = vpop.f32.mrb[40].mxu0  ;;  %v20201_v27 = vpop.f32.mrb[40].mxu1 }
 0xeb4   : > { %v18154_v63 = vmul.f32 %v20917_v62, %v18146_v48  ;;  %v18162_v50 = vmul.f32 %v20917_v62, %v18150_v23  ;;  %v20324_v0 = vadd.f32 %v20141_v60, %v18365_v51  ;;  %v20328_v10 = vadd.f32 %v20201_v27, %v18366_v12  ;;  %v17538_v1 = vpop.f32.mrb[41].mxu0  ;;  %v18135_v2 = vpop.f32.mrb[41].mxu1 }
 0xeb5   : > { %v18153_v5 = vmul.f32 %v20918_v3, %v18145_v59  ;;  %v18161_v7 = vmul.f32 %v20918_v3, %v18149_v24  ;;  %v20325_v9 = vadd.f32 %v18365_v51, %v17538_v1  ;;  %v20329_v16 = vadd.f32 %v18366_v12, %v18135_v2 }
 0xeb6   : > { %18158 = vst.msk [vmem:[%s22924_s25 + $0x8] sm:$0xff] %vm429_vm0, %v18154_v63  ;;  %18166 = vst.msk [vmem:[%s419_s22 + $0x8] sm:$0xff] %vm429_vm0, %v18162_v50  ;;  %v18148_v18 = vmax.f32 %v20324_v0, 0.0  ;;  %v18152_v19 = vmax.f32 %v20328_v10, 0.0 }
 0xeb7   : > { %18157 = vst.msk [vmem:[%s22924_s25] sm:$0xff] %vm429_vm0, %v18153_v5  ;;  %18165 = vst.msk [vmem:[%s419_s22] sm:$0xff] %vm429_vm0, %v18161_v7  ;;  %v18147_v20 = vmax.f32 %v20325_v9, 0.0  ;;  %v18151_v22 = vmax.f32 %v20329_v16, 0.0 }
 0xeb8   : > { %v18156_v26 = vmul.f32 %v20919_v25, %v18148_v18  ;;  %v18164_v28 = vmul.f32 %v20919_v25, %v18152_v19 }
 0xeb9   : > { %v18155_v30 = vmul.f32 %v20920_v29, %v18147_v20  ;;  %v18163_v31 = vmul.f32 %v20920_v29, %v18151_v22 }
 0xeba   : > { %18160 = vst.msk [vmem:[%s22924_s25 + $0x18] sm:$0xff] %vm429_vm0, %v18156_v26  ;;  %18168 = vst.msk [vmem:[%s419_s22 + $0x18] sm:$0xff] %vm429_vm0, %v18164_v28 }
 0xebb   : > { %18159 = vst.msk [vmem:[%s22924_s25 + $0x10] sm:$0xff] %vm429_vm0, %v18155_v30  ;;  %18167 = vst.msk [vmem:[%s419_s22 + $0x10] sm:$0xff] %vm429_vm0, %v18163_v31 }
 0xebc   : > { %21076 = shalt.err (!%p21073_p13)
}
 0xebd   : > { %s21077_s25 = scalar_lea.hbm %s22945_s18, 512  ;;  %s21081_s16 = scalar_lea.hbm %s23038_s8, 1024 }
 0xebe   : > { %p21078_p9 = scmp.ne.s32.totalorder %s22945_s18, %s21077_s25  ;;  %p21082_p4 = scmp.lt.u32.totalorder %s22945_s18, %s23038_s8 }
 0xebf   : > { %p21083_p8 = scmp.lt.u32.totalorder %s21081_s16, %s21077_s25  ;;  %p21085_p3 = scmp.lt.u32.totalorder %s21077_s25, %s22945_s18 }
 0xec0   : > { %p21079_p0 = pnand %p21078_p9, %p21410_p10 }
 0xec1   : > { %p21084_p6 = por %p21083_p8, %p21082_p4 }
 0xec2   : > { %p21080_p11 = pneg %p21079_p0 }
 0xec3   : > { %p21086_p5 = por %p21085_p3, %p21084_p6 }
 0xec5   : > { %p21087_p7 = pnand %p21086_p5, %p21080_p11 }
 0xec7   : > { %21090 = shalt.err (!%p21087_p7)
}
 0xec8   : > { %s21187_s26 = smov 128   ;;  %s23066_s17 = smov 8  }
 0xec9   : > { %20768 = dma.vmem_to_hbm [thread:$0]  (%p21410_p10), %s22933_s19, 512, %s22945_s18, %s18170_s24, %s21187_s26, %s21187_s26, %s23066_s17  }
 0xeca   : > { %s18175_s21 = scalar_lea.sflag [#allocation14], %s21465_s30  ;;  %s21091_s25 = scalar_lea.vmem %s22938_s20, 512 }
 0xecb   : > { %p21092_p12 = scmp.ne.s32.totalorder %s22938_s20, %s21091_s25  ;;  %s21188_s22 = smov [#allocation13]  }
 0xecc   : > { %s21095_s29 = sshll.u32 %s21188_s22, 4  ;;  %s21096_s29 = int_to_ptr.vmem [resolvable:$false] %s21095_s29 }
 0xecd   : > { %p21093_p1 = pnand %p21092_p12, %p21410_p10  ;;  %s21097_s16 = scalar_lea.vmem %s21096_s29, 1024 }
 0xece   : > { %p21098_p13 = scmp.lt.s32.totalorder %s22938_s20, %s21096_s29  ;;  %p21099_p9 = scmp.lt.s32.totalorder %s21097_s16, %s21091_s25 }
 0xecf   : > { %p21094_p2 = pneg %p21093_p1 }
 0xed0   : > { %p21100_p0 = por %p21099_p9, %p21098_p13 }
 0xed2   : > { %p21101_p11 = pnand %p21100_p0, %p21094_p2 }
 0xed4   : > { %21104 = shalt.err (!%p21101_p11)
}
 0xed5   : > { %s21105_s19 = scalar_lea.hbm %s22953_s15, 512  ;;  %s21109_s23 = scalar_lea.hbm %s23065_s9, 1024 }
 0xed6   : > { %p21106_p4 = scmp.ne.s32.totalorder %s22953_s15, %s21105_s19  ;;  %p21110_p3 = scmp.lt.u32.totalorder %s22953_s15, %s23065_s9 }
 0xed7   : > { %p21111_p5 = scmp.lt.u32.totalorder %s21109_s23, %s21105_s19  ;;  %p21113_p12 = scmp.lt.u32.totalorder %s21105_s19, %s22953_s15 }
 0xed8   : > { %p21107_p8 = pnand %p21106_p4, %p21410_p10 }
 0xed9   : > { %p21112_p7 = por %p21111_p5, %p21110_p3 }
 0xeda   : > { %p21108_p6 = pneg %p21107_p8 }
 0xedb   : > { %p21114_p1 = por %p21113_p12, %p21112_p7 }
 0xedd   : > { %p21115_p2 = pnand %p21114_p1, %p21108_p6 }
 0xedf   : > { %21118 = shalt.err (!%p21115_p2)
}
 0xee0   : > { %20769 = dma.vmem_to_hbm [thread:$0]  (%p21410_p10), %s22938_s20, 512, %s22953_s15, %s18175_s21, %s21187_s26, %s21187_s26, %s23066_s17  }
 0xee1 PF: > { %s23067_s25 = sld [smem:[#allocation20_spill]]  ;;  %s23068_s29 = sld [smem:[#allocation21_spill]] }
 0xee2   : > { %p23070_p9 = scmp.ge.s32.totalorder %s21169_s12, 2 }
 0xee7   : > { %s18219_s16 = sand.u32 1, %s23067_s25   ;;  %p23069_p13 = scmp.ne.s32.totalorder %s23068_s29, 0 }
 0xee8   : > { %s18220_s19 = scalar_lea.sflag [#allocation5], %s18219_s16 }
 0xee9   : > { %p20790_p0 = pnand %p23070_p9, %p23069_p13 }
 0xeeb   : > { %21148 = dma.done.wait (!%p20790_p0), %s18220_s19, 512  }
 0xeec   : > { %21150 = vsyncadd (!%p20790_p0), %s18220_s19, 4294966784  ;;  %s18229_s27 = scalar_lea.sflag [#allocation14], %s18219_s16 }
 0xeed   : > { %21152 = dma.done.wait (!%p20790_p0), %s18229_s27, 512  }
 0xeee   : > { %21154 = vsyncadd (!%p20790_p0), %s18229_s27, 4294966784  ;;  %p28_p10 = scmp.ge.s32.totalorder %s21400_s14, 4   ;;  %s23071_s30 = smov %s21161_s10 }
 0xeef   : > { %s23072_s10 = smov %s21165_s11  ;;  %s23073_s11 = smov %s21416_s28 }
 0xef0   : > { %s23074_s12 = smov %s21400_s14  ;;  %30 = sbr.rel (!%p28_p10) target bundleno = 11 (0xb), region = 130 }
 0xef7   :  { %18234 = vsyncpa [#allocation4], 1 }
 0xef8   :  { %18236 = vsyncpa [#allocation4 + $0x1], 1 }
 0xef9   :  { %18237 = vsyncpa [#allocation7], 1 }
 0xefa   :  { %18238 = vsyncpa [#allocation10], 1 }
 0xefb   :  { %18239 = vsyncpa [#allocation5], 1 }
 0xefc   :  { %18241 = vsyncpa [#allocation5 + $0x1], 1 }
 0xefd   :  { %18242 = vsyncpa [#allocation14], 1 }
 0xefe   :  { %18244 = vsyncpa [#allocation14 + $0x1], 1 }

</bundles_post_ra>
